<compile_context>
chip_gen: v5e
topology: v5e:2x2
jax: 0.10.0
libtpu: 0.0.40
codegen_flags: <defaults>
</compile_context>

<pallas_src>
import jax
import jax.numpy as jnp
from jax.experimental import pallas as pl
from jax.experimental.pallas import tpu as pltpu


# ----------------------------------------------------------------------------
# Chip-adaptive VMEM limit (v5e/v6e: 128 MiB physical -> 64 MiB scoped;
# v7x: 64 MiB physical -> stay well under it).
# ----------------------------------------------------------------------------

def _detect_vmem_limit():
    default = 32 * 1024 * 1024
    try:
        cap = int(pltpu.get_tpu_info().vmem_capacity_bytes)
        if cap >= 128 * 1024 * 1024:
            return 64 * 1024 * 1024
        if cap > 0:
            return min(44 * 1024 * 1024, (cap * 3) // 4)
    except Exception:
        pass
    return default


VMEM_LIMIT = _detect_vmem_limit()


def _cparams(*sems):
    return pltpu.CompilerParams(dimension_semantics=sems,
                                vmem_limit_bytes=VMEM_LIMIT)


def _round_up(x, m):
    return ((x + m - 1) // m) * m


def _pick_divisor_tile(dim, target, mult):
    """Largest tile <= target that is a multiple of `mult` and divides `dim`;
    falls back to the full dim (used for model feature dims, which are assumed
    to be nicely shaped)."""
    if dim <= target or dim % mult != 0:
        return dim
    t = (min(target, dim) // mult) * mult
    while t > mult and dim % t != 0:
        t -= mult
    return t if dim % t == 0 else dim


def _tile_and_pad(dim, target, mult):
    """(tile, padded_dim) for a row/sequence axis we are allowed to zero-pad.
    Guarantees tile <= max(target, mult) and padded % tile == 0, so awkward
    lengths never degenerate into a whole-array VMEM block."""
    if dim <= target:
        p = _round_up(dim, mult)
        return p, p
    tile = max(mult, (target // mult) * mult)
    return tile, _round_up(dim, tile)


# ----------------------------------------------------------------------------
# Tiled GEMM + bias (Q / fused-QKV / fused-KV projections)
# ----------------------------------------------------------------------------

def _matmul_bias_kernel(x_ref, w_ref, b_ref, o_ref, acc_ref):
    @pl.when(pl.program_id(2) == 0)
    def _init():
        acc_ref[...] = jnp.zeros_like(acc_ref)

    acc_ref[...] += jnp.dot(x_ref[...], w_ref[...],
                            preferred_element_type=jnp.float32)

    @pl.when(pl.program_id(2) == pl.num_programs(2) - 1)
    def _fin():
        o_ref[...] = (acc_ref[...] + b_ref[...]).astype(o_ref.dtype)


def linear(x, w, b):
    """y = x @ w + b   x:(B,S,K) bf16, w:(K,N) bf16, b:(N,) f32 -> (B,S,N) bf16."""
    B, S, K = x.shape
    N = w.shape[1]
    M = B * S
    x2 = x.reshape(M, K)
    tm, Mp = _tile_and_pad(M, 512, 16)          # bf16 sublane packing -> mult 16
    if Mp != M:
        x2 = jnp.pad(x2, ((0, Mp - M), (0, 0)))
    tn = _pick_divisor_tile(N, 512, 128)
    tk = _pick_divisor_tile(K, 512, 128)
    out = pl.pallas_call(
        _matmul_bias_kernel,
        out_shape=jax.ShapeDtypeStruct((Mp, N), jnp.bfloat16),
        grid=(Mp // tm, N // tn, K // tk),
        in_specs=[
            pl.BlockSpec((tm, tk), lambda i, j, k: (i, k)),
            pl.BlockSpec((tk, tn), lambda i, j, k: (k, j)),
            pl.BlockSpec((1, tn), lambda i, j, k: (0, j)),
        ],
        out_specs=pl.BlockSpec((tm, tn), lambda i, j, k: (i, j)),
        scratch_shapes=[pltpu.VMEM((tm, tn), jnp.float32)],
        compiler_params=_cparams("parallel", "parallel", "arbitrary"),
    )(x2, w, b.reshape(1, N))
    return out[:M].reshape(B, S, N)


# ----------------------------------------------------------------------------
# Fused: output projection (K-tiled) + residual + LayerNorm
# ----------------------------------------------------------------------------

def _oproj_res_ln_kernel(a_ref, w_ref, b_ref, r_ref, g_ref, bb_ref, o_ref, acc_ref):
    k = pl.program_id(1)

    @pl.when(k == 0)
    def _init():
        acc_ref[...] = jnp.zeros_like(acc_ref)

    acc_ref[...] += jnp.dot(a_ref[...], w_ref[...],
                            preferred_element_type=jnp.float32)

    @pl.when(k == pl.num_programs(1) - 1)
    def _fin():
        h = acc_ref[...] + b_ref[...] + r_ref[...].astype(jnp.float32)
        mean = jnp.mean(h, axis=-1, keepdims=True)
        var = jnp.mean(jnp.square(h - mean), axis=-1, keepdims=True)
        inv = jax.lax.rsqrt(var + 1e-5)          # PyTorch LayerNorm default eps
        o_ref[...] = ((h - mean) * inv * g_ref[...] + bb_ref[...]).astype(o_ref.dtype)


def oproj_residual_ln(a, w, b, res, gamma, beta):
    B, S, D = a.shape
    M = B * S
    a2 = a.reshape(M, D)
    r2 = res.reshape(M, D)
    tm, Mp = _tile_and_pad(M, 256, 16)
    if Mp != M:
        a2 = jnp.pad(a2, ((0, Mp - M), (0, 0)))
        r2 = jnp.pad(r2, ((0, Mp - M), (0, 0)))
    tk = _pick_divisor_tile(D, 512, 128)
    out = pl.pallas_call(
        _oproj_res_ln_kernel,
        out_shape=jax.ShapeDtypeStruct((Mp, D), jnp.bfloat16),
        grid=(Mp // tm, D // tk),
        in_specs=[
            pl.BlockSpec((tm, tk), lambda i, k: (i, k)),
            pl.BlockSpec((tk, D), lambda i, k: (k, 0)),
            pl.BlockSpec((1, D), lambda i, k: (0, 0)),
            pl.BlockSpec((tm, D), lambda i, k: (i, 0)),
            pl.BlockSpec((1, D), lambda i, k: (0, 0)),
            pl.BlockSpec((1, D), lambda i, k: (0, 0)),
        ],
        out_specs=pl.BlockSpec((tm, D), lambda i, k: (i, 0)),
        scratch_shapes=[pltpu.VMEM((tm, D), jnp.float32)],
        compiler_params=_cparams("parallel", "arbitrary"),
    )(a2, w, b.reshape(1, D), r2, gamma.reshape(1, D), beta.reshape(1, D))
    return out[:M].reshape(B, S, D)


# ----------------------------------------------------------------------------
# Fused FFN: GELU(x@W1+b1)@W2+b2 + residual + LayerNorm, d_ff tiled on the grid
# (only a (D,tff)+(tff,D) weight slice and a (tm,tff) intermediate are live).
# ----------------------------------------------------------------------------

def _ffn_res_ln_kernel(x_ref, w1_ref, b1_ref, w2_ref, b2_ref, g_ref, bb_ref,
                       o_ref, acc_ref):
    j = pl.program_id(1)

    @pl.when(j == 0)
    def _init():
        acc_ref[...] = jnp.zeros_like(acc_ref)

    h = jnp.dot(x_ref[...], w1_ref[...],
                preferred_element_type=jnp.float32) + b1_ref[...]
    h = jax.nn.gelu(h)
    acc_ref[...] += jnp.dot(h.astype(w2_ref.dtype), w2_ref[...],
                            preferred_element_type=jnp.float32)

    @pl.when(j == pl.num_programs(1) - 1)
    def _fin():
        hh = acc_ref[...] + b2_ref[...] + x_ref[...].astype(jnp.float32)
        mean = jnp.mean(hh, axis=-1, keepdims=True)
        var = jnp.mean(jnp.square(hh - mean), axis=-1, keepdims=True)
        inv = jax.lax.rsqrt(var + 1e-5)
        o_ref[...] = ((hh - mean) * inv * g_ref[...] + bb_ref[...]).astype(o_ref.dtype)


def ffn_residual_ln(x, w1, b1, w2, b2, gamma, beta):
    B, S, D = x.shape
    dff = w1.shape[1]
    M = B * S
    x2 = x.reshape(M, D)
    tm, Mp = _tile_and_pad(M, 256, 16)
    if Mp != M:
        x2 = jnp.pad(x2, ((0, Mp - M), (0, 0)))
    tff = _pick_divisor_tile(dff, 512, 128)
    out = pl.pallas_call(
        _ffn_res_ln_kernel,
        out_shape=jax.ShapeDtypeStruct((Mp, D), jnp.bfloat16),
        grid=(Mp // tm, dff // tff),
        in_specs=[
            pl.BlockSpec((tm, D), lambda i, j: (i, 0)),     # resident per M-tile
            pl.BlockSpec((D, tff), lambda i, j: (0, j)),
            pl.BlockSpec((1, tff), lambda i, j: (0, j)),
            pl.BlockSpec((tff, D), lambda i, j: (j, 0)),
            pl.BlockSpec((1, D), lambda i, j: (0, 0)),
            pl.BlockSpec((1, D), lambda i, j: (0, 0)),
            pl.BlockSpec((1, D), lambda i, j: (0, 0)),
        ],
        out_specs=pl.BlockSpec((tm, D), lambda i, j: (i, 0)),
        scratch_shapes=[pltpu.VMEM((tm, D), jnp.float32)],
        compiler_params=_cparams("parallel", "arbitrary"),
    )(x2, w1, b1.reshape(1, dff), w2, b2.reshape(1, D),
      gamma.reshape(1, D), beta.reshape(1, D))
    return out[:M].reshape(B, S, D)


# ----------------------------------------------------------------------------
# Flash attention: grid (B, H, Sq-tiles, Sk-tiles), head-major (B,H,S,dh_pad)
# tensors (dh zero-padded to a 128-lane multiple), optional fully-resident
# unmasked prefix segment (the pack tokens) folded in at the first KV step.
# 1/sqrt(dh) is pre-folded into the Q projection weights.
# ----------------------------------------------------------------------------

def _make_flash_kernel(with_prefix):
    def kernel(*refs):
        if with_prefix:
            (q_ref, k_ref, v_ref, b_ref, kp_ref, vp_ref,
             o_ref, m_ref, l_ref, acc_ref) = refs
        else:
            (q_ref, k_ref, v_ref, b_ref,
             o_ref, m_ref, l_ref, acc_ref) = refs
            kp_ref = vp_ref = None

        ki = pl.program_id(3)
        q = q_ref[0, 0]                              # (tq, dh_p) bf16, pre-scaled

        def online_update(k, v, bias):
            # contract last dims directly: no (tk, dh) transpose through the XLU
            s = jax.lax.dot_general(q, k, (((1,), (1,)), ((), ())),
                                    preferred_element_type=jnp.float32)
            if bias is not None:
                s = s + bias
            m_prev = m_ref[...]
            m_new = jnp.maximum(m_prev, jnp.max(s, axis=-1, keepdims=True))
            alpha = jnp.exp(m_prev - m_new)
            p = jnp.exp(s - m_new)
            l_ref[...] = alpha * l_ref[...] + jnp.sum(p, axis=-1, keepdims=True)
            acc_ref[...] = alpha * acc_ref[...] + jnp.dot(
                p.astype(v.dtype), v, preferred_element_type=jnp.float32)
            m_ref[...] = m_new

        @pl.when(ki == 0)
        def _init():
            m_ref[...] = jnp.full_like(m_ref, -1e30)
            l_ref[...] = jnp.zeros_like(l_ref)
            acc_ref[...] = jnp.zeros_like(acc_ref)
            if with_prefix:                           # pack tokens: never masked
                online_update(kp_ref[0, 0], vp_ref[0, 0], None)

        online_update(k_ref[0, 0], v_ref[0, 0], b_ref[0])

        @pl.when(ki == pl.num_programs(3) - 1)
        def _fin():
            o_ref[0, 0] = (acc_ref[...] *
                           pl.reciprocal(l_ref[...], approx=True)).astype(o_ref.dtype)
    return kernel


def flash_mha(q, k, v, bias, *, k_prefix=None, v_prefix=None,
              tq_target=256, tk_target=512):
    """q,k,v: (B,H,S,dh_p) bf16 head-major; bias: (B,1,Sk) f32 additive mask for
    the k/v stream; optional unmasked prefix (B,H,Sp,dh_p). -> (B,H,Sq,dh_p)."""
    B, H, Sq, dh_p = q.shape
    Sk = k.shape[2]
    tq, Sq_p = _tile_and_pad(Sq, tq_target, 16)
    tk, Sk_p = _tile_and_pad(Sk, tk_target, 16)
    if Sq_p != Sq:
        q = jnp.pad(q, ((0, 0), (0, 0), (0, Sq_p - Sq), (0, 0)))
    if Sk_p != Sk:
        k = jnp.pad(k, ((0, 0), (0, 0), (0, Sk_p - Sk), (0, 0)))
        v = jnp.pad(v, ((0, 0), (0, 0), (0, Sk_p - Sk), (0, 0)))
        bias = jnp.pad(bias, ((0, 0), (0, 0), (0, Sk_p - Sk)),
                       constant_values=-1e9)

    with_prefix = k_prefix is not None
    args = [q, k, v, bias]
    in_specs = [
        pl.BlockSpec((1, 1, tq, dh_p), lambda b, h, qi, ki: (b, h, qi, 0)),
        pl.BlockSpec((1, 1, tk, dh_p), lambda b, h, qi, ki: (b, h, ki, 0)),
        pl.BlockSpec((1, 1, tk, dh_p), lambda b, h, qi, ki: (b, h, ki, 0)),
        pl.BlockSpec((1, 1, tk), lambda b, h, qi, ki: (b, 0, ki)),
    ]
    if with_prefix:
        Sp = k_prefix.shape[2]
        args += [k_prefix, v_prefix]
        in_specs += [
            pl.BlockSpec((1, 1, Sp, dh_p), lambda b, h, qi, ki: (b, h, 0, 0)),
            pl.BlockSpec((1, 1, Sp, dh_p), lambda b, h, qi, ki: (b, h, 0, 0)),
        ]

    out = pl.pallas_call(
        _make_flash_kernel(with_prefix),
        out_shape=jax.ShapeDtypeStruct((B, H, Sq_p, dh_p), jnp.bfloat16),
        grid=(B, H, Sq_p // tq, Sk_p // tk),
        in_specs=in_specs,
        out_specs=pl.BlockSpec((1, 1, tq, dh_p), lambda b, h, qi, ki: (b, h, qi, 0)),
        scratch_shapes=[
            pltpu.VMEM((tq, 1), jnp.float32),    # running max m
            pltpu.VMEM((tq, 1), jnp.float32),    # running denom l
            pltpu.VMEM((tq, dh_p), jnp.float32),  # output accumulator
        ],
        compiler_params=_cparams("parallel", "parallel", "parallel", "arbitrary"),
    )(*args)
    return out[:, :, :Sq, :]


def _split_heads(x, num_heads, dh, dh_p):
    """(B,S,H*dh) -> (B,H,S,dh_p) with zero lane padding (XLA layout glue)."""
    B, S, _ = x.shape
    x = x.reshape(B, S, num_heads, dh)
    if dh_p != dh:
        x = jnp.pad(x, ((0, 0), (0, 0), (0, 0), (0, dh_p - dh)))
    return jnp.transpose(x, (0, 2, 1, 3))


def _merge_heads(x, dh):
    """(B,H,S,dh_p) -> (B,S,H*dh), dropping the lane padding."""
    B, H, S, _ = x.shape
    x = jnp.transpose(x[..., :dh], (0, 2, 1, 3))
    return x.reshape(B, S, H * dh)


# ----------------------------------------------------------------------------
# Parameter construction (deterministic, synthetic)
# ----------------------------------------------------------------------------

def init_params(key, seq_len, pack_len, vocab_size, d_model, num_layers,
                num_heads, d_ff):
    std = d_model ** (-0.5)
    dh = d_model // num_heads
    scale = dh ** (-0.5)                 # folded into the Q projection weights
    keys = jax.random.split(key, 2 + num_layers)

    def nrm(k, shape, s=std):
        return (jax.random.normal(k, shape, jnp.float32) * s).astype(jnp.bfloat16)

    params = {
        "embedding": jax.random.normal(keys[0], (vocab_size, d_model), jnp.float32),
        "projected_embeddings": nrm(keys[1], (pack_len, d_model)),
        # present in __init__ but unused by the reference forward (kept for parity)
        "input_norm_gamma": jnp.ones((d_model,), jnp.float32),
        "input_norm_beta": jnp.zeros((d_model,), jnp.float32),
        "layers": [],
    }

    for l in range(num_layers):
        lk = jax.random.split(keys[2 + l], 8)
        zd = jnp.zeros((d_model,), jnp.float32)
        # pack attention: Q(P) (scale-folded) and fused KV(X)
        pack_q_w = (jax.random.normal(lk[0], (d_model, d_model), jnp.float32)
                    * std * scale).astype(jnp.bfloat16)
        # main attention: fused QKV over X, Q columns pre-scaled
        qkv_w = jax.random.normal(lk[3], (d_model, 3 * d_model), jnp.float32) * std
        qkv_w = qkv_w.at[:, :d_model].multiply(scale)
        layer = {
            "pack_q_w": pack_q_w, "pack_q_b": zd,
            "pack_kv_w": nrm(lk[1], (d_model, 2 * d_model)),
            "pack_kv_b": jnp.zeros((2 * d_model,), jnp.float32),
            "pack_o_w": nrm(lk[2], (d_model, d_model)), "pack_o_b": zd,
            "ln_p_g": jnp.ones((d_model,), jnp.float32), "ln_p_b": zd,
            "qkv_w": qkv_w.astype(jnp.bfloat16),
            "qkv_b": jnp.zeros((3 * d_model,), jnp.float32),
            "o_w": nrm(lk[5], (d_model, d_model)), "o_b": zd,
            "ln_x_g": jnp.ones((d_model,), jnp.float32), "ln_x_b": zd,
            "ffn_w1": nrm(lk[6], (d_model, d_ff)),
            "ffn_b1": jnp.zeros((d_ff,), jnp.float32),
            "ffn_w2": nrm(lk[7], (d_ff, d_model)), "ffn_b2": zd,
            "ln_f_g": jnp.ones((d_model,), jnp.float32), "ln_f_b": zd,
        }
        params["layers"].append(layer)
    return params


# ----------------------------------------------------------------------------
# Model forward
# ----------------------------------------------------------------------------

def little_bird_layer(p, P, X, bias_x, num_heads, dh, dh_p):
    D = X.shape[-1]

    # --- pack attention: P queries over X keys/values (X padding masked) ---
    pq = linear(P, p["pack_q_w"], p["pack_q_b"])           # (B, Sp, D), pre-scaled
    xkv = linear(X, p["pack_kv_w"], p["pack_kv_b"])        # (B, S, 2D) fused KV
    a = flash_mha(_split_heads(pq, num_heads, dh, dh_p),
                  _split_heads(xkv[..., :D], num_heads, dh, dh_p),
                  _split_heads(xkv[..., D:], num_heads, dh, dh_p),
                  bias_x)
    P = oproj_residual_ln(_merge_heads(a, dh), p["pack_o_w"], p["pack_o_b"], P,
                          p["ln_p_g"], p["ln_p_b"])

    # --- main attention: X queries over [P ; X] (no HBM concat: P KV is a
    #     resident prefix segment inside the flash kernel) ---
    xqkv = linear(X, p["qkv_w"], p["qkv_b"])               # (B, S, 3D) fused QKV
    pkv = linear(P, p["qkv_w"][:, D:], p["qkv_b"][D:])     # (B, Sp, 2D) shared KV proj
    a2 = flash_mha(_split_heads(xqkv[..., :D], num_heads, dh, dh_p),
                   _split_heads(xqkv[..., D:2 * D], num_heads, dh, dh_p),
                   _split_heads(xqkv[..., 2 * D:], num_heads, dh, dh_p),
                   bias_x,
                   k_prefix=_split_heads(pkv[..., :D], num_heads, dh, dh_p),
                   v_prefix=_split_heads(pkv[..., D:], num_heads, dh, dh_p))
    X = oproj_residual_ln(_merge_heads(a2, dh), p["o_w"], p["o_b"], X,
                          p["ln_x_g"], p["ln_x_b"])

    # --- feed-forward (fused: GELU MLP + residual + LayerNorm, d_ff tiled) ---
    X = ffn_residual_ln(X, p["ffn_w1"], p["ffn_b1"], p["ffn_w2"], p["ffn_b2"],
                        p["ln_f_g"], p["ln_f_b"])
    return P, X


def little_bird_forward(params, inputs, attention_mask, num_heads):
    B, S = inputs.shape
    D = params["embedding"].shape[1]
    dh = D // num_heads
    dh_p = _round_up(dh, 128)            # lane-pad head dim (review: dh -> 128 lanes)

    # TODO(synk): embedding lookup (gather) stays in plain JAX glue.
    X = jnp.take(params["embedding"], inputs, axis=0).astype(jnp.bfloat16)
    pe = params["projected_embeddings"]
    Sp = pe.shape[0]
    P = jnp.broadcast_to(pe[None, :, :], (B, Sp, D))
    # self.dropout: eval-mode identity

    # Additive mask bias for the X key/value stream (f32), built once.
    maskf = attention_mask.astype(jnp.float32)             # (B, S)
    bias_x = ((1.0 - maskf) * -1e9)[:, None, :]             # (B, 1, S)

    for lp in params["layers"]:
        P, X = little_bird_layer(lp, P, X, bias_x, num_heads, dh, dh_p)
    return X.astype(jnp.float32)


# ----------------------------------------------------------------------------

if __name__ == "__main__":
    SEQ_LEN, PACK_LEN, VOCAB_SIZE, D_MODEL = 16, 8, 32, 32
    NUM_LAYERS, NUM_HEADS, D_FF = 2, 4, 64
    BATCH = 2

    key = jax.random.PRNGKey(0)
    k_in, k_mask = jax.random.split(key, 2)
    inputs = jax.random.randint(k_in, (BATCH, SEQ_LEN), 0, VOCAB_SIZE)
    attention_mask = (jax.random.uniform(k_mask, (BATCH, SEQ_LEN)) > 0.2).astype(jnp.int32)
    attention_mask = attention_mask.at[:, 0].set(1)   # at least one visible token

    params = init_params(jax.random.PRNGKey(42), SEQ_LEN, PACK_LEN, VOCAB_SIZE,
                         D_MODEL, NUM_LAYERS, NUM_HEADS, D_FF)

    fwd = jax.jit(little_bird_forward, static_argnums=3)
    out = jax.block_until_ready(fwd(params, inputs, attention_mask, NUM_HEADS))

    assert out.shape == (BATCH, SEQ_LEN, D_MODEL), out.shape
    assert bool(jnp.all(jnp.isfinite(out)))
    print("KERNEL_OK")
</pallas_src>

<mosaic_0001>
module attributes {stable_mosaic.version = 11 : i64} {
  func.func @_matmul_bias_kernel(%arg0: i32, %arg1: i32, %arg2: i32, %arg3: memref<32x32xbf16, #tpu.memory_space<vmem>>, %arg4: memref<32x64xbf16, #tpu.memory_space<vmem>>, %arg5: memref<1x64xf32, #tpu.memory_space<vmem>>, %arg6: memref<32x64xbf16, #tpu.memory_space<vmem>>, %arg7: memref<32x64xf32, #tpu.memory_space<vmem>>) attributes {dimension_semantics = [#tpu.dimension_semantics<parallel>, #tpu.dimension_semantics<parallel>, #tpu.dimension_semantics<arbitrary>], iteration_bounds = array<i64: 1, 1, 1>, scalar_prefetch = 0 : i64, scratch_operands = 1 : i64, tpu.core_type = #tpu.core_type<tc>, window_params = [{transform_indices = @transform_0, window_bounds = array<i64: 32, 32>}, {transform_indices = @transform_1, window_bounds = array<i64: 32, 64>}, {transform_indices = @transform_2, window_bounds = array<i64: 1, 64>}, {transform_indices = @transform_3, window_bounds = array<i64: 32, 64>}]} {
    %c0_i32 = arith.constant 0 : i32
    %0 = arith.cmpi eq, %arg2, %c0_i32 : i32
    %1 = arith.extui %0 : i1 to i32
    %c0_i32_0 = arith.constant 0 : i32
    %2 = arith.cmpi ne, %1, %c0_i32_0 : i32
    scf.if %2 {
      %cst_10 = arith.constant 0.000000e+00 : f32
      %12 = vector.broadcast %cst_10 : f32 to vector<32x64xf32>
      %c0_11 = arith.constant 0 : index
      %c0_12 = arith.constant 0 : index
      %13 = vector.load %arg7[%c0_11, %c0_12] : memref<32x64xf32, #tpu.memory_space<vmem>>, vector<32x64xf32>
      tpu.vector_store %arg7[%c0_11, %c0_12], %12 {strides = array<i32>} : memref<32x64xf32, #tpu.memory_space<vmem>>, vector<32x64xf32>,
    } else {
    }
    %c0 = arith.constant 0 : index
    %c0_1 = arith.constant 0 : index
    %3 = vector.load %arg7[%c0, %c0_1] : memref<32x64xf32, #tpu.memory_space<vmem>>, vector<32x64xf32>
    %c0_2 = arith.constant 0 : index
    %c0_3 = arith.constant 0 : index
    %4 = vector.load %arg3[%c0_2, %c0_3] : memref<32x32xbf16, #tpu.memory_space<vmem>>, vector<32x32xbf16>
    %c0_4 = arith.constant 0 : index
    %c0_5 = arith.constant 0 : index
    %5 = vector.load %arg4[%c0_4, %c0_5] : memref<32x64xbf16, #tpu.memory_space<vmem>>, vector<32x64xbf16>
    %cst = arith.constant dense<0.000000e+00> : vector<32x64xf32>
    %6 = tpu.matmul %4, %5, %cst {dimension_numbers = #tpu.dot_dimension_numbers<[1], [0], [0], [1], [0, 0, 1, 1], [], []>} : vector<32x32xbf16>, vector<32x64xbf16>, vector<32x64xf32> -> vector<32x64xf32>
    %7 = arith.addf %3, %6 : vector<32x64xf32>
    %c0_6 = arith.constant 0 : index
    %c0_7 = arith.constant 0 : index
    %8 = vector.load %arg7[%c0_6, %c0_7] : memref<32x64xf32, #tpu.memory_space<vmem>>, vector<32x64xf32>
    tpu.vector_store %arg7[%c0_6, %c0_7], %7 {strides = array<i32>} : memref<32x64xf32, #tpu.memory_space<vmem>>, vector<32x64xf32>,
    %c0_i32_8 = arith.constant 0 : i32
    %9 = arith.cmpi eq, %arg2, %c0_i32_8 : i32
    %10 = arith.extui %9 : i1 to i32
    %c0_i32_9 = arith.constant 0 : i32
    %11 = arith.cmpi ne, %10, %c0_i32_9 : i32
    scf.if %11 {
      %c0_10 = arith.constant 0 : index
      %c0_11 = arith.constant 0 : index
      %12 = vector.load %arg7[%c0_10, %c0_11] : memref<32x64xf32, #tpu.memory_space<vmem>>, vector<32x64xf32>
      %c0_12 = arith.constant 0 : index
      %c0_13 = arith.constant 0 : index
      %13 = vector.load %arg5[%c0_12, %c0_13] : memref<1x64xf32, #tpu.memory_space<vmem>>, vector<1x64xf32>
      %14 = vector.broadcast %13 : vector<1x64xf32> to vector<32x64xf32>
      %15 = arith.addf %12, %14 : vector<32x64xf32>
      %16 = arith.truncf %15 : vector<32x64xf32> to vector<32x64xbf16>
      %c0_14 = arith.constant 0 : index
      %c0_15 = arith.constant 0 : index
      %17 = vector.load %arg6[%c0_14, %c0_15] : memref<32x64xbf16, #tpu.memory_space<vmem>>, vector<32x64xbf16>
      tpu.vector_store %arg6[%c0_14, %c0_15], %16 {strides = array<i32>} : memref<32x64xbf16, #tpu.memory_space<vmem>>, vector<32x64xbf16>,
    } else {
    }
    return
  }
  func.func @transform_0(%arg0: i32, %arg1: i32, %arg2: i32) -> (i32, i32) {
    %c0_i32 = arith.constant 0 : i32
    return %arg0, %arg2 : i32, i32
  }
  func.func @transform_1(%arg0: i32, %arg1: i32, %arg2: i32) -> (i32, i32) {
    %c0_i32 = arith.constant 0 : i32
    return %arg2, %arg1 : i32, i32
  }
  func.func @transform_2(%arg0: i32, %arg1: i32, %arg2: i32) -> (i32, i32) {
    %c0_i32 = arith.constant 0 : i32
    %c0_i32_0 = arith.constant 0 : i32
    return %c0_i32, %arg1 : i32, i32
  }
  func.func @transform_3(%arg0: i32, %arg1: i32, %arg2: i32) -> (i32, i32) {
    %c0_i32 = arith.constant 0 : i32
    return %arg0, %arg1 : i32, i32
  }
}

module attributes {stable_mosaic.version = 11 : i64} {
  func.func @_matmul_bias_kernel(%arg0: i32, %arg1: i32, %arg2: i32, %arg3: memref<16x32xbf16, #tpu.memory_space<vmem>>, %arg4: memref<32x32xbf16, #tpu.memory_space<vmem>>, %arg5: memref<1x32xf32, #tpu.memory_space<vmem>>, %arg6: memref<16x32xbf16, #tpu.memory_space<vmem>>, %arg7: memref<16x32xf32, #tpu.memory_space<vmem>>) attributes {dimension_semantics = [#tpu.dimension_semantics<parallel>, #tpu.dimension_semantics<parallel>, #tpu.dimension_semantics<arbitrary>], iteration_bounds = array<i64: 1, 1, 1>, scalar_prefetch = 0 : i64, scratch_operands = 1 : i64, tpu.core_type = #tpu.core_type<tc>, window_params = [{transform_indices = @transform_0, window_bounds = array<i64: 16, 32>}, {transform_indices = @transform_1, window_bounds = array<i64: 32, 32>}, {transform_indices = @transform_2, window_bounds = array<i64: 1, 32>}, {transform_indices = @transform_3, window_bounds = array<i64: 16, 32>}]} {
    %c0_i32 = arith.constant 0 : i32
    %0 = arith.cmpi eq, %arg2, %c0_i32 : i32
    %1 = arith.extui %0 : i1 to i32
    %c0_i32_0 = arith.constant 0 : i32
    %2 = arith.cmpi ne, %1, %c0_i32_0 : i32
    scf.if %2 {
      %cst_10 = arith.constant 0.000000e+00 : f32
      %12 = vector.broadcast %cst_10 : f32 to vector<16x32xf32>
      %c0_11 = arith.constant 0 : index
      %c0_12 = arith.constant 0 : index
      %13 = vector.load %arg7[%c0_11, %c0_12] : memref<16x32xf32, #tpu.memory_space<vmem>>, vector<16x32xf32>
      tpu.vector_store %arg7[%c0_11, %c0_12], %12 {strides = array<i32>} : memref<16x32xf32, #tpu.memory_space<vmem>>, vector<16x32xf32>,
    } else {
    }
    %c0 = arith.constant 0 : index
    %c0_1 = arith.constant 0 : index
    %3 = vector.load %arg7[%c0, %c0_1] : memref<16x32xf32, #tpu.memory_space<vmem>>, vector<16x32xf32>
    %c0_2 = arith.constant 0 : index
    %c0_3 = arith.constant 0 : index
    %4 = vector.load %arg3[%c0_2, %c0_3] : memref<16x32xbf16, #tpu.memory_space<vmem>>, vector<16x32xbf16>
    %c0_4 = arith.constant 0 : index
    %c0_5 = arith.constant 0 : index
    %5 = vector.load %arg4[%c0_4, %c0_5] : memref<32x32xbf16, #tpu.memory_space<vmem>>, vector<32x32xbf16>
    %cst = arith.constant dense<0.000000e+00> : vector<16x32xf32>
    %6 = tpu.matmul %4, %5, %cst {dimension_numbers = #tpu.dot_dimension_numbers<[1], [0], [0], [1], [0, 0, 1, 1], [], []>} : vector<16x32xbf16>, vector<32x32xbf16>, vector<16x32xf32> -> vector<16x32xf32>
    %7 = arith.addf %3, %6 : vector<16x32xf32>
    %c0_6 = arith.constant 0 : index
    %c0_7 = arith.constant 0 : index
    %8 = vector.load %arg7[%c0_6, %c0_7] : memref<16x32xf32, #tpu.memory_space<vmem>>, vector<16x32xf32>
    tpu.vector_store %arg7[%c0_6, %c0_7], %7 {strides = array<i32>} : memref<16x32xf32, #tpu.memory_space<vmem>>, vector<16x32xf32>,
    %c0_i32_8 = arith.constant 0 : i32
    %9 = arith.cmpi eq, %arg2, %c0_i32_8 : i32
    %10 = arith.extui %9 : i1 to i32
    %c0_i32_9 = arith.constant 0 : i32
    %11 = arith.cmpi ne, %10, %c0_i32_9 : i32
    scf.if %11 {
      %c0_10 = arith.constant 0 : index
      %c0_11 = arith.constant 0 : index
      %12 = vector.load %arg7[%c0_10, %c0_11] : memref<16x32xf32, #tpu.memory_space<vmem>>, vector<16x32xf32>
      %c0_12 = arith.constant 0 : index
      %c0_13 = arith.constant 0 : index
      %13 = vector.load %arg5[%c0_12, %c0_13] : memref<1x32xf32, #tpu.memory_space<vmem>>, vector<1x32xf32>
      %14 = vector.broadcast %13 : vector<1x32xf32> to vector<16x32xf32>
      %15 = arith.addf %12, %14 : vector<16x32xf32>
      %16 = arith.truncf %15 : vector<16x32xf32> to vector<16x32xbf16>
      %c0_14 = arith.constant 0 : index
      %c0_15 = arith.constant 0 : index
      %17 = vector.load %arg6[%c0_14, %c0_15] : memref<16x32xbf16, #tpu.memory_space<vmem>>, vector<16x32xbf16>
      tpu.vector_store %arg6[%c0_14, %c0_15], %16 {strides = array<i32>} : memref<16x32xbf16, #tpu.memory_space<vmem>>, vector<16x32xbf16>,
    } else {
    }
    return
  }
  func.func @transform_0(%arg0: i32, %arg1: i32, %arg2: i32) -> (i32, i32) {
    %c0_i32 = arith.constant 0 : i32
    return %arg0, %arg2 : i32, i32
  }
  func.func @transform_1(%arg0: i32, %arg1: i32, %arg2: i32) -> (i32, i32) {
    %c0_i32 = arith.constant 0 : i32
    return %arg2, %arg1 : i32, i32
  }
  func.func @transform_2(%arg0: i32, %arg1: i32, %arg2: i32) -> (i32, i32) {
    %c0_i32 = arith.constant 0 : i32
    %c0_i32_0 = arith.constant 0 : i32
    return %c0_i32, %arg1 : i32, i32
  }
  func.func @transform_3(%arg0: i32, %arg1: i32, %arg2: i32) -> (i32, i32) {
    %c0_i32 = arith.constant 0 : i32
    return %arg0, %arg1 : i32, i32
  }
}

module attributes {stable_mosaic.version = 11 : i64} {
  func.func @kernel(%arg0: i32, %arg1: i32, %arg2: i32, %arg3: i32, %arg4: memref<1x1x16x128xbf16, #tpu.memory_space<vmem>>, %arg5: memref<1x1x16x128xbf16, #tpu.memory_space<vmem>>, %arg6: memref<1x1x16x128xbf16, #tpu.memory_space<vmem>>, %arg7: memref<1x1x16xf32, #tpu.memory_space<vmem>>, %arg8: memref<1x1x16x128xbf16, #tpu.memory_space<vmem>>, %arg9: memref<16x1xf32, #tpu.memory_space<vmem>>, %arg10: memref<16x1xf32, #tpu.memory_space<vmem>>, %arg11: memref<16x128xf32, #tpu.memory_space<vmem>>) attributes {dimension_semantics = [#tpu.dimension_semantics<parallel>, #tpu.dimension_semantics<parallel>, #tpu.dimension_semantics<parallel>, #tpu.dimension_semantics<arbitrary>], iteration_bounds = array<i64: 2, 4, 1, 1>, scalar_prefetch = 0 : i64, scratch_operands = 3 : i64, tpu.core_type = #tpu.core_type<tc>, window_params = [{transform_indices = @transform_0, window_bounds = array<i64: 1, 1, 16, 128>}, {transform_indices = @transform_1, window_bounds = array<i64: 1, 1, 16, 128>}, {transform_indices = @transform_2, window_bounds = array<i64: 1, 1, 16, 128>}, {transform_indices = @transform_3, window_bounds = array<i64: 1, 1, 16>}, {transform_indices = @transform_4, window_bounds = array<i64: 1, 1, 16, 128>}]} {
    %c0 = arith.constant 0 : index
    %c0_0 = arith.constant 0 : index
    %c0_1 = arith.constant 0 : index
    %c0_2 = arith.constant 0 : index
    %0 = vector.load %arg4[%c0, %c0_0, %c0_1, %c0_2] : memref<1x1x16x128xbf16, #tpu.memory_space<vmem>>, vector<1x1x16x128xbf16>
    %1 = vector.shape_cast %0 : vector<1x1x16x128xbf16> to vector<16x128xbf16>
    %c0_i32 = arith.constant 0 : i32
    %2 = arith.cmpi eq, %arg3, %c0_i32 : i32
    %3 = arith.extui %2 : i1 to i32
    %c0_i32_3 = arith.constant 0 : i32
    %4 = arith.cmpi ne, %3, %c0_i32_3 : i32
    scf.if %4 {
      %cst_32 = arith.constant -1.000000e+30 : f32
      %40 = vector.broadcast %cst_32 : f32 to vector<16x1xf32>
      %c0_33 = arith.constant 0 : index
      %c0_34 = arith.constant 0 : index
      %41 = vector.load %arg9[%c0_33, %c0_34] : memref<16x1xf32, #tpu.memory_space<vmem>>, vector<16x1xf32>
      tpu.vector_store %arg9[%c0_33, %c0_34], %40 {strides = array<i32>} : memref<16x1xf32, #tpu.memory_space<vmem>>, vector<16x1xf32>,
      %cst_35 = arith.constant 0.000000e+00 : f32
      %42 = vector.broadcast %cst_35 : f32 to vector<16x1xf32>
      %c0_36 = arith.constant 0 : index
      %c0_37 = arith.constant 0 : index
      %43 = vector.load %arg10[%c0_36, %c0_37] : memref<16x1xf32, #tpu.memory_space<vmem>>, vector<16x1xf32>
      tpu.vector_store %arg10[%c0_36, %c0_37], %42 {strides = array<i32>} : memref<16x1xf32, #tpu.memory_space<vmem>>, vector<16x1xf32>,
      %cst_38 = arith.constant 0.000000e+00 : f32
      %44 = vector.broadcast %cst_38 : f32 to vector<16x128xf32>
      %c0_39 = arith.constant 0 : index
      %c0_40 = arith.constant 0 : index
      %45 = vector.load %arg11[%c0_39, %c0_40] : memref<16x128xf32, #tpu.memory_space<vmem>>, vector<16x128xf32>
      tpu.vector_store %arg11[%c0_39, %c0_40], %44 {strides = array<i32>} : memref<16x128xf32, #tpu.memory_space<vmem>>, vector<16x128xf32>,
    } else {
    }
    %c0_4 = arith.constant 0 : index
    %c0_5 = arith.constant 0 : index
    %c0_6 = arith.constant 0 : index
    %c0_7 = arith.constant 0 : index
    %5 = vector.load %arg5[%c0_4, %c0_5, %c0_6, %c0_7] : memref<1x1x16x128xbf16, #tpu.memory_space<vmem>>, vector<1x1x16x128xbf16>
    %6 = vector.shape_cast %5 : vector<1x1x16x128xbf16> to vector<16x128xbf16>
    %c0_8 = arith.constant 0 : index
    %c0_9 = arith.constant 0 : index
    %c0_10 = arith.constant 0 : index
    %c0_11 = arith.constant 0 : index
    %7 = vector.load %arg6[%c0_8, %c0_9, %c0_10, %c0_11] : memref<1x1x16x128xbf16, #tpu.memory_space<vmem>>, vector<1x1x16x128xbf16>
    %8 = vector.shape_cast %7 : vector<1x1x16x128xbf16> to vector<16x128xbf16>
    %c0_12 = arith.constant 0 : index
    %c0_13 = arith.constant 0 : index
    %c0_14 = arith.constant 0 : index
    %9 = vector.load %arg7[%c0_12, %c0_13, %c0_14] : memref<1x1x16xf32, #tpu.memory_space<vmem>>, vector<1x1x16xf32>
    %10 = vector.shape_cast %9 : vector<1x1x16xf32> to vector<1x16xf32>
    %cst = arith.constant dense<0.000000e+00> : vector<16x16xf32>
    %11 = tpu.matmul %1, %6, %cst {dimension_numbers = #tpu.dot_dimension_numbers<[1], [1], [0], [0], [0, 0, 1, 0], [], []>} : vector<16x128xbf16>, vector<16x128xbf16>, vector<16x16xf32> -> vector<16x16xf32>
    %12 = vector.broadcast %10 : vector<1x16xf32> to vector<16x16xf32>
    %13 = arith.addf %11, %12 : vector<16x16xf32>
    %c0_15 = arith.constant 0 : index
    %c0_16 = arith.constant 0 : index
    %14 = vector.load %arg9[%c0_15, %c0_16] : memref<16x1xf32, #tpu.memory_space<vmem>>, vector<16x1xf32>
    %cst_17 = arith.constant dense<0xFF800000> : vector<16xf32>
    %15 = vector.multi_reduction <maximumf>, %13, %cst_17 [1] : vector<16x16xf32> to vector<16xf32>
    %16 = vector.shape_cast %15 : vector<16xf32> to vector<16x1xf32>
    %17 = arith.maximumf %14, %16 : vector<16x1xf32>
    %18 = arith.subf %14, %17 : vector<16x1xf32>
    %19 = math.exp %18 : vector<16x1xf32>
    %20 = vector.broadcast %17 : vector<16x1xf32> to vector<16x16xf32>
    %21 = arith.subf %13, %20 : vector<16x16xf32>
    %22 = math.exp %21 : vector<16x16xf32>
    %c0_18 = arith.constant 0 : index
    %c0_19 = arith.constant 0 : index
    %23 = vector.load %arg10[%c0_18, %c0_19] : memref<16x1xf32, #tpu.memory_space<vmem>>, vector<16x1xf32>
    %24 = arith.mulf %19, %23 : vector<16x1xf32>
    %cst_20 = arith.constant dense<0.000000e+00> : vector<16xf32>
    %25 = vector.multi_reduction <add>, %22, %cst_20 [1] : vector<16x16xf32> to vector<16xf32>
    %26 = vector.shape_cast %25 : vector<16xf32> to vector<16x1xf32>
    %27 = arith.addf %24, %26 : vector<16x1xf32>
    %c0_21 = arith.constant 0 : index
    %c0_22 = arith.constant 0 : index
    %28 = vector.load %arg10[%c0_21, %c0_22] : memref<16x1xf32, #tpu.memory_space<vmem>>, vector<16x1xf32>
    tpu.vector_store %arg10[%c0_21, %c0_22], %27 {strides = array<i32>} : memref<16x1xf32, #tpu.memory_space<vmem>>, vector<16x1xf32>,
    %c0_23 = arith.constant 0 : index
    %c0_24 = arith.constant 0 : index
    %29 = vector.load %arg11[%c0_23, %c0_24] : memref<16x128xf32, #tpu.memory_space<vmem>>, vector<16x128xf32>
    %30 = vector.broadcast %19 : vector<16x1xf32> to vector<16x128xf32>
    %31 = arith.mulf %30, %29 : vector<16x128xf32>
    %32 = arith.truncf %22 : vector<16x16xf32> to vector<16x16xbf16>
    %cst_25 = arith.constant dense<0.000000e+00> : vector<16x128xf32>
    %33 = tpu.matmul %32, %8, %cst_25 {dimension_numbers = #tpu.dot_dimension_numbers<[1], [0], [0], [1], [0, 0, 1, 1], [], []>} : vector<16x16xbf16>, vector<16x128xbf16>, vector<16x128xf32> -> vector<16x128xf32>
    %34 = arith.addf %31, %33 : vector<16x128xf32>
    %c0_26 = arith.constant 0 : index
    %c0_27 = arith.constant 0 : index
    %35 = vector.load %arg11[%c0_26, %c0_27] : memref<16x128xf32, #tpu.memory_space<vmem>>, vector<16x128xf32>
    tpu.vector_store %arg11[%c0_26, %c0_27], %34 {strides = array<i32>} : memref<16x128xf32, #tpu.memory_space<vmem>>, vector<16x128xf32>,
    %c0_28 = arith.constant 0 : index
    %c0_29 = arith.constant 0 : index
    %36 = vector.load %arg9[%c0_28, %c0_29] : memref<16x1xf32, #tpu.memory_space<vmem>>, vector<16x1xf32>
    tpu.vector_store %arg9[%c0_28, %c0_29], %17 {strides = array<i32>} : memref<16x1xf32, #tpu.memory_space<vmem>>, vector<16x1xf32>,
    %c0_i32_30 = arith.constant 0 : i32
    %37 = arith.cmpi eq, %arg3, %c0_i32_30 : i32
    %38 = arith.extui %37 : i1 to i32
    %c0_i32_31 = arith.constant 0 : i32
    %39 = arith.cmpi ne, %38, %c0_i32_31 : i32
    scf.if %39 {
      %c0_32 = arith.constant 0 : index
      %c0_33 = arith.constant 0 : index
      %40 = vector.load %arg11[%c0_32, %c0_33] : memref<16x128xf32, #tpu.memory_space<vmem>>, vector<16x128xf32>
      %c0_34 = arith.constant 0 : index
      %c0_35 = arith.constant 0 : index
      %41 = vector.load %arg10[%c0_34, %c0_35] : memref<16x1xf32, #tpu.memory_space<vmem>>, vector<16x1xf32>
      %42 = tpu.reciprocal %41 {approx = true} : vector<16x1xf32> -> vector<16x1xf32>
      %43 = vector.broadcast %42 : vector<16x1xf32> to vector<16x128xf32>
      %44 = arith.mulf %40, %43 : vector<16x128xf32>
      %45 = arith.truncf %44 : vector<16x128xf32> to vector<16x128xbf16>
      %c0_36 = arith.constant 0 : index
      %c0_37 = arith.constant 0 : index
      %c0_38 = arith.constant 0 : index
      %c0_39 = arith.constant 0 : index
      %46 = vector.load %arg8[%c0_36, %c0_37, %c0_38, %c0_39] : memref<1x1x16x128xbf16, #tpu.memory_space<vmem>>, vector<1x1x16x128xbf16>
      %47 = vector.shape_cast %46 : vector<1x1x16x128xbf16> to vector<16x128xbf16>
      %48 = vector.shape_cast %45 : vector<16x128xbf16> to vector<1x1x16x128xbf16>
      tpu.vector_store %arg8[%c0_36, %c0_37, %c0_38, %c0_39], %48 {strides = array<i32>} : memref<1x1x16x128xbf16, #tpu.memory_space<vmem>>, vector<1x1x16x128xbf16>,
    } else {
    }
    return
  }
  func.func @transform_0(%arg0: i32, %arg1: i32, %arg2: i32, %arg3: i32) -> (i32, i32, i32, i32) {
    %c0_i32 = arith.constant 0 : i32
    %c0_i32_0 = arith.constant 0 : i32
    return %arg0, %arg1, %arg2, %c0_i32 : i32, i32, i32, i32
  }
  func.func @transform_1(%arg0: i32, %arg1: i32, %arg2: i32, %arg3: i32) -> (i32, i32, i32, i32) {
    %c0_i32 = arith.constant 0 : i32
    %c0_i32_0 = arith.constant 0 : i32
    return %arg0, %arg1, %arg3, %c0_i32 : i32, i32, i32, i32
  }
  func.func @transform_2(%arg0: i32, %arg1: i32, %arg2: i32, %arg3: i32) -> (i32, i32, i32, i32) {
    %c0_i32 = arith.constant 0 : i32
    %c0_i32_0 = arith.constant 0 : i32
    return %arg0, %arg1, %arg3, %c0_i32 : i32, i32, i32, i32
  }
  func.func @transform_3(%arg0: i32, %arg1: i32, %arg2: i32, %arg3: i32) -> (i32, i32, i32) {
    %c0_i32 = arith.constant 0 : i32
    %c0_i32_0 = arith.constant 0 : i32
    return %arg0, %c0_i32, %arg3 : i32, i32, i32
  }
  func.func @transform_4(%arg0: i32, %arg1: i32, %arg2: i32, %arg3: i32) -> (i32, i32, i32, i32) {
    %c0_i32 = arith.constant 0 : i32
    %c0_i32_0 = arith.constant 0 : i32
    return %arg0, %arg1, %arg2, %c0_i32 : i32, i32, i32, i32
  }
}

module attributes {stable_mosaic.version = 11 : i64} {
  func.func @_matmul_bias_kernel(%arg0: i32, %arg1: i32, %arg2: i32, %arg3: memref<16x32xbf16, #tpu.memory_space<vmem>>, %arg4: memref<32x64xbf16, #tpu.memory_space<vmem>>, %arg5: memref<1x64xf32, #tpu.memory_space<vmem>>, %arg6: memref<16x64xbf16, #tpu.memory_space<vmem>>, %arg7: memref<16x64xf32, #tpu.memory_space<vmem>>) attributes {dimension_semantics = [#tpu.dimension_semantics<parallel>, #tpu.dimension_semantics<parallel>, #tpu.dimension_semantics<arbitrary>], iteration_bounds = array<i64: 1, 1, 1>, scalar_prefetch = 0 : i64, scratch_operands = 1 : i64, tpu.core_type = #tpu.core_type<tc>, window_params = [{transform_indices = @transform_0, window_bounds = array<i64: 16, 32>}, {transform_indices = @transform_1, window_bounds = array<i64: 32, 64>}, {transform_indices = @transform_2, window_bounds = array<i64: 1, 64>}, {transform_indices = @transform_3, window_bounds = array<i64: 16, 64>}]} {
    %c0_i32 = arith.constant 0 : i32
    %0 = arith.cmpi eq, %arg2, %c0_i32 : i32
    %1 = arith.extui %0 : i1 to i32
    %c0_i32_0 = arith.constant 0 : i32
    %2 = arith.cmpi ne, %1, %c0_i32_0 : i32
    scf.if %2 {
      %cst_10 = arith.constant 0.000000e+00 : f32
      %12 = vector.broadcast %cst_10 : f32 to vector<16x64xf32>
      %c0_11 = arith.constant 0 : index
      %c0_12 = arith.constant 0 : index
      %13 = vector.load %arg7[%c0_11, %c0_12] : memref<16x64xf32, #tpu.memory_space<vmem>>, vector<16x64xf32>
      tpu.vector_store %arg7[%c0_11, %c0_12], %12 {strides = array<i32>} : memref<16x64xf32, #tpu.memory_space<vmem>>, vector<16x64xf32>,
    } else {
    }
    %c0 = arith.constant 0 : index
    %c0_1 = arith.constant 0 : index
    %3 = vector.load %arg7[%c0, %c0_1] : memref<16x64xf32, #tpu.memory_space<vmem>>, vector<16x64xf32>
    %c0_2 = arith.constant 0 : index
    %c0_3 = arith.constant 0 : index
    %4 = vector.load %arg3[%c0_2, %c0_3] : memref<16x32xbf16, #tpu.memory_space<vmem>>, vector<16x32xbf16>
    %c0_4 = arith.constant 0 : index
    %c0_5 = arith.constant 0 : index
    %5 = vector.load %arg4[%c0_4, %c0_5] : memref<32x64xbf16, #tpu.memory_space<vmem>>, vector<32x64xbf16>
    %cst = arith.constant dense<0.000000e+00> : vector<16x64xf32>
    %6 = tpu.matmul %4, %5, %cst {dimension_numbers = #tpu.dot_dimension_numbers<[1], [0], [0], [1], [0, 0, 1, 1], [], []>} : vector<16x32xbf16>, vector<32x64xbf16>, vector<16x64xf32> -> vector<16x64xf32>
    %7 = arith.addf %3, %6 : vector<16x64xf32>
    %c0_6 = arith.constant 0 : index
    %c0_7 = arith.constant 0 : index
    %8 = vector.load %arg7[%c0_6, %c0_7] : memref<16x64xf32, #tpu.memory_space<vmem>>, vector<16x64xf32>
    tpu.vector_store %arg7[%c0_6, %c0_7], %7 {strides = array<i32>} : memref<16x64xf32, #tpu.memory_space<vmem>>, vector<16x64xf32>,
    %c0_i32_8 = arith.constant 0 : i32
    %9 = arith.cmpi eq, %arg2, %c0_i32_8 : i32
    %10 = arith.extui %9 : i1 to i32
    %c0_i32_9 = arith.constant 0 : i32
    %11 = arith.cmpi ne, %10, %c0_i32_9 : i32
    scf.if %11 {
      %c0_10 = arith.constant 0 : index
      %c0_11 = arith.constant 0 : index
      %12 = vector.load %arg7[%c0_10, %c0_11] : memref<16x64xf32, #tpu.memory_space<vmem>>, vector<16x64xf32>
      %c0_12 = arith.constant 0 : index
      %c0_13 = arith.constant 0 : index
      %13 = vector.load %arg5[%c0_12, %c0_13] : memref<1x64xf32, #tpu.memory_space<vmem>>, vector<1x64xf32>
      %14 = vector.broadcast %13 : vector<1x64xf32> to vector<16x64xf32>
      %15 = arith.addf %12, %14 : vector<16x64xf32>
      %16 = arith.truncf %15 : vector<16x64xf32> to vector<16x64xbf16>
      %c0_14 = arith.constant 0 : index
      %c0_15 = arith.constant 0 : index
      %17 = vector.load %arg6[%c0_14, %c0_15] : memref<16x64xbf16, #tpu.memory_space<vmem>>, vector<16x64xbf16>
      tpu.vector_store %arg6[%c0_14, %c0_15], %16 {strides = array<i32>} : memref<16x64xbf16, #tpu.memory_space<vmem>>, vector<16x64xbf16>,
    } else {
    }
    return
  }
  func.func @transform_0(%arg0: i32, %arg1: i32, %arg2: i32) -> (i32, i32) {
    %c0_i32 = arith.constant 0 : i32
    return %arg0, %arg2 : i32, i32
  }
  func.func @transform_1(%arg0: i32, %arg1: i32, %arg2: i32) -> (i32, i32) {
    %c0_i32 = arith.constant 0 : i32
    return %arg2, %arg1 : i32, i32
  }
  func.func @transform_2(%arg0: i32, %arg1: i32, %arg2: i32) -> (i32, i32) {
    %c0_i32 = arith.constant 0 : i32
    %c0_i32_0 = arith.constant 0 : i32
    return %c0_i32, %arg1 : i32, i32
  }
  func.func @transform_3(%arg0: i32, %arg1: i32, %arg2: i32) -> (i32, i32) {
    %c0_i32 = arith.constant 0 : i32
    return %arg0, %arg1 : i32, i32
  }
}

module attributes {stable_mosaic.version = 11 : i64} {
  func.func @_oproj_res_ln_kernel(%arg0: i32, %arg1: i32, %arg2: memref<16x32xbf16, #tpu.memory_space<vmem>>, %arg3: memref<32x32xbf16, #tpu.memory_space<vmem>>, %arg4: memref<1x32xf32, #tpu.memory_space<vmem>>, %arg5: memref<16x32xbf16, #tpu.memory_space<vmem>>, %arg6: memref<1x32xf32, #tpu.memory_space<vmem>>, %arg7: memref<1x32xf32, #tpu.memory_space<vmem>>, %arg8: memref<16x32xbf16, #tpu.memory_space<vmem>>, %arg9: memref<16x32xf32, #tpu.memory_space<vmem>>) attributes {dimension_semantics = [#tpu.dimension_semantics<parallel>, #tpu.dimension_semantics<arbitrary>], iteration_bounds = array<i64: 1, 1>, scalar_prefetch = 0 : i64, scratch_operands = 1 : i64, tpu.core_type = #tpu.core_type<tc>, window_params = [{transform_indices = @transform_0, window_bounds = array<i64: 16, 32>}, {transform_indices = @transform_1, window_bounds = array<i64: 32, 32>}, {pipeline_mode = #tpu.pipeline_mode<synchronous>, transform_indices = @transform_2, window_bounds = array<i64: 1, 32>}, {transform_indices = @transform_3, window_bounds = array<i64: 16, 32>}, {pipeline_mode = #tpu.pipeline_mode<synchronous>, transform_indices = @transform_4, window_bounds = array<i64: 1, 32>}, {pipeline_mode = #tpu.pipeline_mode<synchronous>, transform_indices = @transform_5, window_bounds = array<i64: 1, 32>}, {transform_indices = @transform_6, window_bounds = array<i64: 16, 32>}]} {
    %c0_i32 = arith.constant 0 : i32
    %0 = arith.cmpi eq, %arg1, %c0_i32 : i32
    %1 = arith.extui %0 : i1 to i32
    %c0_i32_0 = arith.constant 0 : i32
    %2 = arith.cmpi ne, %1, %c0_i32_0 : i32
    scf.if %2 {
      %cst_10 = arith.constant 0.000000e+00 : f32
      %12 = vector.broadcast %cst_10 : f32 to vector<16x32xf32>
      %c0_11 = arith.constant 0 : index
      %c0_12 = arith.constant 0 : index
      %13 = vector.load %arg9[%c0_11, %c0_12] : memref<16x32xf32, #tpu.memory_space<vmem>>, vector<16x32xf32>
      tpu.vector_store %arg9[%c0_11, %c0_12], %12 {strides = array<i32>} : memref<16x32xf32, #tpu.memory_space<vmem>>, vector<16x32xf32>,
    } else {
    }
    %c0 = arith.constant 0 : index
    %c0_1 = arith.constant 0 : index
    %3 = vector.load %arg9[%c0, %c0_1] : memref<16x32xf32, #tpu.memory_space<vmem>>, vector<16x32xf32>
    %c0_2 = arith.constant 0 : index
    %c0_3 = arith.constant 0 : index
    %4 = vector.load %arg2[%c0_2, %c0_3] : memref<16x32xbf16, #tpu.memory_space<vmem>>, vector<16x32xbf16>
    %c0_4 = arith.constant 0 : index
    %c0_5 = arith.constant 0 : index
    %5 = vector.load %arg3[%c0_4, %c0_5] : memref<32x32xbf16, #tpu.memory_space<vmem>>, vector<32x32xbf16>
    %cst = arith.constant dense<0.000000e+00> : vector<16x32xf32>
    %6 = tpu.matmul %4, %5, %cst {dimension_numbers = #tpu.dot_dimension_numbers<[1], [0], [0], [1], [0, 0, 1, 1], [], []>} : vector<16x32xbf16>, vector<32x32xbf16>, vector<16x32xf32> -> vector<16x32xf32>
    %7 = arith.addf %3, %6 : vector<16x32xf32>
    %c0_6 = arith.constant 0 : index
    %c0_7 = arith.constant 0 : index
    %8 = vector.load %arg9[%c0_6, %c0_7] : memref<16x32xf32, #tpu.memory_space<vmem>>, vector<16x32xf32>
    tpu.vector_store %arg9[%c0_6, %c0_7], %7 {strides = array<i32>} : memref<16x32xf32, #tpu.memory_space<vmem>>, vector<16x32xf32>,
    %c0_i32_8 = arith.constant 0 : i32
    %9 = arith.cmpi eq, %arg1, %c0_i32_8 : i32
    %10 = arith.extui %9 : i1 to i32
    %c0_i32_9 = arith.constant 0 : i32
    %11 = arith.cmpi ne, %10, %c0_i32_9 : i32
    scf.if %11 {
      %c0_10 = arith.constant 0 : index
      %c0_11 = arith.constant 0 : index
      %12 = vector.load %arg9[%c0_10, %c0_11] : memref<16x32xf32, #tpu.memory_space<vmem>>, vector<16x32xf32>
      %c0_12 = arith.constant 0 : index
      %c0_13 = arith.constant 0 : index
      %13 = vector.load %arg4[%c0_12, %c0_13] : memref<1x32xf32, #tpu.memory_space<vmem>>, vector<1x32xf32>
      %14 = vector.broadcast %13 : vector<1x32xf32> to vector<16x32xf32>
      %15 = arith.addf %12, %14 : vector<16x32xf32>
      %c0_14 = arith.constant 0 : index
      %c0_15 = arith.constant 0 : index
      %16 = vector.load %arg5[%c0_14, %c0_15] : memref<16x32xbf16, #tpu.memory_space<vmem>>, vector<16x32xbf16>
      %17 = arith.extf %16 : vector<16x32xbf16> to vector<16x32xf32>
      %18 = arith.addf %15, %17 : vector<16x32xf32>
      %cst_16 = arith.constant dense<0.000000e+00> : vector<16xf32>
      %19 = vector.multi_reduction <add>, %18, %cst_16 [1] : vector<16x32xf32> to vector<16xf32>
      %20 = vector.shape_cast %19 : vector<16xf32> to vector<16x1xf32>
      %cst_17 = arith.constant 3.200000e+01 : f32
      %21 = vector.broadcast %cst_17 : f32 to vector<16x1xf32>
      %22 = arith.divf %20, %21 : vector<16x1xf32>
      %23 = vector.broadcast %22 : vector<16x1xf32> to vector<16x32xf32>
      %24 = arith.subf %18, %23 : vector<16x32xf32>
      %25 = arith.mulf %24, %24 : vector<16x32xf32>
      %cst_18 = arith.constant dense<0.000000e+00> : vector<16xf32>
      %26 = vector.multi_reduction <add>, %25, %cst_18 [1] : vector<16x32xf32> to vector<16xf32>
      %27 = vector.shape_cast %26 : vector<16xf32> to vector<16x1xf32>
      %cst_19 = arith.constant 3.200000e+01 : f32
      %28 = vector.broadcast %cst_19 : f32 to vector<16x1xf32>
      %29 = arith.divf %27, %28 : vector<16x1xf32>
      %cst_20 = arith.constant 9.99999974E-6 : f32
      %30 = vector.broadcast %cst_20 : f32 to vector<16x1xf32>
      %31 = arith.addf %29, %30 : vector<16x1xf32>
      %32 = math.rsqrt %31 : vector<16x1xf32>
      %33 = vector.broadcast %22 : vector<16x1xf32> to vector<16x32xf32>
      %34 = arith.subf %18, %33 : vector<16x32xf32>
      %35 = vector.broadcast %32 : vector<16x1xf32> to vector<16x32xf32>
      %36 = arith.mulf %34, %35 : vector<16x32xf32>
      %c0_21 = arith.constant 0 : index
      %c0_22 = arith.constant 0 : index
      %37 = vector.load %arg6[%c0_21, %c0_22] : memref<1x32xf32, #tpu.memory_space<vmem>>, vector<1x32xf32>
      %38 = vector.broadcast %37 : vector<1x32xf32> to vector<16x32xf32>
      %39 = arith.mulf %36, %38 : vector<16x32xf32>
      %c0_23 = arith.constant 0 : index
      %c0_24 = arith.constant 0 : index
      %40 = vector.load %arg7[%c0_23, %c0_24] : memref<1x32xf32, #tpu.memory_space<vmem>>, vector<1x32xf32>
      %41 = vector.broadcast %40 : vector<1x32xf32> to vector<16x32xf32>
      %42 = arith.addf %39, %41 : vector<16x32xf32>
      %43 = arith.truncf %42 : vector<16x32xf32> to vector<16x32xbf16>
      %c0_25 = arith.constant 0 : index
      %c0_26 = arith.constant 0 : index
      %44 = vector.load %arg8[%c0_25, %c0_26] : memref<16x32xbf16, #tpu.memory_space<vmem>>, vector<16x32xbf16>
      tpu.vector_store %arg8[%c0_25, %c0_26], %43 {strides = array<i32>} : memref<16x32xbf16, #tpu.memory_space<vmem>>, vector<16x32xbf16>,
    } else {
    }
    return
  }
  func.func @transform_0(%arg0: i32, %arg1: i32) -> (i32, i32) {
    %c0_i32 = arith.constant 0 : i32
    return %arg0, %arg1 : i32, i32
  }
  func.func @transform_1(%arg0: i32, %arg1: i32) -> (i32, i32) {
    %c0_i32 = arith.constant 0 : i32
    %c0_i32_0 = arith.constant 0 : i32
    return %arg1, %c0_i32 : i32, i32
  }
  func.func @transform_2(%arg0: i32, %arg1: i32) -> (i32, i32) {
    %c0_i32 = arith.constant 0 : i32
    %c0_i32_0 = arith.constant 0 : i32
    %c0_i32_1 = arith.constant 0 : i32
    return %c0_i32, %c0_i32_0 : i32, i32
  }
  func.func @transform_3(%arg0: i32, %arg1: i32) -> (i32, i32) {
    %c0_i32 = arith.constant 0 : i32
    %c0_i32_0 = arith.constant 0 : i32
    return %arg0, %c0_i32 : i32, i32
  }
  func.func @transform_4(%arg0: i32, %arg1: i32) -> (i32, i32) {
    %c0_i32 = arith.constant 0 : i32
    %c0_i32_0 = arith.constant 0 : i32
    %c0_i32_1 = arith.constant 0 : i32
    return %c0_i32, %c0_i32_0 : i32, i32
  }
  func.func @transform_5(%arg0: i32, %arg1: i32) -> (i32, i32) {
    %c0_i32 = arith.constant 0 : i32
    %c0_i32_0 = arith.constant 0 : i32
    %c0_i32_1 = arith.constant 0 : i32
    return %c0_i32, %c0_i32_0 : i32, i32
  }
  func.func @transform_6(%arg0: i32, %arg1: i32) -> (i32, i32) {
    %c0_i32 = arith.constant 0 : i32
    %c0_i32_0 = arith.constant 0 : i32
    return %arg0, %c0_i32 : i32, i32
  }
}

module attributes {stable_mosaic.version = 11 : i64} {
  func.func @kernel(%arg0: i32, %arg1: i32, %arg2: i32, %arg3: i32, %arg4: memref<1x1x16x128xbf16, #tpu.memory_space<vmem>>, %arg5: memref<1x1x16x128xbf16, #tpu.memory_space<vmem>>, %arg6: memref<1x1x16x128xbf16, #tpu.memory_space<vmem>>, %arg7: memref<1x1x16xf32, #tpu.memory_space<vmem>>, %arg8: memref<1x1x8x128xbf16, #tpu.memory_space<vmem>>, %arg9: memref<1x1x8x128xbf16, #tpu.memory_space<vmem>>, %arg10: memref<1x1x16x128xbf16, #tpu.memory_space<vmem>>, %arg11: memref<16x1xf32, #tpu.memory_space<vmem>>, %arg12: memref<16x1xf32, #tpu.memory_space<vmem>>, %arg13: memref<16x128xf32, #tpu.memory_space<vmem>>) attributes {dimension_semantics = [#tpu.dimension_semantics<parallel>, #tpu.dimension_semantics<parallel>, #tpu.dimension_semantics<parallel>, #tpu.dimension_semantics<arbitrary>], iteration_bounds = array<i64: 2, 4, 1, 1>, scalar_prefetch = 0 : i64, scratch_operands = 3 : i64, tpu.core_type = #tpu.core_type<tc>, window_params = [{transform_indices = @transform_0, window_bounds = array<i64: 1, 1, 16, 128>}, {transform_indices = @transform_1, window_bounds = array<i64: 1, 1, 16, 128>}, {transform_indices = @transform_2, window_bounds = array<i64: 1, 1, 16, 128>}, {transform_indices = @transform_3, window_bounds = array<i64: 1, 1, 16>}, {transform_indices = @transform_4, window_bounds = array<i64: 1, 1, 8, 128>}, {transform_indices = @transform_5, window_bounds = array<i64: 1, 1, 8, 128>}, {transform_indices = @transform_6, window_bounds = array<i64: 1, 1, 16, 128>}]} {
    %c0 = arith.constant 0 : index
    %c0_0 = arith.constant 0 : index
    %c0_1 = arith.constant 0 : index
    %c0_2 = arith.constant 0 : index
    %0 = vector.load %arg4[%c0, %c0_0, %c0_1, %c0_2] : memref<1x1x16x128xbf16, #tpu.memory_space<vmem>>, vector<1x1x16x128xbf16>
    %1 = vector.shape_cast %0 : vector<1x1x16x128xbf16> to vector<16x128xbf16>
    %c0_i32 = arith.constant 0 : i32
    %2 = arith.cmpi eq, %arg3, %c0_i32 : i32
    %3 = arith.extui %2 : i1 to i32
    %c0_i32_3 = arith.constant 0 : i32
    %4 = arith.cmpi ne, %3, %c0_i32_3 : i32
    scf.if %4 {
      %cst_32 = arith.constant -1.000000e+30 : f32
      %40 = vector.broadcast %cst_32 : f32 to vector<16x1xf32>
      %c0_33 = arith.constant 0 : index
      %c0_34 = arith.constant 0 : index
      %41 = vector.load %arg11[%c0_33, %c0_34] : memref<16x1xf32, #tpu.memory_space<vmem>>, vector<16x1xf32>
      tpu.vector_store %arg11[%c0_33, %c0_34], %40 {strides = array<i32>} : memref<16x1xf32, #tpu.memory_space<vmem>>, vector<16x1xf32>,
      %cst_35 = arith.constant 0.000000e+00 : f32
      %42 = vector.broadcast %cst_35 : f32 to vector<16x1xf32>
      %c0_36 = arith.constant 0 : index
      %c0_37 = arith.constant 0 : index
      %43 = vector.load %arg12[%c0_36, %c0_37] : memref<16x1xf32, #tpu.memory_space<vmem>>, vector<16x1xf32>
      tpu.vector_store %arg12[%c0_36, %c0_37], %42 {strides = array<i32>} : memref<16x1xf32, #tpu.memory_space<vmem>>, vector<16x1xf32>,
      %cst_38 = arith.constant 0.000000e+00 : f32
      %44 = vector.broadcast %cst_38 : f32 to vector<16x128xf32>
      %c0_39 = arith.constant 0 : index
      %c0_40 = arith.constant 0 : index
      %45 = vector.load %arg13[%c0_39, %c0_40] : memref<16x128xf32, #tpu.memory_space<vmem>>, vector<16x128xf32>
      tpu.vector_store %arg13[%c0_39, %c0_40], %44 {strides = array<i32>} : memref<16x128xf32, #tpu.memory_space<vmem>>, vector<16x128xf32>,
      %c0_41 = arith.constant 0 : index
      %c0_42 = arith.constant 0 : index
      %c0_43 = arith.constant 0 : index
      %c0_44 = arith.constant 0 : index
      %46 = vector.load %arg8[%c0_41, %c0_42, %c0_43, %c0_44] : memref<1x1x8x128xbf16, #tpu.memory_space<vmem>>, vector<1x1x8x128xbf16>
      %47 = vector.shape_cast %46 : vector<1x1x8x128xbf16> to vector<8x128xbf16>
      %c0_45 = arith.constant 0 : index
      %c0_46 = arith.constant 0 : index
      %c0_47 = arith.constant 0 : index
      %c0_48 = arith.constant 0 : index
      %48 = vector.load %arg9[%c0_45, %c0_46, %c0_47, %c0_48] : memref<1x1x8x128xbf16, #tpu.memory_space<vmem>>, vector<1x1x8x128xbf16>
      %49 = vector.shape_cast %48 : vector<1x1x8x128xbf16> to vector<8x128xbf16>
      %cst_49 = arith.constant dense<0.000000e+00> : vector<16x8xf32>
      %50 = tpu.matmul %1, %47, %cst_49 {dimension_numbers = #tpu.dot_dimension_numbers<[1], [1], [0], [0], [0, 0, 1, 0], [], []>} : vector<16x128xbf16>, vector<8x128xbf16>, vector<16x8xf32> -> vector<16x8xf32>
      %c0_50 = arith.constant 0 : index
      %c0_51 = arith.constant 0 : index
      %51 = vector.load %arg11[%c0_50, %c0_51] : memref<16x1xf32, #tpu.memory_space<vmem>>, vector<16x1xf32>
      %cst_52 = arith.constant dense<0xFF800000> : vector<16xf32>
      %52 = vector.multi_reduction <maximumf>, %50, %cst_52 [1] : vector<16x8xf32> to vector<16xf32>
      %53 = vector.shape_cast %52 : vector<16xf32> to vector<16x1xf32>
      %54 = arith.maximumf %51, %53 : vector<16x1xf32>
      %55 = arith.subf %51, %54 : vector<16x1xf32>
      %56 = math.exp %55 : vector<16x1xf32>
      %57 = vector.broadcast %54 : vector<16x1xf32> to vector<16x8xf32>
      %58 = arith.subf %50, %57 : vector<16x8xf32>
      %59 = math.exp %58 : vector<16x8xf32>
      %c0_53 = arith.constant 0 : index
      %c0_54 = arith.constant 0 : index
      %60 = vector.load %arg12[%c0_53, %c0_54] : memref<16x1xf32, #tpu.memory_space<vmem>>, vector<16x1xf32>
      %61 = arith.mulf %56, %60 : vector<16x1xf32>
      %cst_55 = arith.constant dense<0.000000e+00> : vector<16xf32>
      %62 = vector.multi_reduction <add>, %59, %cst_55 [1] : vector<16x8xf32> to vector<16xf32>
      %63 = vector.shape_cast %62 : vector<16xf32> to vector<16x1xf32>
      %64 = arith.addf %61, %63 : vector<16x1xf32>
      %c0_56 = arith.constant 0 : index
      %c0_57 = arith.constant 0 : index
      %65 = vector.load %arg12[%c0_56, %c0_57] : memref<16x1xf32, #tpu.memory_space<vmem>>, vector<16x1xf32>
      tpu.vector_store %arg12[%c0_56, %c0_57], %64 {strides = array<i32>} : memref<16x1xf32, #tpu.memory_space<vmem>>, vector<16x1xf32>,
      %c0_58 = arith.constant 0 : index
      %c0_59 = arith.constant 0 : index
      %66 = vector.load %arg13[%c0_58, %c0_59] : memref<16x128xf32, #tpu.memory_space<vmem>>, vector<16x128xf32>
      %67 = vector.broadcast %56 : vector<16x1xf32> to vector<16x128xf32>
      %68 = arith.mulf %67, %66 : vector<16x128xf32>
      %69 = arith.truncf %59 : vector<16x8xf32> to vector<16x8xbf16>
      %cst_60 = arith.constant dense<0.000000e+00> : vector<16x128xf32>
      %70 = tpu.matmul %69, %49, %cst_60 {dimension_numbers = #tpu.dot_dimension_numbers<[1], [0], [0], [1], [0, 0, 1, 1], [], []>} : vector<16x8xbf16>, vector<8x128xbf16>, vector<16x128xf32> -> vector<16x128xf32>
      %71 = arith.addf %68, %70 : vector<16x128xf32>
      %c0_61 = arith.constant 0 : index
      %c0_62 = arith.constant 0 : index
      %72 = vector.load %arg13[%c0_61, %c0_62] : memref<16x128xf32, #tpu.memory_space<vmem>>, vector<16x128xf32>
      tpu.vector_store %arg13[%c0_61, %c0_62], %71 {strides = array<i32>} : memref<16x128xf32, #tpu.memory_space<vmem>>, vector<16x128xf32>,
      %c0_63 = arith.constant 0 : index
      %c0_64 = arith.constant 0 : index
      %73 = vector.load %arg11[%c0_63, %c0_64] : memref<16x1xf32, #tpu.memory_space<vmem>>, vector<16x1xf32>
      tpu.vector_store %arg11[%c0_63, %c0_64], %54 {strides = array<i32>} : memref<16x1xf32, #tpu.memory_space<vmem>>, vector<16x1xf32>,
    } else {
    }
    %c0_4 = arith.constant 0 : index
    %c0_5 = arith.constant 0 : index
    %c0_6 = arith.constant 0 : index
    %c0_7 = arith.constant 0 : index
    %5 = vector.load %arg5[%c0_4, %c0_5, %c0_6, %c0_7] : memref<1x1x16x128xbf16, #tpu.memory_space<vmem>>, vector<1x1x16x128xbf16>
    %6 = vector.shape_cast %5 : vector<1x1x16x128xbf16> to vector<16x128xbf16>
    %c0_8 = arith.constant 0 : index
    %c0_9 = arith.constant 0 : index
    %c0_10 = arith.constant 0 : index
    %c0_11 = arith.constant 0 : index
    %7 = vector.load %arg6[%c0_8, %c0_9, %c0_10, %c0_11] : memref<1x1x16x128xbf16, #tpu.memory_space<vmem>>, vector<1x1x16x128xbf16>
    %8 = vector.shape_cast %7 : vector<1x1x16x128xbf16> to vector<16x128xbf16>
    %c0_12 = arith.constant 0 : index
    %c0_13 = arith.constant 0 : index
    %c0_14 = arith.constant 0 : index
    %9 = vector.load %arg7[%c0_12, %c0_13, %c0_14] : memref<1x1x16xf32, #tpu.memory_space<vmem>>, vector<1x1x16xf32>
    %10 = vector.shape_cast %9 : vector<1x1x16xf32> to vector<1x16xf32>
    %cst = arith.constant dense<0.000000e+00> : vector<16x16xf32>
    %11 = tpu.matmul %1, %6, %cst {dimension_numbers = #tpu.dot_dimension_numbers<[1], [1], [0], [0], [0, 0, 1, 0], [], []>} : vector<16x128xbf16>, vector<16x128xbf16>, vector<16x16xf32> -> vector<16x16xf32>
    %12 = vector.broadcast %10 : vector<1x16xf32> to vector<16x16xf32>
    %13 = arith.addf %11, %12 : vector<16x16xf32>
    %c0_15 = arith.constant 0 : index
    %c0_16 = arith.constant 0 : index
    %14 = vector.load %arg11[%c0_15, %c0_16] : memref<16x1xf32, #tpu.memory_space<vmem>>, vector<16x1xf32>
    %cst_17 = arith.constant dense<0xFF800000> : vector<16xf32>
    %15 = vector.multi_reduction <maximumf>, %13, %cst_17 [1] : vector<16x16xf32> to vector<16xf32>
    %16 = vector.shape_cast %15 : vector<16xf32> to vector<16x1xf32>
    %17 = arith.maximumf %14, %16 : vector<16x1xf32>
    %18 = arith.subf %14, %17 : vector<16x1xf32>
    %19 = math.exp %18 : vector<16x1xf32>
    %20 = vector.broadcast %17 : vector<16x1xf32> to vector<16x16xf32>
    %21 = arith.subf %13, %20 : vector<16x16xf32>
    %22 = math.exp %21 : vector<16x16xf32>
    %c0_18 = arith.constant 0 : index
    %c0_19 = arith.constant 0 : index
    %23 = vector.load %arg12[%c0_18, %c0_19] : memref<16x1xf32, #tpu.memory_space<vmem>>, vector<16x1xf32>
    %24 = arith.mulf %19, %23 : vector<16x1xf32>
    %cst_20 = arith.constant dense<0.000000e+00> : vector<16xf32>
    %25 = vector.multi_reduction <add>, %22, %cst_20 [1] : vector<16x16xf32> to vector<16xf32>
    %26 = vector.shape_cast %25 : vector<16xf32> to vector<16x1xf32>
    %27 = arith.addf %24, %26 : vector<16x1xf32>
    %c0_21 = arith.constant 0 : index
    %c0_22 = arith.constant 0 : index
    %28 = vector.load %arg12[%c0_21, %c0_22] : memref<16x1xf32, #tpu.memory_space<vmem>>, vector<16x1xf32>
    tpu.vector_store %arg12[%c0_21, %c0_22], %27 {strides = array<i32>} : memref<16x1xf32, #tpu.memory_space<vmem>>, vector<16x1xf32>,
    %c0_23 = arith.constant 0 : index
    %c0_24 = arith.constant 0 : index
    %29 = vector.load %arg13[%c0_23, %c0_24] : memref<16x128xf32, #tpu.memory_space<vmem>>, vector<16x128xf32>
    %30 = vector.broadcast %19 : vector<16x1xf32> to vector<16x128xf32>
    %31 = arith.mulf %30, %29 : vector<16x128xf32>
    %32 = arith.truncf %22 : vector<16x16xf32> to vector<16x16xbf16>
    %cst_25 = arith.constant dense<0.000000e+00> : vector<16x128xf32>
    %33 = tpu.matmul %32, %8, %cst_25 {dimension_numbers = #tpu.dot_dimension_numbers<[1], [0], [0], [1], [0, 0, 1, 1], [], []>} : vector<16x16xbf16>, vector<16x128xbf16>, vector<16x128xf32> -> vector<16x128xf32>
    %34 = arith.addf %31, %33 : vector<16x128xf32>
    %c0_26 = arith.constant 0 : index
    %c0_27 = arith.constant 0 : index
    %35 = vector.load %arg13[%c0_26, %c0_27] : memref<16x128xf32, #tpu.memory_space<vmem>>, vector<16x128xf32>
    tpu.vector_store %arg13[%c0_26, %c0_27], %34 {strides = array<i32>} : memref<16x128xf32, #tpu.memory_space<vmem>>, vector<16x128xf32>,
    %c0_28 = arith.constant 0 : index
    %c0_29 = arith.constant 0 : index
    %36 = vector.load %arg11[%c0_28, %c0_29] : memref<16x1xf32, #tpu.memory_space<vmem>>, vector<16x1xf32>
    tpu.vector_store %arg11[%c0_28, %c0_29], %17 {strides = array<i32>} : memref<16x1xf32, #tpu.memory_space<vmem>>, vector<16x1xf32>,
    %c0_i32_30 = arith.constant 0 : i32
    %37 = arith.cmpi eq, %arg3, %c0_i32_30 : i32
    %38 = arith.extui %37 : i1 to i32
    %c0_i32_31 = arith.constant 0 : i32
    %39 = arith.cmpi ne, %38, %c0_i32_31 : i32
    scf.if %39 {
      %c0_32 = arith.constant 0 : index
      %c0_33 = arith.constant 0 : index
      %40 = vector.load %arg13[%c0_32, %c0_33] : memref<16x128xf32, #tpu.memory_space<vmem>>, vector<16x128xf32>
      %c0_34 = arith.constant 0 : index
      %c0_35 = arith.constant 0 : index
      %41 = vector.load %arg12[%c0_34, %c0_35] : memref<16x1xf32, #tpu.memory_space<vmem>>, vector<16x1xf32>
      %42 = tpu.reciprocal %41 {approx = true} : vector<16x1xf32> -> vector<16x1xf32>
      %43 = vector.broadcast %42 : vector<16x1xf32> to vector<16x128xf32>
      %44 = arith.mulf %40, %43 : vector<16x128xf32>
      %45 = arith.truncf %44 : vector<16x128xf32> to vector<16x128xbf16>
      %c0_36 = arith.constant 0 : index
      %c0_37 = arith.constant 0 : index
      %c0_38 = arith.constant 0 : index
      %c0_39 = arith.constant 0 : index
      %46 = vector.load %arg10[%c0_36, %c0_37, %c0_38, %c0_39] : memref<1x1x16x128xbf16, #tpu.memory_space<vmem>>, vector<1x1x16x128xbf16>
      %47 = vector.shape_cast %46 : vector<1x1x16x128xbf16> to vector<16x128xbf16>
      %48 = vector.shape_cast %45 : vector<16x128xbf16> to vector<1x1x16x128xbf16>
      tpu.vector_store %arg10[%c0_36, %c0_37, %c0_38, %c0_39], %48 {strides = array<i32>} : memref<1x1x16x128xbf16, #tpu.memory_space<vmem>>, vector<1x1x16x128xbf16>,
    } else {
    }
    return
  }
  func.func @transform_0(%arg0: i32, %arg1: i32, %arg2: i32, %arg3: i32) -> (i32, i32, i32, i32) {
    %c0_i32 = arith.constant 0 : i32
    %c0_i32_0 = arith.constant 0 : i32
    return %arg0, %arg1, %arg2, %c0_i32 : i32, i32, i32, i32
  }
  func.func @transform_1(%arg0: i32, %arg1: i32, %arg2: i32, %arg3: i32) -> (i32, i32, i32, i32) {
    %c0_i32 = arith.constant 0 : i32
    %c0_i32_0 = arith.constant 0 : i32
    return %arg0, %arg1, %arg3, %c0_i32 : i32, i32, i32, i32
  }
  func.func @transform_2(%arg0: i32, %arg1: i32, %arg2: i32, %arg3: i32) -> (i32, i32, i32, i32) {
    %c0_i32 = arith.constant 0 : i32
    %c0_i32_0 = arith.constant 0 : i32
    return %arg0, %arg1, %arg3, %c0_i32 : i32, i32, i32, i32
  }
  func.func @transform_3(%arg0: i32, %arg1: i32, %arg2: i32, %arg3: i32) -> (i32, i32, i32) {
    %c0_i32 = arith.constant 0 : i32
    %c0_i32_0 = arith.constant 0 : i32
    return %arg0, %c0_i32, %arg3 : i32, i32, i32
  }
  func.func @transform_4(%arg0: i32, %arg1: i32, %arg2: i32, %arg3: i32) -> (i32, i32, i32, i32) {
    %c0_i32 = arith.constant 0 : i32
    %c0_i32_0 = arith.constant 0 : i32
    %c0_i32_1 = arith.constant 0 : i32
    return %arg0, %arg1, %c0_i32, %c0_i32_0 : i32, i32, i32, i32
  }
  func.func @transform_5(%arg0: i32, %arg1: i32, %arg2: i32, %arg3: i32) -> (i32, i32, i32, i32) {
    %c0_i32 = arith.constant 0 : i32
    %c0_i32_0 = arith.constant 0 : i32
    %c0_i32_1 = arith.constant 0 : i32
    return %arg0, %arg1, %c0_i32, %c0_i32_0 : i32, i32, i32, i32
  }
  func.func @transform_6(%arg0: i32, %arg1: i32, %arg2: i32, %arg3: i32) -> (i32, i32, i32, i32) {
    %c0_i32 = arith.constant 0 : i32
    %c0_i32_0 = arith.constant 0 : i32
    return %arg0, %arg1, %arg2, %c0_i32 : i32, i32, i32, i32
  }
}

module attributes {stable_mosaic.version = 11 : i64} {
  func.func @_matmul_bias_kernel(%arg0: i32, %arg1: i32, %arg2: i32, %arg3: memref<32x32xbf16, #tpu.memory_space<vmem>>, %arg4: memref<32x96xbf16, #tpu.memory_space<vmem>>, %arg5: memref<1x96xf32, #tpu.memory_space<vmem>>, %arg6: memref<32x96xbf16, #tpu.memory_space<vmem>>, %arg7: memref<32x96xf32, #tpu.memory_space<vmem>>) attributes {dimension_semantics = [#tpu.dimension_semantics<parallel>, #tpu.dimension_semantics<parallel>, #tpu.dimension_semantics<arbitrary>], iteration_bounds = array<i64: 1, 1, 1>, scalar_prefetch = 0 : i64, scratch_operands = 1 : i64, tpu.core_type = #tpu.core_type<tc>, window_params = [{transform_indices = @transform_0, window_bounds = array<i64: 32, 32>}, {transform_indices = @transform_1, window_bounds = array<i64: 32, 96>}, {transform_indices = @transform_2, window_bounds = array<i64: 1, 96>}, {transform_indices = @transform_3, window_bounds = array<i64: 32, 96>}]} {
    %c0_i32 = arith.constant 0 : i32
    %0 = arith.cmpi eq, %arg2, %c0_i32 : i32
    %1 = arith.extui %0 : i1 to i32
    %c0_i32_0 = arith.constant 0 : i32
    %2 = arith.cmpi ne, %1, %c0_i32_0 : i32
    scf.if %2 {
      %cst_10 = arith.constant 0.000000e+00 : f32
      %12 = vector.broadcast %cst_10 : f32 to vector<32x96xf32>
      %c0_11 = arith.constant 0 : index
      %c0_12 = arith.constant 0 : index
      %13 = vector.load %arg7[%c0_11, %c0_12] : memref<32x96xf32, #tpu.memory_space<vmem>>, vector<32x96xf32>
      tpu.vector_store %arg7[%c0_11, %c0_12], %12 {strides = array<i32>} : memref<32x96xf32, #tpu.memory_space<vmem>>, vector<32x96xf32>,
    } else {
    }
    %c0 = arith.constant 0 : index
    %c0_1 = arith.constant 0 : index
    %3 = vector.load %arg7[%c0, %c0_1] : memref<32x96xf32, #tpu.memory_space<vmem>>, vector<32x96xf32>
    %c0_2 = arith.constant 0 : index
    %c0_3 = arith.constant 0 : index
    %4 = vector.load %arg3[%c0_2, %c0_3] : memref<32x32xbf16, #tpu.memory_space<vmem>>, vector<32x32xbf16>
    %c0_4 = arith.constant 0 : index
    %c0_5 = arith.constant 0 : index
    %5 = vector.load %arg4[%c0_4, %c0_5] : memref<32x96xbf16, #tpu.memory_space<vmem>>, vector<32x96xbf16>
    %cst = arith.constant dense<0.000000e+00> : vector<32x96xf32>
    %6 = tpu.matmul %4, %5, %cst {dimension_numbers = #tpu.dot_dimension_numbers<[1], [0], [0], [1], [0, 0, 1, 1], [], []>} : vector<32x32xbf16>, vector<32x96xbf16>, vector<32x96xf32> -> vector<32x96xf32>
    %7 = arith.addf %3, %6 : vector<32x96xf32>
    %c0_6 = arith.constant 0 : index
    %c0_7 = arith.constant 0 : index
    %8 = vector.load %arg7[%c0_6, %c0_7] : memref<32x96xf32, #tpu.memory_space<vmem>>, vector<32x96xf32>
    tpu.vector_store %arg7[%c0_6, %c0_7], %7 {strides = array<i32>} : memref<32x96xf32, #tpu.memory_space<vmem>>, vector<32x96xf32>,
    %c0_i32_8 = arith.constant 0 : i32
    %9 = arith.cmpi eq, %arg2, %c0_i32_8 : i32
    %10 = arith.extui %9 : i1 to i32
    %c0_i32_9 = arith.constant 0 : i32
    %11 = arith.cmpi ne, %10, %c0_i32_9 : i32
    scf.if %11 {
      %c0_10 = arith.constant 0 : index
      %c0_11 = arith.constant 0 : index
      %12 = vector.load %arg7[%c0_10, %c0_11] : memref<32x96xf32, #tpu.memory_space<vmem>>, vector<32x96xf32>
      %c0_12 = arith.constant 0 : index
      %c0_13 = arith.constant 0 : index
      %13 = vector.load %arg5[%c0_12, %c0_13] : memref<1x96xf32, #tpu.memory_space<vmem>>, vector<1x96xf32>
      %14 = vector.broadcast %13 : vector<1x96xf32> to vector<32x96xf32>
      %15 = arith.addf %12, %14 : vector<32x96xf32>
      %16 = arith.truncf %15 : vector<32x96xf32> to vector<32x96xbf16>
      %c0_14 = arith.constant 0 : index
      %c0_15 = arith.constant 0 : index
      %17 = vector.load %arg6[%c0_14, %c0_15] : memref<32x96xbf16, #tpu.memory_space<vmem>>, vector<32x96xbf16>
      tpu.vector_store %arg6[%c0_14, %c0_15], %16 {strides = array<i32>} : memref<32x96xbf16, #tpu.memory_space<vmem>>, vector<32x96xbf16>,
    } else {
    }
    return
  }
  func.func @transform_0(%arg0: i32, %arg1: i32, %arg2: i32) -> (i32, i32) {
    %c0_i32 = arith.constant 0 : i32
    return %arg0, %arg2 : i32, i32
  }
  func.func @transform_1(%arg0: i32, %arg1: i32, %arg2: i32) -> (i32, i32) {
    %c0_i32 = arith.constant 0 : i32
    return %arg2, %arg1 : i32, i32
  }
  func.func @transform_2(%arg0: i32, %arg1: i32, %arg2: i32) -> (i32, i32) {
    %c0_i32 = arith.constant 0 : i32
    %c0_i32_0 = arith.constant 0 : i32
    return %c0_i32, %arg1 : i32, i32
  }
  func.func @transform_3(%arg0: i32, %arg1: i32, %arg2: i32) -> (i32, i32) {
    %c0_i32 = arith.constant 0 : i32
    return %arg0, %arg1 : i32, i32
  }
}

module attributes {stable_mosaic.version = 11 : i64} {
  func.func @_ffn_res_ln_kernel(%arg0: i32, %arg1: i32, %arg2: memref<32x32xbf16, #tpu.memory_space<vmem>>, %arg3: memref<32x64xbf16, #tpu.memory_space<vmem>>, %arg4: memref<1x64xf32, #tpu.memory_space<vmem>>, %arg5: memref<64x32xbf16, #tpu.memory_space<vmem>>, %arg6: memref<1x32xf32, #tpu.memory_space<vmem>>, %arg7: memref<1x32xf32, #tpu.memory_space<vmem>>, %arg8: memref<1x32xf32, #tpu.memory_space<vmem>>, %arg9: memref<32x32xbf16, #tpu.memory_space<vmem>>, %arg10: memref<32x32xf32, #tpu.memory_space<vmem>>) attributes {dimension_semantics = [#tpu.dimension_semantics<parallel>, #tpu.dimension_semantics<arbitrary>], iteration_bounds = array<i64: 1, 1>, scalar_prefetch = 0 : i64, scratch_operands = 1 : i64, tpu.core_type = #tpu.core_type<tc>, window_params = [{transform_indices = @transform_0, window_bounds = array<i64: 32, 32>}, {transform_indices = @transform_1, window_bounds = array<i64: 32, 64>}, {transform_indices = @transform_2, window_bounds = array<i64: 1, 64>}, {transform_indices = @transform_3, window_bounds = array<i64: 64, 32>}, {pipeline_mode = #tpu.pipeline_mode<synchronous>, transform_indices = @transform_4, window_bounds = array<i64: 1, 32>}, {pipeline_mode = #tpu.pipeline_mode<synchronous>, transform_indices = @transform_5, window_bounds = array<i64: 1, 32>}, {pipeline_mode = #tpu.pipeline_mode<synchronous>, transform_indices = @transform_6, window_bounds = array<i64: 1, 32>}, {transform_indices = @transform_7, window_bounds = array<i64: 32, 32>}]} {
    %c0_i32 = arith.constant 0 : i32
    %0 = arith.cmpi eq, %arg1, %c0_i32 : i32
    %1 = arith.extui %0 : i1 to i32
    %c0_i32_0 = arith.constant 0 : i32
    %2 = arith.cmpi ne, %1, %c0_i32_0 : i32
    scf.if %2 {
      %cst_19 = arith.constant 0.000000e+00 : f32
      %31 = vector.broadcast %cst_19 : f32 to vector<32x32xf32>
      %c0_20 = arith.constant 0 : index
      %c0_21 = arith.constant 0 : index
      %32 = vector.load %arg10[%c0_20, %c0_21] : memref<32x32xf32, #tpu.memory_space<vmem>>, vector<32x32xf32>
      tpu.vector_store %arg10[%c0_20, %c0_21], %31 {strides = array<i32>} : memref<32x32xf32, #tpu.memory_space<vmem>>, vector<32x32xf32>,
    } else {
    }
    %c0 = arith.constant 0 : index
    %c0_1 = arith.constant 0 : index
    %3 = vector.load %arg2[%c0, %c0_1] : memref<32x32xbf16, #tpu.memory_space<vmem>>, vector<32x32xbf16>
    %c0_2 = arith.constant 0 : index
    %c0_3 = arith.constant 0 : index
    %4 = vector.load %arg3[%c0_2, %c0_3] : memref<32x64xbf16, #tpu.memory_space<vmem>>, vector<32x64xbf16>
    %cst = arith.constant dense<0.000000e+00> : vector<32x64xf32>
    %5 = tpu.matmul %3, %4, %cst {dimension_numbers = #tpu.dot_dimension_numbers<[1], [0], [0], [1], [0, 0, 1, 1], [], []>} : vector<32x32xbf16>, vector<32x64xbf16>, vector<32x64xf32> -> vector<32x64xf32>
    %c0_4 = arith.constant 0 : index
    %c0_5 = arith.constant 0 : index
    %6 = vector.load %arg4[%c0_4, %c0_5] : memref<1x64xf32, #tpu.memory_space<vmem>>, vector<1x64xf32>
    %7 = vector.broadcast %6 : vector<1x64xf32> to vector<32x64xf32>
    %8 = arith.addf %5, %7 : vector<32x64xf32>
    %9 = arith.mulf %8, %8 : vector<32x64xf32>
    %10 = arith.mulf %8, %9 : vector<32x64xf32>
    %cst_6 = arith.constant 4.471500e-02 : f32
    %11 = vector.broadcast %cst_6 : f32 to vector<32x64xf32>
    %12 = arith.mulf %11, %10 : vector<32x64xf32>
    %13 = arith.addf %8, %12 : vector<32x64xf32>
    %cst_7 = arith.constant 0.797884583 : f32
    %14 = vector.broadcast %cst_7 : f32 to vector<32x64xf32>
    %15 = arith.mulf %14, %13 : vector<32x64xf32>
    %16 = math.tanh %15 : vector<32x64xf32>
    %cst_8 = arith.constant 1.000000e+00 : f32
    %17 = vector.broadcast %cst_8 : f32 to vector<32x64xf32>
    %18 = arith.addf %17, %16 : vector<32x64xf32>
    %cst_9 = arith.constant 5.000000e-01 : f32
    %19 = vector.broadcast %cst_9 : f32 to vector<32x64xf32>
    %20 = arith.mulf %19, %18 : vector<32x64xf32>
    %21 = arith.mulf %8, %20 : vector<32x64xf32>
    %c0_10 = arith.constant 0 : index
    %c0_11 = arith.constant 0 : index
    %22 = vector.load %arg10[%c0_10, %c0_11] : memref<32x32xf32, #tpu.memory_space<vmem>>, vector<32x32xf32>
    %23 = arith.truncf %21 : vector<32x64xf32> to vector<32x64xbf16>
    %c0_12 = arith.constant 0 : index
    %c0_13 = arith.constant 0 : index
    %24 = vector.load %arg5[%c0_12, %c0_13] : memref<64x32xbf16, #tpu.memory_space<vmem>>, vector<64x32xbf16>
    %cst_14 = arith.constant dense<0.000000e+00> : vector<32x32xf32>
    %25 = tpu.matmul %23, %24, %cst_14 {dimension_numbers = #tpu.dot_dimension_numbers<[1], [0], [0], [1], [0, 0, 1, 1], [], []>} : vector<32x64xbf16>, vector<64x32xbf16>, vector<32x32xf32> -> vector<32x32xf32>
    %26 = arith.addf %22, %25 : vector<32x32xf32>
    %c0_15 = arith.constant 0 : index
    %c0_16 = arith.constant 0 : index
    %27 = vector.load %arg10[%c0_15, %c0_16] : memref<32x32xf32, #tpu.memory_space<vmem>>, vector<32x32xf32>
    tpu.vector_store %arg10[%c0_15, %c0_16], %26 {strides = array<i32>} : memref<32x32xf32, #tpu.memory_space<vmem>>, vector<32x32xf32>,
    %c0_i32_17 = arith.constant 0 : i32
    %28 = arith.cmpi eq, %arg1, %c0_i32_17 : i32
    %29 = arith.extui %28 : i1 to i32
    %c0_i32_18 = arith.constant 0 : i32
    %30 = arith.cmpi ne, %29, %c0_i32_18 : i32
    scf.if %30 {
      %c0_19 = arith.constant 0 : index
      %c0_20 = arith.constant 0 : index
      %31 = vector.load %arg10[%c0_19, %c0_20] : memref<32x32xf32, #tpu.memory_space<vmem>>, vector<32x32xf32>
      %c0_21 = arith.constant 0 : index
      %c0_22 = arith.constant 0 : index
      %32 = vector.load %arg6[%c0_21, %c0_22] : memref<1x32xf32, #tpu.memory_space<vmem>>, vector<1x32xf32>
      %33 = vector.broadcast %32 : vector<1x32xf32> to vector<32x32xf32>
      %34 = arith.addf %31, %33 : vector<32x32xf32>
      %c0_23 = arith.constant 0 : index
      %c0_24 = arith.constant 0 : index
      %35 = vector.load %arg2[%c0_23, %c0_24] : memref<32x32xbf16, #tpu.memory_space<vmem>>, vector<32x32xbf16>
      %36 = arith.extf %35 : vector<32x32xbf16> to vector<32x32xf32>
      %37 = arith.addf %34, %36 : vector<32x32xf32>
      %cst_25 = arith.constant dense<0.000000e+00> : vector<32xf32>
      %38 = vector.multi_reduction <add>, %37, %cst_25 [1] : vector<32x32xf32> to vector<32xf32>
      %39 = vector.shape_cast %38 : vector<32xf32> to vector<32x1xf32>
      %cst_26 = arith.constant 3.200000e+01 : f32
      %40 = vector.broadcast %cst_26 : f32 to vector<32x1xf32>
      %41 = arith.divf %39, %40 : vector<32x1xf32>
      %42 = vector.broadcast %41 : vector<32x1xf32> to vector<32x32xf32>
      %43 = arith.subf %37, %42 : vector<32x32xf32>
      %44 = arith.mulf %43, %43 : vector<32x32xf32>
      %cst_27 = arith.constant dense<0.000000e+00> : vector<32xf32>
      %45 = vector.multi_reduction <add>, %44, %cst_27 [1] : vector<32x32xf32> to vector<32xf32>
      %46 = vector.shape_cast %45 : vector<32xf32> to vector<32x1xf32>
      %cst_28 = arith.constant 3.200000e+01 : f32
      %47 = vector.broadcast %cst_28 : f32 to vector<32x1xf32>
      %48 = arith.divf %46, %47 : vector<32x1xf32>
      %cst_29 = arith.constant 9.99999974E-6 : f32
      %49 = vector.broadcast %cst_29 : f32 to vector<32x1xf32>
      %50 = arith.addf %48, %49 : vector<32x1xf32>
      %51 = math.rsqrt %50 : vector<32x1xf32>
      %52 = vector.broadcast %41 : vector<32x1xf32> to vector<32x32xf32>
      %53 = arith.subf %37, %52 : vector<32x32xf32>
      %54 = vector.broadcast %51 : vector<32x1xf32> to vector<32x32xf32>
      %55 = arith.mulf %53, %54 : vector<32x32xf32>
      %c0_30 = arith.constant 0 : index
      %c0_31 = arith.constant 0 : index
      %56 = vector.load %arg7[%c0_30, %c0_31] : memref<1x32xf32, #tpu.memory_space<vmem>>, vector<1x32xf32>
      %57 = vector.broadcast %56 : vector<1x32xf32> to vector<32x32xf32>
      %58 = arith.mulf %55, %57 : vector<32x32xf32>
      %c0_32 = arith.constant 0 : index
      %c0_33 = arith.constant 0 : index
      %59 = vector.load %arg8[%c0_32, %c0_33] : memref<1x32xf32, #tpu.memory_space<vmem>>, vector<1x32xf32>
      %60 = vector.broadcast %59 : vector<1x32xf32> to vector<32x32xf32>
      %61 = arith.addf %58, %60 : vector<32x32xf32>
      %62 = arith.truncf %61 : vector<32x32xf32> to vector<32x32xbf16>
      %c0_34 = arith.constant 0 : index
      %c0_35 = arith.constant 0 : index
      %63 = vector.load %arg9[%c0_34, %c0_35] : memref<32x32xbf16, #tpu.memory_space<vmem>>, vector<32x32xbf16>
      tpu.vector_store %arg9[%c0_34, %c0_35], %62 {strides = array<i32>} : memref<32x32xbf16, #tpu.memory_space<vmem>>, vector<32x32xbf16>,
    } else {
    }
    return
  }
  func.func @transform_0(%arg0: i32, %arg1: i32) -> (i32, i32) {
    %c0_i32 = arith.constant 0 : i32
    %c0_i32_0 = arith.constant 0 : i32
    return %arg0, %c0_i32 : i32, i32
  }
  func.func @transform_1(%arg0: i32, %arg1: i32) -> (i32, i32) {
    %c0_i32 = arith.constant 0 : i32
    %c0_i32_0 = arith.constant 0 : i32
    return %c0_i32, %arg1 : i32, i32
  }
  func.func @transform_2(%arg0: i32, %arg1: i32) -> (i32, i32) {
    %c0_i32 = arith.constant 0 : i32
    %c0_i32_0 = arith.constant 0 : i32
    return %c0_i32, %arg1 : i32, i32
  }
  func.func @transform_3(%arg0: i32, %arg1: i32) -> (i32, i32) {
    %c0_i32 = arith.constant 0 : i32
    %c0_i32_0 = arith.constant 0 : i32
    return %arg1, %c0_i32 : i32, i32
  }
  func.func @transform_4(%arg0: i32, %arg1: i32) -> (i32, i32) {
    %c0_i32 = arith.constant 0 : i32
    %c0_i32_0 = arith.constant 0 : i32
    %c0_i32_1 = arith.constant 0 : i32
    return %c0_i32, %c0_i32_0 : i32, i32
  }
  func.func @transform_5(%arg0: i32, %arg1: i32) -> (i32, i32) {
    %c0_i32 = arith.constant 0 : i32
    %c0_i32_0 = arith.constant 0 : i32
    %c0_i32_1 = arith.constant 0 : i32
    return %c0_i32, %c0_i32_0 : i32, i32
  }
  func.func @transform_6(%arg0: i32, %arg1: i32) -> (i32, i32) {
    %c0_i32 = arith.constant 0 : i32
    %c0_i32_0 = arith.constant 0 : i32
    %c0_i32_1 = arith.constant 0 : i32
    return %c0_i32, %c0_i32_0 : i32, i32
  }
  func.func @transform_7(%arg0: i32, %arg1: i32) -> (i32, i32) {
    %c0_i32 = arith.constant 0 : i32
    %c0_i32_0 = arith.constant 0 : i32
    return %arg0, %c0_i32 : i32, i32
  }
}

module attributes {stable_mosaic.version = 11 : i64} {
  func.func @_oproj_res_ln_kernel(%arg0: i32, %arg1: i32, %arg2: memref<32x32xbf16, #tpu.memory_space<vmem>>, %arg3: memref<32x32xbf16, #tpu.memory_space<vmem>>, %arg4: memref<1x32xf32, #tpu.memory_space<vmem>>, %arg5: memref<32x32xbf16, #tpu.memory_space<vmem>>, %arg6: memref<1x32xf32, #tpu.memory_space<vmem>>, %arg7: memref<1x32xf32, #tpu.memory_space<vmem>>, %arg8: memref<32x32xbf16, #tpu.memory_space<vmem>>, %arg9: memref<32x32xf32, #tpu.memory_space<vmem>>) attributes {dimension_semantics = [#tpu.dimension_semantics<parallel>, #tpu.dimension_semantics<arbitrary>], iteration_bounds = array<i64: 1, 1>, scalar_prefetch = 0 : i64, scratch_operands = 1 : i64, tpu.core_type = #tpu.core_type<tc>, window_params = [{transform_indices = @transform_0, window_bounds = array<i64: 32, 32>}, {transform_indices = @transform_1, window_bounds = array<i64: 32, 32>}, {pipeline_mode = #tpu.pipeline_mode<synchronous>, transform_indices = @transform_2, window_bounds = array<i64: 1, 32>}, {transform_indices = @transform_3, window_bounds = array<i64: 32, 32>}, {pipeline_mode = #tpu.pipeline_mode<synchronous>, transform_indices = @transform_4, window_bounds = array<i64: 1, 32>}, {pipeline_mode = #tpu.pipeline_mode<synchronous>, transform_indices = @transform_5, window_bounds = array<i64: 1, 32>}, {transform_indices = @transform_6, window_bounds = array<i64: 32, 32>}]} {
    %c0_i32 = arith.constant 0 : i32
    %0 = arith.cmpi eq, %arg1, %c0_i32 : i32
    %1 = arith.extui %0 : i1 to i32
    %c0_i32_0 = arith.constant 0 : i32
    %2 = arith.cmpi ne, %1, %c0_i32_0 : i32
    scf.if %2 {
      %cst_10 = arith.constant 0.000000e+00 : f32
      %12 = vector.broadcast %cst_10 : f32 to vector<32x32xf32>
      %c0_11 = arith.constant 0 : index
      %c0_12 = arith.constant 0 : index
      %13 = vector.load %arg9[%c0_11, %c0_12] : memref<32x32xf32, #tpu.memory_space<vmem>>, vector<32x32xf32>
      tpu.vector_store %arg9[%c0_11, %c0_12], %12 {strides = array<i32>} : memref<32x32xf32, #tpu.memory_space<vmem>>, vector<32x32xf32>,
    } else {
    }
    %c0 = arith.constant 0 : index
    %c0_1 = arith.constant 0 : index
    %3 = vector.load %arg9[%c0, %c0_1] : memref<32x32xf32, #tpu.memory_space<vmem>>, vector<32x32xf32>
    %c0_2 = arith.constant 0 : index
    %c0_3 = arith.constant 0 : index
    %4 = vector.load %arg2[%c0_2, %c0_3] : memref<32x32xbf16, #tpu.memory_space<vmem>>, vector<32x32xbf16>
    %c0_4 = arith.constant 0 : index
    %c0_5 = arith.constant 0 : index
    %5 = vector.load %arg3[%c0_4, %c0_5] : memref<32x32xbf16, #tpu.memory_space<vmem>>, vector<32x32xbf16>
    %cst = arith.constant dense<0.000000e+00> : vector<32x32xf32>
    %6 = tpu.matmul %4, %5, %cst {dimension_numbers = #tpu.dot_dimension_numbers<[1], [0], [0], [1], [0, 0, 1, 1], [], []>} : vector<32x32xbf16>, vector<32x32xbf16>, vector<32x32xf32> -> vector<32x32xf32>
    %7 = arith.addf %3, %6 : vector<32x32xf32>
    %c0_6 = arith.constant 0 : index
    %c0_7 = arith.constant 0 : index
    %8 = vector.load %arg9[%c0_6, %c0_7] : memref<32x32xf32, #tpu.memory_space<vmem>>, vector<32x32xf32>
    tpu.vector_store %arg9[%c0_6, %c0_7], %7 {strides = array<i32>} : memref<32x32xf32, #tpu.memory_space<vmem>>, vector<32x32xf32>,
    %c0_i32_8 = arith.constant 0 : i32
    %9 = arith.cmpi eq, %arg1, %c0_i32_8 : i32
    %10 = arith.extui %9 : i1 to i32
    %c0_i32_9 = arith.constant 0 : i32
    %11 = arith.cmpi ne, %10, %c0_i32_9 : i32
    scf.if %11 {
      %c0_10 = arith.constant 0 : index
      %c0_11 = arith.constant 0 : index
      %12 = vector.load %arg9[%c0_10, %c0_11] : memref<32x32xf32, #tpu.memory_space<vmem>>, vector<32x32xf32>
      %c0_12 = arith.constant 0 : index
      %c0_13 = arith.constant 0 : index
      %13 = vector.load %arg4[%c0_12, %c0_13] : memref<1x32xf32, #tpu.memory_space<vmem>>, vector<1x32xf32>
      %14 = vector.broadcast %13 : vector<1x32xf32> to vector<32x32xf32>
      %15 = arith.addf %12, %14 : vector<32x32xf32>
      %c0_14 = arith.constant 0 : index
      %c0_15 = arith.constant 0 : index
      %16 = vector.load %arg5[%c0_14, %c0_15] : memref<32x32xbf16, #tpu.memory_space<vmem>>, vector<32x32xbf16>
      %17 = arith.extf %16 : vector<32x32xbf16> to vector<32x32xf32>
      %18 = arith.addf %15, %17 : vector<32x32xf32>
      %cst_16 = arith.constant dense<0.000000e+00> : vector<32xf32>
      %19 = vector.multi_reduction <add>, %18, %cst_16 [1] : vector<32x32xf32> to vector<32xf32>
      %20 = vector.shape_cast %19 : vector<32xf32> to vector<32x1xf32>
      %cst_17 = arith.constant 3.200000e+01 : f32
      %21 = vector.broadcast %cst_17 : f32 to vector<32x1xf32>
      %22 = arith.divf %20, %21 : vector<32x1xf32>
      %23 = vector.broadcast %22 : vector<32x1xf32> to vector<32x32xf32>
      %24 = arith.subf %18, %23 : vector<32x32xf32>
      %25 = arith.mulf %24, %24 : vector<32x32xf32>
      %cst_18 = arith.constant dense<0.000000e+00> : vector<32xf32>
      %26 = vector.multi_reduction <add>, %25, %cst_18 [1] : vector<32x32xf32> to vector<32xf32>
      %27 = vector.shape_cast %26 : vector<32xf32> to vector<32x1xf32>
      %cst_19 = arith.constant 3.200000e+01 : f32
      %28 = vector.broadcast %cst_19 : f32 to vector<32x1xf32>
      %29 = arith.divf %27, %28 : vector<32x1xf32>
      %cst_20 = arith.constant 9.99999974E-6 : f32
      %30 = vector.broadcast %cst_20 : f32 to vector<32x1xf32>
      %31 = arith.addf %29, %30 : vector<32x1xf32>
      %32 = math.rsqrt %31 : vector<32x1xf32>
      %33 = vector.broadcast %22 : vector<32x1xf32> to vector<32x32xf32>
      %34 = arith.subf %18, %33 : vector<32x32xf32>
      %35 = vector.broadcast %32 : vector<32x1xf32> to vector<32x32xf32>
      %36 = arith.mulf %34, %35 : vector<32x32xf32>
      %c0_21 = arith.constant 0 : index
      %c0_22 = arith.constant 0 : index
      %37 = vector.load %arg6[%c0_21, %c0_22] : memref<1x32xf32, #tpu.memory_space<vmem>>, vector<1x32xf32>
      %38 = vector.broadcast %37 : vector<1x32xf32> to vector<32x32xf32>
      %39 = arith.mulf %36, %38 : vector<32x32xf32>
      %c0_23 = arith.constant 0 : index
      %c0_24 = arith.constant 0 : index
      %40 = vector.load %arg7[%c0_23, %c0_24] : memref<1x32xf32, #tpu.memory_space<vmem>>, vector<1x32xf32>
      %41 = vector.broadcast %40 : vector<1x32xf32> to vector<32x32xf32>
      %42 = arith.addf %39, %41 : vector<32x32xf32>
      %43 = arith.truncf %42 : vector<32x32xf32> to vector<32x32xbf16>
      %c0_25 = arith.constant 0 : index
      %c0_26 = arith.constant 0 : index
      %44 = vector.load %arg8[%c0_25, %c0_26] : memref<32x32xbf16, #tpu.memory_space<vmem>>, vector<32x32xbf16>
      tpu.vector_store %arg8[%c0_25, %c0_26], %43 {strides = array<i32>} : memref<32x32xbf16, #tpu.memory_space<vmem>>, vector<32x32xbf16>,
    } else {
    }
    return
  }
  func.func @transform_0(%arg0: i32, %arg1: i32) -> (i32, i32) {
    %c0_i32 = arith.constant 0 : i32
    return %arg0, %arg1 : i32, i32
  }
  func.func @transform_1(%arg0: i32, %arg1: i32) -> (i32, i32) {
    %c0_i32 = arith.constant 0 : i32
    %c0_i32_0 = arith.constant 0 : i32
    return %arg1, %c0_i32 : i32, i32
  }
  func.func @transform_2(%arg0: i32, %arg1: i32) -> (i32, i32) {
    %c0_i32 = arith.constant 0 : i32
    %c0_i32_0 = arith.constant 0 : i32
    %c0_i32_1 = arith.constant 0 : i32
    return %c0_i32, %c0_i32_0 : i32, i32
  }
  func.func @transform_3(%arg0: i32, %arg1: i32) -> (i32, i32) {
    %c0_i32 = arith.constant 0 : i32
    %c0_i32_0 = arith.constant 0 : i32
    return %arg0, %c0_i32 : i32, i32
  }
  func.func @transform_4(%arg0: i32, %arg1: i32) -> (i32, i32) {
    %c0_i32 = arith.constant 0 : i32
    %c0_i32_0 = arith.constant 0 : i32
    %c0_i32_1 = arith.constant 0 : i32
    return %c0_i32, %c0_i32_0 : i32, i32
  }
  func.func @transform_5(%arg0: i32, %arg1: i32) -> (i32, i32) {
    %c0_i32 = arith.constant 0 : i32
    %c0_i32_0 = arith.constant 0 : i32
    %c0_i32_1 = arith.constant 0 : i32
    return %c0_i32, %c0_i32_0 : i32, i32
  }
  func.func @transform_6(%arg0: i32, %arg1: i32) -> (i32, i32) {
    %c0_i32 = arith.constant 0 : i32
    %c0_i32_0 = arith.constant 0 : i32
    return %arg0, %c0_i32 : i32, i32
  }
}

</mosaic_0001>

<bundles_post_ra>
// kernel: little_bird_forward.19
= control target key start
LH: loop header
LB: loop body
LE: loop exit
PB: predicated region body
PF: predicated region fallthrough
CT: control target
= control target key end

     0   :  { %vm19_vm0 = vcmask 523264   ;;  %v147_v1 = vmov 0.0   ;;  %vm58_vm1 = vcmask 261120   ;;  %vm112_vm2 = vcmask 519168   ;;  %s203_s1 = inlined_call_operand.vmem [shape: bf16[32,64], index: 1, kind: input, shape index: {}]   ;;  %s204_s2 = inlined_call_operand.vmem [shape: f32[1,64], index: 2, kind: input, shape index: {}]   ;;  %s205_s0 = inlined_call_operand.vmem [shape: bf16[32,32], index: 0, kind: input, shape index: {}]   ;;  %s206_s3 = inlined_call_operand.vmem [shape: bf16[32,64], index: 3, kind: output, shape index: {}]  }
   0x1   :  { %v142_v0 = vld [vmem:[%s203_s1 + $0x8] sm:$0xff]  ;;  %20 = vst.msk [vmem:[#allocation2] sm:$0xff] %vm19_vm0, %v147_v1  ;;  %v141_v2 = vld [vmem:[%s203_s1] sm:$0xff] }
   0x2   :  { %21 = vst.msk [vmem:[#allocation2 + $0x8] sm:$0xff] %vm19_vm0, %v147_v1  ;;  %71 = vmatpush.bf16.msra.mxu0 %v142_v0  ;;  %143 = vmatpush.bf16.msra.mxu1 %v142_v0  ;;  %v139_v3 = vld [vmem:[%s205_s0] sm:$0xff]  ;;  %v140_v4 = vld [vmem:[%s205_s0 + $0x8] sm:$0xff] }
   0x3   :  { %22 = vst.msk [vmem:[#allocation2 + $0x10] sm:$0xff] %vm19_vm0, %v147_v1  ;;  %v146_v13 = vld [vmem:[%s204_s2] ss:$0 sm:$0xff] }
   0x4   :  { %23 = vst.msk [vmem:[#allocation2 + $0x18] sm:$0xff] %vm19_vm0, %v147_v1 }
   0x6   :  { %72 = vmatpush.bf16.msra.mxu0 %v141_v2  ;;  %144 = vmatpush.bf16.msra.mxu1 %v141_v2 }
   0x8   :  { %v24_v5 = vld [vmem:[#allocation2] sm:$0xff] }
   0x9   :  { %137 = vmatmul.msk.bf16.vlgmr.msra.gmra.mxu0 %vm58_vm1, %v139_v3  ;;  %138 = vmatmul.msk.bf16.vlgmr.msra.gmra.mxu1 %vm58_vm1, %v140_v4  ;;  %v25_v11 = vld [vmem:[#allocation2 + $0x8] sm:$0xff] }
   0xa   :  { %v26_v6 = vld [vmem:[#allocation2 + $0x10] sm:$0xff] }
   0xb   :  { %v27_v12 = vld [vmem:[#allocation2 + $0x18] sm:$0xff] }
  0x86   :  { %v74_v7 = vpop.f32.mrf.mxu0  ;;  %v79_v8 = vpop.f32.mrf.mxu1 }
  0x87   :  { %v84_v9 = vadd.f32 %v74_v7, %v24_v5  ;;  %v86_v10 = vadd.f32 %v79_v8, %v26_v6 }
  0x89   :  { %89 = vst.msk [vmem:[#allocation2] sm:$0xff] %vm19_vm0, %v84_v9 }
  0x8a   :  { %91 = vst.msk [vmem:[#allocation2 + $0x10] sm:$0xff] %vm19_vm0, %v86_v10 }
  0x8e   :  { %v76_v14 = vpop.f32.mrf.mxu0  ;;  %v81_v15 = vpop.f32.mrf.mxu1 }
  0x8f   :  { %v85_v16 = vadd.f32 %v76_v14, %v25_v11  ;;  %v87_v17 = vadd.f32 %v81_v15, %v27_v12 }
  0x90   :  { %v96_v18 = vld [vmem:[#allocation2] sm:$0xff] }
  0x91   :  { %v104_v19 = vadd.f32 %v146_v13, %v96_v18  ;;  %v98_v20 = vld [vmem:[#allocation2 + $0x10] sm:$0xff]  ;;  %90 = vst.msk [vmem:[#allocation2 + $0x8] sm:$0xff] %vm19_vm0, %v85_v16 }
  0x92   :  { %v106_v21 = vadd.f32 %v146_v13, %v98_v20  ;;  %92 = vst.msk [vmem:[#allocation2 + $0x18] sm:$0xff] %vm19_vm0, %v87_v17 }
  0x93   :  { %v108_v22 = vpack.c.bf16 %v104_v19, %v104_v19 }
  0x94   :  { %v110_v23 = vpack.c.bf16 %v106_v21, %v106_v21 }
  0x95   :  { %113 = vst.msk [vmem:[%s206_s3] sm:$0xf] %vm112_vm2, %v108_v22 }
  0x96   :  { %115 = vst.msk [vmem:[%s206_s3 + $0x8] sm:$0xf] %vm112_vm2, %v110_v23 }
  0x98   :  { %v97_v24 = vld [vmem:[#allocation2 + $0x8] sm:$0xff] }
  0x99   :  { %v105_v25 = vadd.f32 %v146_v13, %v97_v24  ;;  %v99_v26 = vld [vmem:[#allocation2 + $0x18] sm:$0xff] }
  0x9a   :  { %v107_v27 = vadd.f32 %v146_v13, %v99_v26 }
  0x9b   :  { %v109_v28 = vpack.c.bf16 %v105_v25, %v105_v25 }
  0x9c   :  { %v111_v29 = vpack.c.bf16 %v107_v27, %v107_v27 }
  0x9d   :  { %114 = vst.msk [vmem:[%s206_s3 + $0x4] sm:$0xf] %vm112_vm2, %v109_v28 }
  0x9e   :  { %116 = vst.msk [vmem:[%s206_s3 + $0xc] sm:$0xf] %vm112_vm2, %v111_v29 }

// kernel: little_bird_forward.18
= control target key start
LH: loop header
LB: loop body
LE: loop exit
PB: predicated region body
PF: predicated region fallthrough
CT: control target
= control target key end

     0   :  { %vm19_vm0 = vcmask 261120   ;;  %v107_v1 = vmov 0.0   ;;  %vm82_vm1 = vcmask 257024   ;;  %s151_s1 = inlined_call_operand.vmem [shape: bf16[32,32], index: 1, kind: input, shape index: {}]   ;;  %s152_s2 = inlined_call_operand.vmem [shape: f32[1,32], index: 2, kind: input, shape index: {}]   ;;  %s153_s0 = inlined_call_operand.vmem [shape: bf16[16,32], index: 0, kind: input, shape index: {}]   ;;  %s154_s3 = inlined_call_operand.vmem [shape: bf16[16,32], index: 3, kind: output, shape index: {}]  }
   0x1   :  { %v104_v0 = vld [vmem:[%s151_s1 + $0x8] sm:$0xff]  ;;  %20 = vst.msk [vmem:[#allocation2] sm:$0xff] %vm19_vm0, %v107_v1  ;;  %v103_v2 = vld [vmem:[%s151_s1] sm:$0xff] }
   0x2   :  { %21 = vst.msk [vmem:[#allocation2 + $0x8] sm:$0xff] %vm19_vm0, %v107_v1  ;;  %57 = vmatpush.bf16.msra.mxu0 %v104_v0  ;;  %v102_v3 = vld [vmem:[%s153_s0] sm:$0xff] }
   0x3   :  { %v106_v8 = vld [vmem:[%s152_s2] ss:$0 sm:$0xff] }
   0x6   :  { %58 = vmatpush.bf16.msra.mxu0 %v103_v2 }
   0x8   :  { %v22_v4 = vld [vmem:[#allocation2] sm:$0xff] }
   0x9   :  { %101 = vmatmul.msk.bf16.vlgmr.msra.gmra.mxu0 %vm19_vm0, %v102_v3  ;;  %v23_v7 = vld [vmem:[#allocation2 + $0x8] sm:$0xff] }
  0x86   :  { %v60_v5 = vpop.f32.mrf.mxu0 }
  0x87   :  { %v65_v6 = vadd.f32 %v60_v5, %v22_v4 }
  0x89   :  { %67 = vst.msk [vmem:[#allocation2] sm:$0xff] %vm19_vm0, %v65_v6 }
  0x8e   :  { %v62_v9 = vpop.f32.mrf.mxu0 }
  0x8f   :  { %v66_v10 = vadd.f32 %v62_v9, %v23_v7 }
  0x90   :  { %v72_v11 = vld [vmem:[#allocation2] sm:$0xff] }
  0x91   :  { %v78_v12 = vadd.f32 %v106_v8, %v72_v11  ;;  %68 = vst.msk [vmem:[#allocation2 + $0x8] sm:$0xff] %vm19_vm0, %v66_v10 }
  0x93   :  { %v80_v13 = vpack.c.bf16 %v78_v12, %v78_v12 }
  0x95   :  { %83 = vst.msk [vmem:[%s154_s3] sm:$0xf] %vm82_vm1, %v80_v13 }
  0x98   :  { %v73_v14 = vld [vmem:[#allocation2 + $0x8] sm:$0xff] }
  0x99   :  { %v79_v15 = vadd.f32 %v106_v8, %v73_v14 }
  0x9b   :  { %v81_v16 = vpack.c.bf16 %v79_v15, %v79_v15 }
  0x9d   :  { %84 = vst.msk [vmem:[%s154_s3 + $0x4] sm:$0xf] %vm82_vm1, %v81_v16 }

// kernel: little_bird_forward.23
= control target key start
LH: loop header
LB: loop body
LE: loop exit
PB: predicated region body
PF: predicated region fallthrough
CT: control target
= control target key end

     0   :  { %vm19_vm0 = vcmask 523264   ;;  %v108_v1 = vmov 0.0   ;;  %vm47_vm1 = vcmask 261120   ;;  %vm83_vm2 = vcmask 519168   ;;  %s151_s1 = inlined_call_operand.vmem [shape: bf16[32,64], index: 1, kind: input, shape index: {}]   ;;  %s152_s2 = inlined_call_operand.vmem [shape: f32[1,64], index: 2, kind: input, shape index: {}]   ;;  %s153_s0 = inlined_call_operand.vmem [shape: bf16[16,32], index: 0, kind: input, shape index: {}]   ;;  %s154_s3 = inlined_call_operand.vmem [shape: bf16[16,64], index: 3, kind: output, shape index: {}]  }
   0x1   :  { %v105_v0 = vld [vmem:[%s151_s1 + $0x8] sm:$0xff]  ;;  %20 = vst.msk [vmem:[#allocation2] sm:$0xff] %vm19_vm0, %v108_v1  ;;  %v104_v2 = vld [vmem:[%s151_s1] sm:$0xff] }
   0x2   :  { %21 = vst.msk [vmem:[#allocation2 + $0x8] sm:$0xff] %vm19_vm0, %v108_v1  ;;  %57 = vmatpush.bf16.msra.mxu0 %v105_v0  ;;  %v103_v3 = vld [vmem:[%s153_s0] sm:$0xff] }
   0x3   :  { %v107_v8 = vld [vmem:[%s152_s2] ss:$0 sm:$0xff] }
   0x6   :  { %58 = vmatpush.bf16.msra.mxu0 %v104_v2 }
   0x8   :  { %v22_v4 = vld [vmem:[#allocation2] sm:$0xff] }
   0x9   :  { %102 = vmatmul.msk.bf16.vlgmr.msra.gmra.mxu0 %vm47_vm1, %v103_v3  ;;  %v23_v7 = vld [vmem:[#allocation2 + $0x8] sm:$0xff] }
  0x86   :  { %v60_v5 = vpop.f32.mrf.mxu0 }
  0x87   :  { %v65_v6 = vadd.f32 %v60_v5, %v22_v4 }
  0x89   :  { %68 = vst.msk [vmem:[#allocation2] sm:$0xff] %vm19_vm0, %v65_v6 }
  0x8e   :  { %v62_v9 = vpop.f32.mrf.mxu0 }
  0x8f   :  { %v66_v10 = vadd.f32 %v62_v9, %v23_v7 }
  0x90   :  { %v73_v11 = vld [vmem:[#allocation2] sm:$0xff] }
  0x91   :  { %v79_v12 = vadd.f32 %v107_v8, %v73_v11  ;;  %69 = vst.msk [vmem:[#allocation2 + $0x8] sm:$0xff] %vm19_vm0, %v66_v10 }
  0x93   :  { %v81_v13 = vpack.c.bf16 %v79_v12, %v79_v12 }
  0x95   :  { %84 = vst.msk [vmem:[%s154_s3] sm:$0xf] %vm83_vm2, %v81_v13 }
  0x98   :  { %v74_v14 = vld [vmem:[#allocation2 + $0x8] sm:$0xff] }
  0x99   :  { %v80_v15 = vadd.f32 %v107_v8, %v74_v14 }
  0x9b   :  { %v82_v16 = vpack.c.bf16 %v80_v15, %v80_v15 }
  0x9d   :  { %85 = vst.msk [vmem:[%s154_s3 + $0x4] sm:$0xf] %vm83_vm2, %v82_v16 }

// kernel: little_bird_forward.20
= control target key start
LH: loop header
LB: loop body
LE: loop exit
PB: predicated region body
PF: predicated region fallthrough
CT: control target
= control target key end

     0   :  { %s910_s15 = smov 0   ;;  %s912_s16 = smov 0   ;;  %s989_s0 = inlined_call_operand.vmem [shape: bf16[2,4,16,128], index: 0, kind: input, shape index: {}]   ;;  %s990_s1 = inlined_call_operand.vmem [shape: bf16[2,4,16,128], index: 1, kind: input, shape index: {}]   ;;  %s991_s2 = inlined_call_operand.vmem [shape: bf16[2,4,16,128], index: 2, kind: input, shape index: {}]   ;;  %s992_s3 = inlined_call_operand.vmem [shape: f32[2,1,16], index: 3, kind: input, shape index: {}]   ;;  %s993_s4 = inlined_call_operand.vmem [shape: bf16[2,4,16,128], index: 4, kind: output, shape index: {}]  }
   0x1   :  { %s914_s17 = smov 0   ;;  %s916_s18 = smov 0  }
   0x2   :  { %s918_s19 = smov 0  }
   0x3 LB: > { %s36_s20 = sadd.s32 1, %s872_s17  ;;  %s40_s21 = sadd.s32 1, %s876_s18  ;;  %s880_s19 = sphi %s918_s19, %s14_s19   ;;  %s876_s18 = sphi %s916_s18, %s997_s18   ;;  %s872_s17 = sphi %s914_s17, %s996_s17   ;;  %s868_s16 = sphi %s912_s16, %s995_s16   ;;  %s864_s15 = sphi %s910_s15, %s994_s15  }
   0x4   : > { %p38_p0 = scmp.ge.s32.totalorder %s36_s20, 4  ;;  %p747_p1 = scmp.ge.s32.totalorder %s880_s19, 1 }
   0x5   : > { %p264_p2 = scmp.lt.s32.totalorder %s880_s19, 9 }
   0x6   : > { %s999_s20 = smov (%p38_p0, %s36_s20), 0  ;;  %s1001_s21 = smov (!%p38_p0, %s40_s21), %s876_s18 }
   0x7   : > { %p265_p3 = pnand %p747_p1, %p264_p2  ;;  %p42_p4 = scmp.ge.s32.totalorder %s1001_s21, 2 }
   0x8   : > { %p339_p5 = scmp.lt.s32.totalorder (!%p265_p3), %s868_s16, 1  ;;  %p341_p6 = scmp.lt.s32.totalorder (!%p265_p3), %s864_s15, 3 }
   0x9   : > { %s1003_s21 = smov (%p42_p4, %s1001_s21), 0  ;;  %268 = sbr.rel (%p265_p3) target bundleno = 663 (0x297), region = 36 }
   0xe   : > { %s1005_s16 = smov (!%p339_p5, %s868_s16), 1  ;;  %s1007_s15 = smov (!%p341_p6, %s864_s15), 3  ;;  %vm407_vm0 = vcmask 7168   ;;  %v882_v2 = vmov -1e+30   ;;  %vm450_vm1 = vcmask 130048  }
   0xf   : > { %s749_s22 = sshll.u32 %s1005_s16, 3  ;;  %s385_s25 = scalar_lea.vmem %s992_s3, %s1005_s16  ;;  %408 = vst.msk [vmem:[#allocation2] sm:$0xff] %vm407_vm0, %v882_v2  ;;  %v883_v10 = vmov 0   ;;  %v884_v11 = vmov 0.0  }
  0x10   : > { %s748_s26 = sshll.u32 %s1007_s15, 1  ;;  %409 = vst.msk [vmem:[#allocation2 + $0x8] sm:$0xff] %vm407_vm0, %v882_v2  ;;  %v829_v3 = vld [vmem:[%s385_s25] ss:$0 sm:$0xff]  ;;  %826 = vset.pattern.permute.xlu1 %v883_v10  ;;  %827 = vset.pattern.permute.xlu0 %v883_v10 }
  0x11   : > { %s348_s27 = sadd.s32 %s749_s22, %s748_s26  ;;  %828 = vset.pattern.permute.xlu2 %v883_v10  ;;  %410 = vst.msk [vmem:[#allocation3] sm:$0xff] %vm407_vm0, %v884_v11 }
  0x12   : > { %s943_s28 = sshll.u32 %s348_s27, 2  ;;  %411 = vst.msk [vmem:[#allocation3 + $0x8] sm:$0xff] %vm407_vm0, %v884_v11 }
  0x13   : > { %s364_s5 = scalar_lea.vmem %s990_s1, %s943_s28  ;;  %s350_s8 = scalar_lea.vmem %s989_s0, %s943_s28 }
  0x14   : > { %v776_v0 = vld [vmem:[%s364_s5] sm:$0xff]  ;;  %s378_s11 = scalar_lea.vmem %s991_s2, %s943_s28  ;;  %s398_s14 = scalar_lea.vmem %s993_s4, %s943_s28 }
  0x15   : > { %441 = vmatpush.bf16.xpose.msra.mxu0 %v776_v0  ;;  %v775_v1 = vld [vmem:[%s350_s8] sm:$0xff] }
  0x16   : > { %v448_v12 = vld [vmem:[#allocation2] sm:$0xff] }
  0x17   : > { %v449_v17 = vld [vmem:[#allocation2 + $0x8] sm:$0xff]  ;;  %v777_v24 = vld [vmem:[%s378_s11] sm:$0xff] }
  0x18   : > { %527 = vmatpush.bf16.msra.mxu1 %v777_v24  ;;  %v481_v36 = vld [vmem:[#allocation3] sm:$0xff] }
  0x19   : > { %v482_v40 = vld [vmem:[#allocation3 + $0x8] sm:$0xff] }
  0x1c   : > { %442 = vmatmul.bf16.vlgmr.msra.gmra.mxu0 %v775_v1 }
  0x99   : > { %v443_v4 = vpop.f32.mrf.mxu0 }
  0x9a   : > { %v444_v5 = vadd.f32 %v829_v3, %v443_v4 }
  0x9c   : > { %v451_v6 = vsel %vm450_vm1, %v444_v5, -inf }
  0x9d   : > { %452 = vmax.xlane.f32.xlu0 %v451_v6 }
  0xa1   : > { %v445_v7 = vpop.f32.mrf.mxu0 }
  0xa2   : > { %v446_v8 = vadd.f32 %v829_v3, %v445_v7 }
  0xa4   : > { %v454_v9 = vsel %vm450_vm1, %v446_v8, -inf }
  0xa5   : > { %455 = vmax.xlane.f32.xlu0 %v454_v9 }
 0x110   : > { %v453_v13 = vpop.xlane.xlu0 %452 }
 0x111   : > { %v457_v14 = vmax.f32 %v448_v12, %v453_v13 }
 0x113   : > { %v459_v15 = vsub.f32 %v448_v12, %v457_v14  ;;  %538 = vst.msk [vmem:[#allocation2] sm:$0xff] %vm407_vm0, %v457_v14  ;;  %467 = vperm.xlu1 %826, %v457_v14  }
 0x115   : > { %v461_v16 = vmul.f32 1.442695, %v459_v15 }
 0x117   : > { %830 = vpow2.f32 %v461_v16 }
 0x118   : > { %v456_v18 = vpop.xlane.xlu0 %455 }
 0x119   : > { %v458_v19 = vmax.f32 %v449_v17, %v456_v18 }
 0x11b   : > { %v460_v20 = vsub.f32 %v449_v17, %v458_v19  ;;  %539 = vst.msk [vmem:[#allocation2 + $0x8] sm:$0xff] %vm407_vm0, %v458_v19  ;;  %472 = vperm.xlu1 %826, %v458_v19  }
 0x11d   : > { %v831_v21 = vpop.eup %830  ;;  %v463_v22 = vmul.f32 1.442695, %v460_v20 }
 0x11e   : > { %500 = vperm.xlu0 %827, %v831_v21   ;;  %v483_v37 = vmul.f32 %v831_v21, %v481_v36 }
 0x11f   : > { %832 = vpow2.f32 %v463_v22 }
 0x125   : > { %v833_v23 = vpop.eup %832 }
 0x126   : > { %505 = vperm.xlu1 %826, %v833_v23   ;;  %v484_v41 = vmul.f32 %v833_v23, %v482_v40 }
 0x185   : > { %v468_v25 = vpop.permute.xlu1 %467 }
 0x186   : > { %v475_v26 = vsub.f32 %v444_v5, %v468_v25 }
 0x188   : > { %v477_v27 = vmul.f32 1.442695, %v475_v26 }
 0x18a   : > { %834 = vpow2.f32 %v477_v27 }
 0x18d   : > { %v473_v28 = vpop.permute.xlu1 %472 }
 0x18e   : > { %v476_v29 = vsub.f32 %v446_v8, %v473_v28 }
 0x190   : > { %v835_v30 = vpop.eup %834  ;;  %v479_v31 = vmul.f32 1.442695, %v476_v29  ;;  %v501_v50 = vpop.permute.xlu0 %500 }
 0x191   : > { %v485_v32 = vsel %vm450_vm1, %v835_v30, 0.0  ;;  %v508_v52 = vmul.f32 0.0, %v501_v50 }
 0x192   : > { %836 = vpow2.f32 %v479_v31  ;;  %486 = vadd.xlane.f32.xlu2 %v485_v32 }
 0x198   : > { %v837_v33 = vpop.eup %836  ;;  %v506_v49 = vpop.permute.xlu1 %505 }
 0x199   : > { %v488_v34 = vsel %vm450_vm1, %v837_v33, 0.0  ;;  %v510_v35 = vpack.c.bf16 %v837_v33, %v835_v30  ;;  %v509_v53 = vmul.f32 0.0, %v506_v49 }
 0x19a   : > { %489 = vadd.xlane.f32.xlu2 %v488_v34 }
 0x19b   : > { %772 = vmatmul.msk.bf16.vlgmr.msra.gmra.mxu1 %vm450_vm1, %v510_v35 }
 0x205   : > { %v487_v38 = vpop.xlane.xlu2 %486 }
 0x206   : > { %v491_v39 = vadd.f32 %v487_v38, %v483_v37 }
 0x208   : > { %494 = vst.msk [vmem:[#allocation3] sm:$0xff] %vm407_vm0, %v491_v39 }
 0x20d   : > { %v490_v42 = vpop.xlane.xlu2 %489 }
 0x20e   : > { %v492_v43 = vadd.f32 %v490_v42, %v484_v41 }
 0x20f   : > { %v545_v44 = vld [vmem:[#allocation3] sm:$0xff] }
 0x210   : > { %495 = vst.msk [vmem:[#allocation3 + $0x8] sm:$0xff] %vm407_vm0, %v492_v43  ;;  %838 = vrcp.f32 %v545_v44 }
 0x216   : > { %v839_v45 = vpop.eup %838 }
 0x217   : > { %551 = vperm.xlu2 %828, %v839_v45   ;;  %v546_v46 = vld [vmem:[#allocation3 + $0x8] sm:$0xff] }
 0x218   : > { %840 = vrcp.f32 %v546_v46  ;;  %v529_v48 = vpop.f32.mrf.mxu1 }
 0x219   : > { %v534_v55 = vadd.f32 %v529_v48, %v508_v52 }
 0x21e   : > { %v841_v47 = vpop.eup %840 }
 0x21f   : > { %556 = vperm.xlu1 %826, %v841_v47  }
 0x220   : > { %v531_v51 = vpop.f32.mrf.mxu1 }
 0x221   : > { %v535_v56 = vadd.f32 %v531_v51, %v509_v53 }
 0x271   : > { %v552_v54 = vpop.permute.xlu2 %551 }
 0x272   : > { %v559_v58 = vmul.f32 %v552_v54, %v534_v55 }
 0x291   : > { %v557_v57 = vpop.permute.xlu1 %556 }
 0x292   : > { %v560_v59 = vmul.f32 %v557_v57, %v535_v56 }
 0x294   : > { %v781_v60 = vpack.c.bf16 %v560_v59, %v559_v58 }
 0x296   : > { %782 = vst [vmem:[%s398_s14] sm:$0xff] %v781_v60  }
 0x297 PF: > { %s14_s19 = sadd.s32 1, %s880_s19   ;;  %s994_s15 = smov %s872_s17 }
 0x298   : > { %p11_p7 = scmp.ge.s32.totalorder %s14_s19, 10   ;;  %s995_s16 = smov %s876_s18 }
 0x299   : > { %s996_s17 = smov %s999_s20  ;;  %s997_s18 = smov %s1003_s21 }
 0x29a   :  { %13 = sbr.rel (!%p11_p7) target bundleno = 3 (0x3), region = 83 }

// kernel: little_bird_forward.21
= control target key start
LH: loop header
LB: loop body
LE: loop exit
PB: predicated region body
PF: predicated region fallthrough
CT: control target
= control target key end

     0   :  { %vm28_vm0 = vcmask 261120   ;;  %v198_v1 = vmov 0.0   ;;  %v199_v22 = vmov 32.0   ;;  %vm160_vm6 = vcmask 257024   ;;  %s271_s1 = inlined_call_operand.vmem [shape: bf16[32,32], index: 1, kind: input, shape index: {}]   ;;  %s272_s0 = inlined_call_operand.vmem [shape: bf16[16,32], index: 0, kind: input, shape index: {}]   ;;  %s273_s2 = inlined_call_operand.vmem [shape: f32[1,32], index: 2, kind: input, shape index: {}]   ;;  %s274_s3 = inlined_call_operand.vmem [shape: bf16[16,32], index: 3, kind: input, shape index: {}]   ;;  %s275_s4 = inlined_call_operand.vmem [shape: f32[1,32], index: 4, kind: input, shape index: {}]   ;;  %s276_s5 = inlined_call_operand.vmem [shape: f32[1,32], index: 5, kind: input, shape index: {}]   ;;  %s277_s6 = inlined_call_operand.vmem [shape: bf16[16,32], index: 6, kind: output, shape index: {}]  }
   0x1   :  { %v182_v0 = vld [vmem:[%s271_s1 + $0x8] sm:$0xff]  ;;  %29 = vst.msk [vmem:[#allocation2] sm:$0xff] %vm28_vm0, %v198_v1  ;;  %v181_v2 = vld [vmem:[%s271_s1] sm:$0xff]  ;;  %192 = vrcp.f32 %v199_v22 }
   0x2   :  { %30 = vst.msk [vmem:[#allocation2 + $0x8] sm:$0xff] %vm28_vm0, %v198_v1  ;;  %66 = vmatpush.bf16.msra.mxu0 %v182_v0  ;;  %v180_v3 = vld [vmem:[%s272_s0] sm:$0xff] }
   0x3   :  { %v184_v8 = vld [vmem:[%s274_s3] sm:$0xff]  }
   0x4   :  { %v189_v9 = vld [vmem:[%s273_s2] ss:$0 sm:$0xff]  ;;  %v185_v12 = vunpack.c.l.bf16 %v184_v8  ;;  %v186_v17 = vunpack.c.h.bf16 %v184_v8 }
   0x5   :  { %v190_v53 = vld [vmem:[%s275_s4] ss:$0 sm:$0xff] }
   0x6   :  { %67 = vmatpush.bf16.msra.mxu0 %v181_v2  ;;  %v191_v56 = vld [vmem:[%s276_s5] ss:$0 sm:$0xff] }
   0x7   :  { %v193_v23 = vpop.eup %192 }
   0x8   :  { %v31_v4 = vld [vmem:[#allocation2] sm:$0xff]  ;;  %v102_v24 = vmul.f32 32.0, %v193_v23  ;;  %vm106_vm1 = vweird.f32 %v193_v23 }
   0x9   :  { %179 = vmatmul.msk.bf16.vlgmr.msra.gmra.mxu0 %vm28_vm0, %v180_v3  ;;  %v32_v7 = vld [vmem:[#allocation2 + $0x8] sm:$0xff] }
   0xa   :  { %v103_v25 = vsub.f32 1.0, %v102_v24 }
   0xc   :  { %v104_v26 = vmul.f32 %v193_v23, %v103_v25 }
   0xe   :  { %v105_v27 = vadd.f32 %v193_v23, %v104_v26 }
  0x10   :  { %v107_v28 = vsel %vm106_vm1, %v193_v23, %v105_v27 }
  0x86   :  { %v69_v5 = vpop.f32.mrf.mxu0 }
  0x87   :  { %v74_v6 = vadd.f32 %v69_v5, %v31_v4 }
  0x89   :  { %76 = vst.msk [vmem:[#allocation2] sm:$0xff] %vm28_vm0, %v74_v6 }
  0x8e   :  { %v71_v10 = vpop.f32.mrf.mxu0 }
  0x8f   :  { %v75_v11 = vadd.f32 %v71_v10, %v32_v7 }
  0x90   :  { %v81_v13 = vld [vmem:[#allocation2] sm:$0xff] }
  0x91   :  { %77 = vst.msk [vmem:[#allocation2 + $0x8] sm:$0xff] %vm28_vm0, %v75_v11  ;;  %v87_v14 = vadd.f32 %v189_v9, %v81_v13 }
  0x93   :  { %v93_v15 = vadd.f32 %v185_v12, %v87_v14 }
  0x95   :  { %v95_v16 = vsel %vm28_vm0, %v93_v15, 0.0 }
  0x96   :  { %96 = vadd.xlane.f32.xlu0 %v95_v16 }
  0x98   :  { %v82_v18 = vld [vmem:[#allocation2 + $0x8] sm:$0xff] }
  0x99   :  { %v88_v19 = vadd.f32 %v189_v9, %v82_v18 }
  0x9b   :  { %v94_v20 = vadd.f32 %v186_v17, %v88_v19 }
  0x9d   :  { %v98_v21 = vsel %vm28_vm0, %v94_v20, 0.0 }
  0x9e   :  { %99 = vadd.xlane.f32.xlu0 %v98_v21 }
 0x109   :  { %v97_v29 = vpop.xlane.xlu0 %96 }
 0x10a   :  { %v108_v30 = vmul.f32 %v107_v28, %v97_v29 }
 0x10c   :  { %v110_v31 = vsub.f32 %v93_v15, %v108_v30 }
 0x10e   :  { %v112_v32 = vmul.f32 %v110_v31, %v110_v31 }
 0x110   :  { %v114_v33 = vsel %vm28_vm0, %v112_v32, 0.0 }
 0x111   :  { %115 = vadd.xlane.f32.xlu1 %v114_v33  ;;  %v100_v34 = vpop.xlane.xlu0 %99 }
 0x112   :  { %v109_v35 = vmul.f32 %v107_v28, %v100_v34 }
 0x114   :  { %v111_v36 = vsub.f32 %v94_v20, %v109_v35 }
 0x116   :  { %v113_v37 = vmul.f32 %v111_v36, %v111_v36 }
 0x118   :  { %v117_v38 = vsel %vm28_vm0, %v113_v37, 0.0 }
 0x119   :  { %118 = vadd.xlane.f32.xlu1 %v117_v38 }
 0x184   :  { %v116_v39 = vpop.xlane.xlu1 %115 }
 0x185   :  { %v120_v40 = vmul.f32 %v116_v39, %v107_v28 }
 0x187   :  { %v122_v41 = vadd.f32 1e-05, %v120_v40 }
 0x189   :  { %194 = vrsqrt.f32 %v122_v41  ;;  %vm130_vm3 = vweird.f32 %v122_v41 }
 0x18c   :  { %v119_v42 = vpop.xlane.xlu1 %118 }
 0x18d   :  { %v121_v43 = vmul.f32 %v119_v42, %v107_v28 }
 0x18f   :  { %v195_v44 = vpop.eup %194  ;;  %v123_v45 = vadd.f32 1e-05, %v121_v43 }
 0x190   :  { %v125_v46 = vmul.f32 %v195_v44, %v122_v41  ;;  %vm131_vm2 = vweird.f32 %v195_v44 }
 0x191   :  { %196 = vrsqrt.f32 %v123_v45  ;;  %vm132_vm4 = vmor %vm130_vm3, %vm131_vm2  ;;  %vm140_vm7 = vweird.f32 %v123_v45 }
 0x192   :  { %v126_v47 = vmul.f32 %v195_v44, %v125_v46 }
 0x194   :  { %v127_v48 = vmul.f32 0.5, %v126_v47 }
 0x196   :  { %v128_v49 = vsub.f32 1.5, %v127_v48 }
 0x197   :  { %v197_v50 = vpop.eup %196 }
 0x198   :  { %v129_v51 = vmul.f32 %v195_v44, %v128_v49  ;;  %v135_v52 = vmul.f32 %v197_v50, %v123_v45  ;;  %vm141_vm5 = vweird.f32 %v197_v50 }
 0x199   :  { %vm142_vm8 = vmor %vm140_vm7, %vm141_vm5 }
 0x19a   :  { %v133_v54 = vsel %vm132_vm4, %v195_v44, %v129_v51  ;;  %v136_v55 = vmul.f32 %v197_v50, %v135_v52 }
 0x19b   :  { %v144_v57 = vmul.f32 %v133_v54, %v110_v31 }
 0x19c   :  { %v137_v58 = vmul.f32 0.5, %v136_v55 }
 0x19d   :  { %v150_v59 = vmul.f32 %v190_v53, %v144_v57 }
 0x19e   :  { %v138_v60 = vsub.f32 1.5, %v137_v58 }
 0x19f   :  { %v156_v61 = vadd.f32 %v191_v56, %v150_v59 }
 0x1a0   :  { %v139_v62 = vmul.f32 %v197_v50, %v138_v60 }
 0x1a1   :  { %v158_v63 = vpack.c.bf16 %v156_v61, %v156_v61 }
 0x1a2   :  { %v143_v0 = vsel %vm142_vm8, %v197_v50, %v139_v62 }
 0x1a3   :  { %161 = vst.msk [vmem:[%s277_s6] sm:$0xf] %vm160_vm6, %v158_v63  ;;  %v145_v1 = vmul.f32 %v143_v0, %v111_v36 }
 0x1a5   :  { %v151_v2 = vmul.f32 %v190_v53, %v145_v1 }
 0x1a7   :  { %v157_v3 = vadd.f32 %v191_v56, %v151_v2 }
 0x1a9   :  { %v159_v4 = vpack.c.bf16 %v157_v3, %v157_v3 }
 0x1ab   :  { %162 = vst.msk [vmem:[%s277_s6 + $0x4] sm:$0xf] %vm160_vm6, %v159_v4 }

// kernel: little_bird_forward.22
= control target key start
LH: loop header
LB: loop body
LE: loop exit
PB: predicated region body
PF: predicated region fallthrough
CT: control target
= control target key end

     0   :  { %vm19_vm0 = vcmask 785408   ;;  %v147_v1 = vmov 0.0   ;;  %vm58_vm1 = vcmask 261120   ;;  %vm112_vm2 = vcmask 781312   ;;  %s203_s1 = inlined_call_operand.vmem [shape: bf16[32,96], index: 1, kind: input, shape index: {}]   ;;  %s204_s2 = inlined_call_operand.vmem [shape: f32[1,96], index: 2, kind: input, shape index: {}]   ;;  %s205_s0 = inlined_call_operand.vmem [shape: bf16[32,32], index: 0, kind: input, shape index: {}]   ;;  %s206_s3 = inlined_call_operand.vmem [shape: bf16[32,96], index: 3, kind: output, shape index: {}]  }
   0x1   :  { %v142_v0 = vld [vmem:[%s203_s1 + $0x8] sm:$0xff]  ;;  %20 = vst.msk [vmem:[#allocation2] sm:$0xff] %vm19_vm0, %v147_v1  ;;  %v141_v2 = vld [vmem:[%s203_s1] sm:$0xff] }
   0x2   :  { %21 = vst.msk [vmem:[#allocation2 + $0x8] sm:$0xff] %vm19_vm0, %v147_v1  ;;  %71 = vmatpush.bf16.msra.mxu0 %v142_v0  ;;  %143 = vmatpush.bf16.msra.mxu1 %v142_v0  ;;  %v139_v3 = vld [vmem:[%s205_s0] sm:$0xff]  ;;  %v140_v4 = vld [vmem:[%s205_s0 + $0x8] sm:$0xff] }
   0x3   :  { %22 = vst.msk [vmem:[#allocation2 + $0x10] sm:$0xff] %vm19_vm0, %v147_v1  ;;  %v146_v13 = vld [vmem:[%s204_s2] ss:$0 sm:$0xff] }
   0x4   :  { %23 = vst.msk [vmem:[#allocation2 + $0x18] sm:$0xff] %vm19_vm0, %v147_v1 }
   0x6   :  { %72 = vmatpush.bf16.msra.mxu0 %v141_v2  ;;  %144 = vmatpush.bf16.msra.mxu1 %v141_v2 }
   0x8   :  { %v24_v5 = vld [vmem:[#allocation2] sm:$0xff] }
   0x9   :  { %137 = vmatmul.msk.bf16.vlgmr.msra.gmra.mxu0 %vm58_vm1, %v139_v3  ;;  %138 = vmatmul.msk.bf16.vlgmr.msra.gmra.mxu1 %vm58_vm1, %v140_v4  ;;  %v25_v11 = vld [vmem:[#allocation2 + $0x8] sm:$0xff] }
   0xa   :  { %v26_v6 = vld [vmem:[#allocation2 + $0x10] sm:$0xff] }
   0xb   :  { %v27_v12 = vld [vmem:[#allocation2 + $0x18] sm:$0xff] }
  0x86   :  { %v74_v7 = vpop.f32.mrf.mxu0  ;;  %v79_v8 = vpop.f32.mrf.mxu1 }
  0x87   :  { %v84_v9 = vadd.f32 %v74_v7, %v24_v5  ;;  %v86_v10 = vadd.f32 %v79_v8, %v26_v6 }
  0x89   :  { %89 = vst.msk [vmem:[#allocation2] sm:$0xff] %vm19_vm0, %v84_v9 }
  0x8a   :  { %91 = vst.msk [vmem:[#allocation2 + $0x10] sm:$0xff] %vm19_vm0, %v86_v10 }
  0x8e   :  { %v76_v14 = vpop.f32.mrf.mxu0  ;;  %v81_v15 = vpop.f32.mrf.mxu1 }
  0x8f   :  { %v85_v16 = vadd.f32 %v76_v14, %v25_v11  ;;  %v87_v17 = vadd.f32 %v81_v15, %v27_v12 }
  0x90   :  { %v96_v18 = vld [vmem:[#allocation2] sm:$0xff] }
  0x91   :  { %v104_v19 = vadd.f32 %v146_v13, %v96_v18  ;;  %v98_v20 = vld [vmem:[#allocation2 + $0x10] sm:$0xff]  ;;  %90 = vst.msk [vmem:[#allocation2 + $0x8] sm:$0xff] %vm19_vm0, %v85_v16 }
  0x92   :  { %v106_v21 = vadd.f32 %v146_v13, %v98_v20  ;;  %92 = vst.msk [vmem:[#allocation2 + $0x18] sm:$0xff] %vm19_vm0, %v87_v17 }
  0x93   :  { %v108_v22 = vpack.c.bf16 %v104_v19, %v104_v19 }
  0x94   :  { %v110_v23 = vpack.c.bf16 %v106_v21, %v106_v21 }
  0x95   :  { %113 = vst.msk [vmem:[%s206_s3] sm:$0xf] %vm112_vm2, %v108_v22 }
  0x96   :  { %115 = vst.msk [vmem:[%s206_s3 + $0x8] sm:$0xf] %vm112_vm2, %v110_v23 }
  0x98   :  { %v97_v24 = vld [vmem:[#allocation2 + $0x8] sm:$0xff] }
  0x99   :  { %v105_v25 = vadd.f32 %v146_v13, %v97_v24  ;;  %v99_v26 = vld [vmem:[#allocation2 + $0x18] sm:$0xff] }
  0x9a   :  { %v107_v27 = vadd.f32 %v146_v13, %v99_v26 }
  0x9b   :  { %v109_v28 = vpack.c.bf16 %v105_v25, %v105_v25 }
  0x9c   :  { %v111_v29 = vpack.c.bf16 %v107_v27, %v107_v27 }
  0x9d   :  { %114 = vst.msk [vmem:[%s206_s3 + $0x4] sm:$0xf] %vm112_vm2, %v109_v28 }
  0x9e   :  { %116 = vst.msk [vmem:[%s206_s3 + $0xc] sm:$0xf] %vm112_vm2, %v111_v29 }

// kernel: little_bird_forward.24
= control target key start
LH: loop header
LB: loop body
LE: loop exit
PB: predicated region body
PF: predicated region fallthrough
CT: control target
= control target key end

     0   :  { %s1201_s21 = smov 0   ;;  %s1203_s22 = smov 0   ;;  %s1319_s0 = inlined_call_operand.vmem [shape: bf16[2,4,16,128], index: 0, kind: input, shape index: {}]   ;;  %s1320_s1 = inlined_call_operand.vmem [shape: bf16[2,4,16,128], index: 1, kind: input, shape index: {}]   ;;  %s1321_s2 = inlined_call_operand.vmem [shape: bf16[2,4,16,128], index: 2, kind: input, shape index: {}]   ;;  %s1322_s3 = inlined_call_operand.vmem [shape: f32[2,1,16], index: 3, kind: input, shape index: {}]   ;;  %s1323_s4 = inlined_call_operand.vmem [shape: bf16[2,4,8,128], index: 4, kind: input, shape index: {}]   ;;  %s1324_s5 = inlined_call_operand.vmem [shape: bf16[2,4,8,128], index: 5, kind: input, shape index: {}]   ;;  %s1325_s6 = inlined_call_operand.vmem [shape: bf16[2,4,16,128], index: 6, kind: output, shape index: {}]  }
   0x1   :  { %s1205_s23 = smov 0   ;;  %s1207_s24 = smov 0  }
   0x2   :  { %s1209_s25 = smov 0  }
   0x3 LB: > { %s38_s26 = sadd.s32 1, %s1153_s23  ;;  %s42_s27 = sadd.s32 1, %s1157_s24  ;;  %s1161_s25 = sphi %s1209_s25, %s16_s25   ;;  %s1157_s24 = sphi %s1207_s24, %s1329_s24   ;;  %s1153_s23 = sphi %s1205_s23, %s1328_s23   ;;  %s1149_s22 = sphi %s1203_s22, %s1327_s22   ;;  %s1145_s21 = sphi %s1201_s21, %s1326_s21  }
   0x4   : > { %p40_p0 = scmp.ge.s32.totalorder %s38_s26, 4  ;;  %p1010_p1 = scmp.ge.s32.totalorder %s1161_s25, 1 }
   0x5   : > { %p344_p2 = scmp.lt.s32.totalorder %s1161_s25, 9 }
   0x6   : > { %s1331_s26 = smov (%p40_p0, %s38_s26), 0  ;;  %s1333_s27 = smov (!%p40_p0, %s42_s27), %s1157_s24 }
   0x7   : > { %p345_p3 = pnand %p1010_p1, %p344_p2  ;;  %p44_p4 = scmp.ge.s32.totalorder %s1333_s27, 2 }
   0x8   : > { %p439_p5 = scmp.lt.s32.totalorder (!%p345_p3), %s1149_s22, 1  ;;  %p441_p6 = scmp.lt.s32.totalorder (!%p345_p3), %s1145_s21, 3 }
   0x9   : > { %s1335_s27 = smov (%p44_p4, %s1333_s27), 0  ;;  %348 = sbr.rel (%p345_p3) target bundleno = 693 (0x2b5), region = 44 }
   0xe   : > { %s1337_s22 = smov (!%p439_p5, %s1149_s22), 1  ;;  %s1339_s21 = smov (!%p441_p6, %s1145_s21), 3  ;;  %vm523_vm0 = vcmask 7168   ;;  %v1163_v4 = vmov -1e+30   ;;  %vm554_vm1 = vcmask 64512  }
   0xf   : > { %s1020_s28 = sshll.u32 %s1337_s22, 2  ;;  %s1012_s29 = sshll.u32 %s1337_s22, 3  ;;  %524 = vst.msk [vmem:[#allocation2] sm:$0xff] %vm523_vm0, %v1163_v4  ;;  %vm677_vm2 = vcmask 130048   ;;  %v1164_v16 = vmov 0   ;;  %v1165_v17 = vmov 0.0  }
  0x10   : > { %s1011_s30 = sshll.u32 %s1339_s21, 1  ;;  %s1235_s7 = sadd.s32 %s1020_s28, %s1339_s21  ;;  %525 = vst.msk [vmem:[#allocation2 + $0x8] sm:$0xff] %vm523_vm0, %v1163_v4  ;;  %1100 = vset.pattern.permute.xlu0 %v1164_v16  ;;  %1101 = vset.pattern.permute.xlu1 %v1164_v16  ;;  %vm617_vm3 = vcmask 1043456  }
  0x11   : > { %s1021_s8 = sshll.u32 %s1235_s7, 2  ;;  %s448_s9 = sadd.s32 %s1012_s29, %s1011_s30  ;;  %1099 = vset.pattern.permute.xlu2 %v1164_v16  ;;  %526 = vst.msk [vmem:[#allocation3] sm:$0xff] %vm523_vm0, %v1165_v17 }
  0x12   : > { %s493_s12 = scalar_lea.vmem %s1323_s4, %s1021_s8  ;;  %s1243_s13 = sshll.u32 %s448_s9, 2  ;;  %527 = vst.msk [vmem:[#allocation3 + $0x8] sm:$0xff] %vm523_vm0, %v1165_v17 }
  0x13   : > { %v530_v0 = vld [vmem:[%s493_s12] sm:$0xf]  ;;  %s464_s16 = scalar_lea.vmem %s1320_s1, %s1243_s13  ;;  %s450_s19 = scalar_lea.vmem %s1319_s0, %s1243_s13 }
  0x14   : > { %545 = vmatpush.bf16.xpose.msra.mxu0 %v530_v0  ;;  %v1049_v1 = vld [vmem:[%s464_s16] sm:$0xff]  ;;  %s485_s28 = scalar_lea.vmem %s1322_s3, %s1337_s22  ;;  %s478_s30 = scalar_lea.vmem %s1321_s2, %s1243_s13 }
  0x15   : > { %668 = vmatpush.bf16.xpose.msra.mxu2 %v1049_v1  ;;  %v1048_v2 = vld [vmem:[%s450_s19] sm:$0xff]  ;;  %s501_s11 = scalar_lea.vmem %s1324_s5, %s1021_s8  ;;  %s514_s12 = scalar_lea.vmem %s1325_s6, %s1243_s13 }
  0x16   : > { %v1047_v3 = vld [vmem:[%s450_s19] sm:$0xff] }
  0x17   : > { %v1102_v7 = vld [vmem:[%s485_s28] ss:$0 sm:$0xff]  ;;  %v553_v22 = vld [vmem:[#allocation2 + $0x8] sm:$0xff] }
  0x18   : > { %v552_v18 = vld [vmem:[#allocation2] sm:$0xff] }
  0x19   : > { %v1050_v34 = vld [vmem:[%s478_s30] sm:$0xff] }
  0x1a   : > { %754 = vmatpush.bf16.msra.mxu3 %v1050_v34  ;;  %v531_v35 = vld [vmem:[%s501_s11] sm:$0xf] }
  0x1b   : > { %546 = vmatmul.bf16.vlgmr.msra.gmra.mxu0 %v1048_v2  ;;  %v619_v36 = vsel %vm617_vm3, %v531_v35, 0 }
  0x1c   : > { %669 = vmatmul.bf16.vlgmr.msra.gmra.mxu2 %v1047_v3  ;;  %628 = vmatpush.bf16.msra.mxu1 %v619_v36  ;;  %v585_v3 = vld [vmem:[#allocation3] sm:$0xff] }
  0x98   : > { %v1259_v5 = vpop.f32.mrf.mxu0 }
  0x99   : > { %v555_v6 = vsel %vm554_vm1, %v1259_v5, -inf }
  0x9a   : > { %556 = vmax.xlane.f32.xlu0 %v555_v6 }
  0x9f   : > { %v670_v9 = vpop.f32.mrf.mxu2 }
  0xa0   : > { %v1263_v8 = vpop.f32.mrf.mxu0  ;;  %v671_v10 = vadd.f32 %v1102_v7, %v670_v9 }
  0xa1   : > { %v558_v11 = vsel %vm554_vm1, %v1263_v8, -inf }
  0xa2   : > { %559 = vmax.xlane.f32.xlu0 %v558_v11  ;;  %v678_v12 = vsel %vm677_vm2, %v671_v10, -inf }
  0xa3   : > { %679 = vmax.xlane.f32.xlu1 %v678_v12 }
  0xa7   : > { %v672_v13 = vpop.f32.mrf.mxu2 }
  0xa8   : > { %v673_v14 = vadd.f32 %v1102_v7, %v672_v13  ;;  %v586_v7 = vld [vmem:[#allocation3 + $0x8] sm:$0xff] }
  0xaa   : > { %v681_v15 = vsel %vm677_vm2, %v673_v14, -inf }
  0xab   : > { %682 = vmax.xlane.f32.xlu1 %v681_v15 }
 0x10d   : > { %v557_v19 = vpop.xlane.xlu0 %556 }
 0x10e   : > { %v561_v20 = vmax.f32 %v552_v18, %v557_v19 }
 0x110   : > { %v563_v21 = vsub.f32 %v552_v18, %v561_v20  ;;  %639 = vst.msk [vmem:[#allocation2] sm:$0xff] %vm523_vm0, %v561_v20  ;;  %571 = vperm.xlu0 %1100, %v561_v20  }
 0x112   : > { %v565_v58 = vmul.f32 1.442695, %v563_v21 }
 0x115   : > { %v560_v23 = vpop.xlane.xlu0 %559 }
 0x116   : > { %v562_v24 = vmax.f32 %v553_v22, %v560_v23  ;;  %v680_v26 = vpop.xlane.xlu1 %679 }
 0x117   : > { %v1272_v25 = vld [vmem:[#allocation2] sm:$0xff] }
 0x118   : > { %v564_v27 = vsub.f32 %v553_v22, %v562_v24  ;;  %640 = vst.msk [vmem:[#allocation2 + $0x8] sm:$0xff] %vm523_vm0, %v562_v24  ;;  %v684_v28 = vmax.f32 %v1272_v25, %v680_v26  ;;  %576 = vperm.xlu1 %1101, %v562_v24  }
 0x11a   : > { %v686_v29 = vsub.f32 %v1272_v25, %v684_v28  ;;  %765 = vst.msk [vmem:[#allocation2] sm:$0xff] %vm523_vm0, %v684_v28  ;;  %694 = vperm.xlu2 %1099, %v684_v28   ;;  %v567_v59 = vmul.f32 1.442695, %v564_v27 }
 0x11c   : > { %v688_v63 = vmul.f32 1.442695, %v686_v29 }
 0x11e   : > { %v683_v31 = vpop.xlane.xlu1 %682 }
 0x11f   : > { %v676_v30 = vld [vmem:[#allocation2 + $0x8] sm:$0xff] }
 0x120   : > { %v685_v32 = vmax.f32 %v676_v30, %v683_v31 }
 0x122   : > { %v687_v33 = vsub.f32 %v676_v30, %v685_v32  ;;  %766 = vst.msk [vmem:[#allocation2 + $0x8] sm:$0xff] %vm523_vm0, %v685_v32  ;;  %699 = vperm.xlu2 %1099, %v685_v32  }
 0x124   : > { %v690_v0 = vmul.f32 1.442695, %v687_v33 }
 0x174   : > { %v695_v37 = vpop.permute.xlu2 %694 }
 0x175   : > { %v702_v38 = vsub.f32 %v671_v10, %v695_v37 }
 0x177   : > { %v704_v39 = vmul.f32 1.442695, %v702_v38 }
 0x179   : > { %1103 = vpow2.f32 %v704_v39 }
 0x17c   : > { %v700_v40 = vpop.permute.xlu2 %699 }
 0x17d   : > { %v703_v41 = vsub.f32 %v673_v14, %v700_v40 }
 0x17f   : > { %v1104_v42 = vpop.eup %1103  ;;  %v706_v43 = vmul.f32 1.442695, %v703_v41 }
 0x180   : > { %v712_v44 = vsel %vm677_vm2, %v1104_v42, 0.0 }
 0x181   : > { %1105 = vpow2.f32 %v706_v43  ;;  %713 = vadd.xlane.f32.xlu0 %v712_v44 }
 0x182   : > { %v572_v45 = vpop.permute.xlu0 %571 }
 0x183   : > { %v579_v46 = vsub.f32 %v1259_v5, %v572_v45 }
 0x185   : > { %v581_v47 = vmul.f32 1.442695, %v579_v46 }
 0x187   : > { %v1106_v48 = vpop.eup %1105  ;;  %1107 = vpow2.f32 %v581_v47 }
 0x188   : > { %v737_v49 = vpack.c.bf16 %v1106_v48, %v1104_v42  ;;  %v715_v62 = vsel %vm677_vm2, %v1106_v48, 0.0 }
 0x18a   : > { %1044 = vmatmul.msk.bf16.vlgmr.msra.gmra.mxu3 %vm677_vm2, %v737_v49  ;;  %v577_v50 = vpop.permute.xlu1 %576 }
 0x18b   : > { %v580_v51 = vsub.f32 %v1263_v8, %v577_v50 }
 0x18d   : > { %v1108_v52 = vpop.eup %1107  ;;  %v583_v53 = vmul.f32 1.442695, %v580_v51 }
 0x18e   : > { %v589_v54 = vsel %vm554_vm1, %v1108_v52, 0.0 }
 0x18f   : > { %1109 = vpow2.f32 %v583_v53  ;;  %590 = vadd.xlane.f32.xlu2 %v589_v54 }
 0x190   : > { %1111 = vpow2.f32 %v565_v58 }
 0x191   : > { %1113 = vpow2.f32 %v567_v59 }
 0x192   : > { %1115 = vpow2.f32 %v688_v63 }
 0x193   : > { %1117 = vpow2.f32 %v690_v0 }
 0x195   : > { %v1110_v55 = vpop.eup %1109 }
 0x196   : > { %v592_v56 = vsel %vm554_vm1, %v1110_v55, 0.0  ;;  %v613_v57 = vpack.c.bf16 %v1110_v55, %v1108_v52  ;;  %v1112_v60 = vpop.eup %1111 }
 0x197   : > { %593 = vadd.xlane.f32.xlu1 %v592_v56  ;;  %v1114_v61 = vpop.eup %1113  ;;  %v587_v4 = vmul.f32 %v1112_v60, %v585_v3 }
 0x198   : > { %1031 = vmatmul.msk.bf16.vlgmr.msra.gmra.mxu1 %vm554_vm1, %v613_v57  ;;  %v1116_v1 = vpop.eup %1115  ;;  %v588_v8 = vmul.f32 %v1114_v61, %v586_v7 }
 0x199   : > { %v1118_v2 = vpop.eup %1117 }
 0x1a7   : > { %603 = vperm.xlu2 %1099, %v1112_v60  }
 0x1b0   : > { %608 = vperm.xlu1 %1101, %v1114_v61  }
 0x1d0   : > { %716 = vadd.xlane.f32.xlu2 %v715_v62 }
 0x1e8   : > { %727 = vperm.xlu2 %1099, %v1116_v1  }
 0x1f0   : > { %732 = vperm.xlu2 %1099, %v1118_v2  }
 0x1f4   : > { %v714_v13 = vpop.xlane.xlu0 %713 }
 0x202   : > { %v591_v5 = vpop.xlane.xlu2 %590 }
 0x203   : > { %v595_v6 = vadd.f32 %v591_v5, %v587_v4 }
 0x205   : > { %597 = vst.msk [vmem:[#allocation3] sm:$0xff] %vm523_vm0, %v595_v6 }
 0x20a   : > { %v594_v9 = vpop.xlane.xlu1 %593  ;;  %v604_v17 = vpop.permute.xlu2 %603 }
 0x20b   : > { %v596_v10 = vadd.f32 %v594_v9, %v588_v8  ;;  %v611_v29 = vmul.f32 0.0, %v604_v17 }
 0x20c   : > { %v708_v11 = vld [vmem:[#allocation3] sm:$0xff] }
 0x20d   : > { %v710_v12 = vmul.f32 %v1116_v1, %v708_v11  ;;  %598 = vst.msk [vmem:[#allocation3 + $0x8] sm:$0xff] %vm523_vm0, %v596_v10  ;;  %v756_v27 = vpop.f32.mrf.mxu3 }
 0x20f   : > { %v718_v14 = vadd.f32 %v714_v13, %v710_v12 }
 0x211   : > { %721 = vst.msk [vmem:[#allocation3] sm:$0xff] %vm523_vm0, %v718_v14 }
 0x214   : > { %v709_v18 = vld [vmem:[#allocation3 + $0x8] sm:$0xff] }
 0x215   : > { %v711_v19 = vmul.f32 %v1118_v2, %v709_v18  ;;  %v630_v24 = vpop.f32.mrf.mxu1  ;;  %v758_v36 = vpop.f32.mrf.mxu3 }
 0x216   : > { %v635_v32 = vadd.f32 %v630_v24, %v611_v29 }
 0x218   : > { %v772_v15 = vld [vmem:[#allocation3] sm:$0xff] }
 0x219   : > { %1119 = vrcp.f32 %v772_v15 }
 0x21d   : > { %v632_v30 = vpop.f32.mrf.mxu1 }
 0x21f   : > { %v1120_v16 = vpop.eup %1119 }
 0x220   : > { %778 = vperm.xlu0 %1100, %v1120_v16  }
 0x222   : > { %v609_v26 = vpop.permute.xlu1 %608 }
 0x223   : > { %v612_v28 = vmul.f32 0.0, %v609_v26 }
 0x225   : > { %v636_v33 = vadd.f32 %v632_v30, %v612_v28 }
 0x243   : > { %v717_v20 = vpop.xlane.xlu2 %716 }
 0x244   : > { %v719_v21 = vadd.f32 %v717_v20, %v711_v19 }
 0x246   : > { %722 = vst.msk [vmem:[#allocation3 + $0x8] sm:$0xff] %vm523_vm0, %v719_v21 }
 0x24b   : > { %v728_v25 = vpop.permute.xlu2 %727 }
 0x24c   : > { %v735_v34 = vmul.f32 %v728_v25, %v635_v32 }
 0x24d   : > { %v773_v22 = vld [vmem:[#allocation3 + $0x8] sm:$0xff] }
 0x24e   : > { %1121 = vrcp.f32 %v773_v22  ;;  %v761_v38 = vadd.f32 %v756_v27, %v735_v34 }
 0x253   : > { %v733_v31 = vpop.permute.xlu2 %732 }
 0x254   : > { %v1122_v23 = vpop.eup %1121  ;;  %v736_v35 = vmul.f32 %v733_v31, %v636_v33 }
 0x255   : > { %783 = vperm.xlu2 %1099, %v1122_v23  }
 0x256   : > { %v762_v39 = vadd.f32 %v758_v36, %v736_v35 }
 0x292   : > { %v779_v37 = vpop.permute.xlu0 %778 }
 0x293   : > { %v786_v41 = vmul.f32 %v779_v37, %v761_v38 }
 0x2af   : > { %v784_v40 = vpop.permute.xlu2 %783 }
 0x2b0   : > { %v787_v42 = vmul.f32 %v784_v40, %v762_v39 }
 0x2b2   : > { %v1054_v43 = vpack.c.bf16 %v787_v42, %v786_v41 }
 0x2b4   : > { %1055 = vst [vmem:[%s514_s12] sm:$0xff] %v1054_v43  }
 0x2b5 PF: > { %s16_s25 = sadd.s32 1, %s1161_s25   ;;  %s1326_s21 = smov %s1153_s23 }
 0x2b6   : > { %p13_p7 = scmp.ge.s32.totalorder %s16_s25, 10   ;;  %s1327_s22 = smov %s1157_s24 }
 0x2b7   : > { %s1328_s23 = smov %s1331_s26  ;;  %s1329_s24 = smov %s1335_s27 }
 0x2b8   :  { %15 = sbr.rel (!%p13_p7) target bundleno = 3 (0x3), region = 97 }

// kernel: little_bird_forward.25
= control target key start
LH: loop header
LB: loop body
LE: loop exit
PB: predicated region body
PF: predicated region fallthrough
CT: control target
= control target key end

     0   :  { %vm28_vm0 = vcmask 261120   ;;  %v300_v1 = vmov 0.0   ;;  %v301_v40 = vmov 32.0   ;;  %vm243_vm10 = vcmask 257024   ;;  %s413_s1 = inlined_call_operand.vmem [shape: bf16[32,32], index: 1, kind: input, shape index: {}]   ;;  %s414_s0 = inlined_call_operand.vmem [shape: bf16[32,32], index: 0, kind: input, shape index: {}]   ;;  %s415_s2 = inlined_call_operand.vmem [shape: f32[1,32], index: 2, kind: input, shape index: {}]   ;;  %s416_s3 = inlined_call_operand.vmem [shape: bf16[32,32], index: 3, kind: input, shape index: {}]   ;;  %s417_s4 = inlined_call_operand.vmem [shape: f32[1,32], index: 4, kind: input, shape index: {}]   ;;  %s418_s5 = inlined_call_operand.vmem [shape: f32[1,32], index: 5, kind: input, shape index: {}]   ;;  %s419_s6 = inlined_call_operand.vmem [shape: bf16[32,32], index: 6, kind: output, shape index: {}]  }
   0x1   :  { %v273_v0 = vld [vmem:[%s413_s1 + $0x8] sm:$0xff]  ;;  %29 = vst.msk [vmem:[#allocation2] sm:$0xff] %vm28_vm0, %v300_v1  ;;  %v272_v2 = vld [vmem:[%s413_s1] sm:$0xff]  ;;  %290 = vrcp.f32 %v301_v40 }
   0x2   :  { %30 = vst.msk [vmem:[#allocation2 + $0x8] sm:$0xff] %vm28_vm0, %v300_v1  ;;  %80 = vmatpush.bf16.msra.mxu0 %v273_v0  ;;  %283 = vmatpush.bf16.msra.mxu1 %v273_v0  ;;  %v270_v3 = vld [vmem:[%s414_s0] sm:$0xff]  ;;  %v271_v4 = vld [vmem:[%s414_s0 + $0x8] sm:$0xff] }
   0x3   :  { %31 = vst.msk [vmem:[#allocation2 + $0x10] sm:$0xff] %vm28_vm0, %v300_v1  ;;  %v275_v13 = vld [vmem:[%s416_s3] sm:$0xff]   ;;  %v282_v15 = vld [vmem:[%s416_s3 + $0x8] sm:$0xff]  }
   0x4   :  { %32 = vst.msk [vmem:[#allocation2 + $0x18] sm:$0xff] %vm28_vm0, %v300_v1  ;;  %v287_v14 = vld [vmem:[%s415_s2] ss:$0 sm:$0xff]  ;;  %v276_v20 = vunpack.c.l.bf16 %v275_v13  ;;  %v280_v21 = vunpack.c.l.bf16 %v282_v15  ;;  %v277_v30 = vunpack.c.h.bf16 %v275_v13  ;;  %v281_v31 = vunpack.c.h.bf16 %v282_v15 }
   0x6   :  { %81 = vmatpush.bf16.msra.mxu0 %v272_v2  ;;  %284 = vmatpush.bf16.msra.mxu1 %v272_v2 }
   0x7   :  { %v291_v41 = vpop.eup %290 }
   0x8   :  { %v33_v5 = vld [vmem:[#allocation2] sm:$0xff]  ;;  %v141_v42 = vmul.f32 32.0, %v291_v41  ;;  %vm145_vm1 = vweird.f32 %v291_v41 }
   0x9   :  { %268 = vmatmul.msk.bf16.vlgmr.msra.gmra.mxu0 %vm28_vm0, %v270_v3  ;;  %269 = vmatmul.msk.bf16.vlgmr.msra.gmra.mxu1 %vm28_vm0, %v271_v4  ;;  %v34_v11 = vld [vmem:[#allocation2 + $0x8] sm:$0xff] }
   0xa   :  { %v35_v6 = vld [vmem:[#allocation2 + $0x10] sm:$0xff]  ;;  %v142_v43 = vsub.f32 1.0, %v141_v42 }
   0xb   :  { %v36_v12 = vld [vmem:[#allocation2 + $0x18] sm:$0xff] }
   0xc   :  { %v143_v44 = vmul.f32 %v291_v41, %v142_v43 }
   0xe   :  { %v144_v45 = vadd.f32 %v291_v41, %v143_v44 }
  0x10   :  { %v146_v46 = vsel %vm145_vm1, %v291_v41, %v144_v45 }
  0x86   :  { %v83_v7 = vpop.f32.mrf.mxu0  ;;  %v88_v8 = vpop.f32.mrf.mxu1 }
  0x87   :  { %v93_v9 = vadd.f32 %v83_v7, %v33_v5  ;;  %v95_v10 = vadd.f32 %v88_v8, %v35_v6 }
  0x89   :  { %97 = vst.msk [vmem:[#allocation2] sm:$0xff] %vm28_vm0, %v93_v9 }
  0x8a   :  { %99 = vst.msk [vmem:[#allocation2 + $0x10] sm:$0xff] %vm28_vm0, %v95_v10 }
  0x8e   :  { %v85_v16 = vpop.f32.mrf.mxu0  ;;  %v90_v17 = vpop.f32.mrf.mxu1 }
  0x8f   :  { %v94_v18 = vadd.f32 %v85_v16, %v34_v11  ;;  %v96_v19 = vadd.f32 %v90_v17, %v36_v12 }
  0x90   :  { %v104_v22 = vld [vmem:[#allocation2] sm:$0xff] }
  0x91   :  { %98 = vst.msk [vmem:[#allocation2 + $0x8] sm:$0xff] %vm28_vm0, %v94_v18  ;;  %v106_v23 = vld [vmem:[#allocation2 + $0x10] sm:$0xff]  ;;  %v112_v24 = vadd.f32 %v287_v14, %v104_v22 }
  0x92   :  { %100 = vst.msk [vmem:[#allocation2 + $0x18] sm:$0xff] %vm28_vm0, %v96_v19  ;;  %v114_v25 = vadd.f32 %v287_v14, %v106_v23 }
  0x93   :  { %v124_v26 = vadd.f32 %v276_v20, %v112_v24 }
  0x94   :  { %v126_v27 = vadd.f32 %v280_v21, %v114_v25 }
  0x95   :  { %v128_v28 = vsel %vm28_vm0, %v124_v26, 0.0 }
  0x96   :  { %v134_v29 = vsel %vm28_vm0, %v126_v27, 0.0  ;;  %129 = vadd.xlane.f32.xlu0 %v128_v28 }
  0x97   :  { %135 = vadd.xlane.f32.xlu1 %v134_v29  ;;  %v288_v29 = vld [vmem:[%s417_s4] ss:$0 sm:$0xff] }
  0x98   :  { %v105_v32 = vld [vmem:[#allocation2 + $0x8] sm:$0xff] }
  0x99   :  { %v107_v33 = vld [vmem:[#allocation2 + $0x18] sm:$0xff]  ;;  %v113_v34 = vadd.f32 %v287_v14, %v105_v32 }
  0x9a   :  { %v115_v35 = vadd.f32 %v287_v14, %v107_v33 }
  0x9b   :  { %v125_v36 = vadd.f32 %v277_v30, %v113_v34  ;;  %v289_v34 = vld [vmem:[%s418_s5] ss:$0 sm:$0xff] }
  0x9c   :  { %v127_v37 = vadd.f32 %v281_v31, %v115_v35 }
  0x9d   :  { %v131_v38 = vsel %vm28_vm0, %v125_v36, 0.0 }
  0x9e   :  { %v137_v39 = vsel %vm28_vm0, %v127_v37, 0.0  ;;  %132 = vadd.xlane.f32.xlu0 %v131_v38 }
  0x9f   :  { %138 = vadd.xlane.f32.xlu1 %v137_v39 }
 0x109   :  { %v130_v47 = vpop.xlane.xlu0 %129 }
 0x10a   :  { %v136_v48 = vpop.xlane.xlu1 %135  ;;  %v147_v49 = vmul.f32 %v146_v46, %v130_v47 }
 0x10b   :  { %v149_v50 = vmul.f32 %v146_v46, %v136_v48 }
 0x10c   :  { %v151_v51 = vsub.f32 %v124_v26, %v147_v49 }
 0x10d   :  { %v372_v52 = vsub.f32 %v126_v27, %v149_v50 }
 0x10e   :  { %v155_v53 = vmul.f32 %v151_v51, %v151_v51 }
 0x10f   :  { %v157_v54 = vmul.f32 %v372_v52, %v372_v52 }
 0x110   :  { %v159_v55 = vsel %vm28_vm0, %v155_v53, 0.0 }
 0x111   :  { %160 = vadd.xlane.f32.xlu2 %v159_v55  ;;  %v165_v56 = vsel %vm28_vm0, %v157_v54, 0.0  ;;  %v133_v57 = vpop.xlane.xlu0 %132 }
 0x112   :  { %v139_v58 = vpop.xlane.xlu1 %138  ;;  %166 = vadd.xlane.f32.xlu0 %v165_v56  ;;  %v148_v59 = vmul.f32 %v146_v46, %v133_v57 }
 0x113   :  { %v150_v60 = vmul.f32 %v146_v46, %v139_v58 }
 0x114   :  { %v378_v61 = vsub.f32 %v125_v36, %v148_v59 }
 0x115   :  { %v380_v62 = vsub.f32 %v127_v37, %v150_v60 }
 0x116   :  { %v156_v63 = vmul.f32 %v378_v61, %v378_v61 }
 0x117   :  { %v158_v0 = vmul.f32 %v380_v62, %v380_v62 }
 0x118   :  { %v162_v1 = vsel %vm28_vm0, %v156_v63, 0.0 }
 0x119   :  { %v168_v2 = vsel %vm28_vm0, %v158_v0, 0.0  ;;  %163 = vadd.xlane.f32.xlu2 %v162_v1 }
 0x11a   :  { %169 = vadd.xlane.f32.xlu1 %v168_v2 }
 0x184   :  { %v161_v3 = vpop.xlane.xlu2 %160 }
 0x185   :  { %v171_v4 = vmul.f32 %v161_v3, %v146_v46  ;;  %v167_v5 = vpop.xlane.xlu0 %166 }
 0x186   :  { %v173_v6 = vmul.f32 %v167_v5, %v146_v46 }
 0x187   :  { %v175_v7 = vadd.f32 1e-05, %v171_v4 }
 0x188   :  { %v177_v8 = vadd.f32 1e-05, %v173_v6 }
 0x189   :  { %292 = vrsqrt.f32 %v175_v7  ;;  %vm185_vm4 = vweird.f32 %v175_v7 }
 0x18a   :  { %294 = vrsqrt.f32 %v177_v8  ;;  %vm205_vm6 = vweird.f32 %v177_v8 }
 0x18c   :  { %v164_v9 = vpop.xlane.xlu2 %163 }
 0x18d   :  { %v170_v10 = vpop.xlane.xlu1 %169  ;;  %v172_v11 = vmul.f32 %v164_v9, %v146_v46 }
 0x18e   :  { %v174_v12 = vmul.f32 %v170_v10, %v146_v46 }
 0x18f   :  { %v293_v13 = vpop.eup %292  ;;  %v176_v14 = vadd.f32 1e-05, %v172_v11 }
 0x190   :  { %v295_v15 = vpop.eup %294  ;;  %v180_v16 = vmul.f32 %v293_v13, %v175_v7  ;;  %v178_v17 = vadd.f32 1e-05, %v174_v12  ;;  %vm186_vm2 = vweird.f32 %v293_v13 }
 0x191   :  { %v200_v18 = vmul.f32 %v295_v15, %v177_v8  ;;  %296 = vrsqrt.f32 %v176_v14  ;;  %vm206_vm3 = vweird.f32 %v295_v15  ;;  %vm187_vm5 = vmor %vm185_vm4, %vm186_vm2  ;;  %vm195_vm11 = vweird.f32 %v176_v14 }
 0x192   :  { %v181_v19 = vmul.f32 %v293_v13, %v180_v16  ;;  %298 = vrsqrt.f32 %v178_v17  ;;  %vm207_vm7 = vmor %vm205_vm6, %vm206_vm3  ;;  %vm215_vm12 = vweird.f32 %v178_v17 }
 0x193   :  { %v201_v20 = vmul.f32 %v295_v15, %v200_v18 }
 0x194   :  { %v182_v21 = vmul.f32 0.5, %v181_v19 }
 0x195   :  { %v202_v22 = vmul.f32 0.5, %v201_v20 }
 0x196   :  { %v183_v23 = vsub.f32 1.5, %v182_v21 }
 0x197   :  { %v297_v24 = vpop.eup %296  ;;  %v203_v25 = vsub.f32 1.5, %v202_v22 }
 0x198   :  { %v299_v26 = vpop.eup %298  ;;  %v184_v27 = vmul.f32 %v293_v13, %v183_v23  ;;  %v190_v28 = vmul.f32 %v297_v24, %v176_v14  ;;  %vm196_vm8 = vweird.f32 %v297_v24 }
 0x199   :  { %v204_v30 = vmul.f32 %v295_v15, %v203_v25  ;;  %v210_v31 = vmul.f32 %v299_v26, %v178_v17  ;;  %vm216_vm9 = vweird.f32 %v299_v26  ;;  %vm197_vm13 = vmor %vm195_vm11, %vm196_vm8 }
 0x19a   :  { %v188_v32 = vsel %vm187_vm5, %v293_v13, %v184_v27  ;;  %v191_v33 = vmul.f32 %v297_v24, %v190_v28  ;;  %vm217_vm14 = vmor %vm215_vm12, %vm216_vm9 }
 0x19b   :  { %v219_v35 = vmul.f32 %v188_v32, %v151_v51  ;;  %v208_v36 = vsel %vm207_vm7, %v295_v15, %v204_v30  ;;  %v211_v37 = vmul.f32 %v299_v26, %v210_v31 }
 0x19c   :  { %v221_v38 = vmul.f32 %v208_v36, %v372_v52  ;;  %v192_v39 = vmul.f32 0.5, %v191_v33 }
 0x19d   :  { %v227_v40 = vmul.f32 %v288_v29, %v219_v35  ;;  %v212_v41 = vmul.f32 0.5, %v211_v37 }
 0x19e   :  { %v229_v42 = vmul.f32 %v288_v29, %v221_v38  ;;  %v193_v43 = vsub.f32 1.5, %v192_v39 }
 0x19f   :  { %v235_v44 = vadd.f32 %v289_v34, %v227_v40  ;;  %v213_v45 = vsub.f32 1.5, %v212_v41 }
 0x1a0   :  { %v237_v46 = vadd.f32 %v289_v34, %v229_v42  ;;  %v194_v47 = vmul.f32 %v297_v24, %v193_v43 }
 0x1a1   :  { %v239_v48 = vpack.c.bf16 %v235_v44, %v235_v44  ;;  %v214_v49 = vmul.f32 %v299_v26, %v213_v45 }
 0x1a2   :  { %v241_v50 = vpack.c.bf16 %v237_v46, %v237_v46  ;;  %v198_v51 = vsel %vm197_vm13, %v297_v24, %v194_v47 }
 0x1a3   :  { %244 = vst.msk [vmem:[%s419_s6] sm:$0xf] %vm243_vm10, %v239_v48  ;;  %v218_v52 = vsel %vm217_vm14, %v299_v26, %v214_v49  ;;  %v220_v53 = vmul.f32 %v198_v51, %v378_v61 }
 0x1a4   :  { %246 = vst.msk [vmem:[%s419_s6 + $0x8] sm:$0xf] %vm243_vm10, %v241_v50  ;;  %v222_v54 = vmul.f32 %v218_v52, %v380_v62 }
 0x1a5   :  { %v228_v55 = vmul.f32 %v288_v29, %v220_v53 }
 0x1a6   :  { %v230_v56 = vmul.f32 %v288_v29, %v222_v54 }
 0x1a7   :  { %v236_v57 = vadd.f32 %v289_v34, %v228_v55 }
 0x1a8   :  { %v238_v58 = vadd.f32 %v289_v34, %v230_v56 }
 0x1a9   :  { %v240_v59 = vpack.c.bf16 %v236_v57, %v236_v57 }
 0x1aa   :  { %v242_v60 = vpack.c.bf16 %v238_v58, %v238_v58 }
 0x1ab   :  { %245 = vst.msk [vmem:[%s419_s6 + $0x4] sm:$0xf] %vm243_vm10, %v240_v59 }
 0x1ac   :  { %247 = vst.msk [vmem:[%s419_s6 + $0xc] sm:$0xf] %vm243_vm10, %v242_v60 }

// kernel: little_bird_forward.26
= control target key start
LH: loop header
LB: loop body
LE: loop exit
PB: predicated region body
PF: predicated region fallthrough
CT: control target
= control target key end

     0   :  { %vm31_vm0 = vcmask 261120   ;;  %v438_v23 = vmov 0.0   ;;  %vm170_vm1 = vcmask 523264   ;;  %vm346_vm7 = vcmask 257024   ;;  %s571_s1 = inlined_call_operand.vmem [shape: bf16[32,64], index: 1, kind: input, shape index: {}]   ;;  %s572_s2 = inlined_call_operand.vmem [shape: f32[1,64], index: 2, kind: input, shape index: {}]   ;;  %s573_s0 = inlined_call_operand.vmem [shape: bf16[32,32], index: 0, kind: input, shape index: {}]   ;;  %s574_s3 = inlined_call_operand.vmem [shape: bf16[64,32], index: 3, kind: input, shape index: {}]   ;;  %s575_s4 = inlined_call_operand.vmem [shape: f32[1,32], index: 4, kind: input, shape index: {}]   ;;  %s576_s5 = inlined_call_operand.vmem [shape: f32[1,32], index: 5, kind: input, shape index: {}]   ;;  %s577_s6 = inlined_call_operand.vmem [shape: f32[1,32], index: 6, kind: input, shape index: {}]   ;;  %s578_s7 = inlined_call_operand.vmem [shape: bf16[32,32], index: 7, kind: output, shape index: {}]  }
   0x1   :  { %v394_v0 = vld [vmem:[%s571_s1 + $0x8] sm:$0xff]  ;;  %v393_v1 = vld [vmem:[%s571_s1] sm:$0xff]  ;;  %v398_v4 = vld [vmem:[%s574_s3 + $0x18] sm:$0xff]  ;;  %32 = vst.msk [vmem:[#allocation2] sm:$0xff] %vm31_vm0, %v438_v23 }
   0x2   :  { %83 = vmatpush.bf16.msra.mxu0 %v394_v0  ;;  %408 = vmatpush.bf16.msra.mxu3 %v394_v0  ;;  %v391_v2 = vld [vmem:[%s573_s0] sm:$0xff]  ;;  %v392_v3 = vld [vmem:[%s573_s0 + $0x8] sm:$0xff]  ;;  %v397_v5 = vld [vmem:[%s574_s3 + $0x10] sm:$0xff]  ;;  %33 = vst.msk [vmem:[#allocation2 + $0x8] sm:$0xff] %vm31_vm0, %v438_v23 }
   0x3   :  { %181 = vmatpush.bf16.msra.mxu1 %v398_v4  ;;  %410 = vmatpush.bf16.msra.mxu2 %v398_v4  ;;  %v396_v6 = vld [vmem:[%s574_s3 + $0x8] sm:$0xff]  ;;  %v416_v7 = vld [vmem:[%s572_s2] ss:$0 sm:$0xff]  ;;  %34 = vst.msk [vmem:[#allocation2 + $0x10] sm:$0xff] %vm31_vm0, %v438_v23 }
   0x4   :  { %v395_v8 = vld [vmem:[%s574_s3] sm:$0xff]  ;;  %35 = vst.msk [vmem:[#allocation2 + $0x18] sm:$0xff] %vm31_vm0, %v438_v23 }
   0x5   :  { %v400_v60 = vld [vmem:[%s573_s0] sm:$0xff]  }
   0x6   :  { %84 = vmatpush.bf16.msra.mxu0 %v393_v1  ;;  %409 = vmatpush.bf16.msra.mxu3 %v393_v1  ;;  %v417_v61 = vld [vmem:[%s575_s4] ss:$0 sm:$0xff]  ;;  %v401_v0 = vunpack.c.l.bf16 %v400_v60 }
   0x7   :  { %182 = vmatpush.bf16.msra.mxu1 %v397_v5  ;;  %411 = vmatpush.bf16.msra.mxu2 %v397_v5 }
   0x8   :  { %v132_v56 = vld [vmem:[#allocation2] sm:$0xff] }
   0x9   :  { %371 = vmatmul.msk.bf16.vlgmr.msra.gmra.mxu0 %vm31_vm0, %v391_v2  ;;  %372 = vmatmul.msk.bf16.vlgmr.msra.gmra.mxu3 %vm31_vm0, %v392_v3  ;;  %v133_v59 = vld [vmem:[#allocation2 + $0x8] sm:$0xff] }
   0xa   :  { %v134_v1 = vld [vmem:[#allocation2 + $0x10] sm:$0xff] }
   0xb   :  { %183 = vmatpush.bf16.msra.mxu1 %v396_v6  ;;  %412 = vmatpush.bf16.msra.mxu2 %v396_v6 }
   0xf   :  { %184 = vmatpush.bf16.msra.mxu1 %v395_v8  ;;  %413 = vmatpush.bf16.msra.mxu2 %v395_v8  ;;  %v402_v8 = vunpack.c.h.bf16 %v400_v60 }
  0x86   :  { %v86_v9 = vpop.f32.mrf.mxu0 }
  0x87   :  { %v87_v10 = vadd.f32 %v416_v7, %v86_v9  ;;  %v135_v9 = vld [vmem:[#allocation2 + $0x18] sm:$0xff] }
  0x89   :  { %v96_v11 = vmul.f32 %v87_v10, %v87_v10 }
  0x8b   :  { %v100_v12 = vmul.f32 %v96_v11, %v87_v10  ;;  %v407_v11 = vld [vmem:[%s573_s0 + $0x8] sm:$0xff]  }
  0x8c   :  { %v91_v13 = vpop.f32.mrf.mxu3 }
  0x8d   :  { %v104_v14 = vmul.f32 0.044715, %v100_v12  ;;  %v92_v15 = vadd.f32 %v416_v7, %v91_v13 }
  0x8e   :  { %v88_v16 = vpop.f32.mrf.mxu0 }
  0x8f   :  { %v108_v17 = vadd.f32 %v104_v14, %v87_v10  ;;  %v98_v18 = vmul.f32 %v92_v15, %v92_v15  ;;  %v89_v19 = vadd.f32 %v416_v7, %v88_v16  ;;  %v405_v16 = vunpack.c.l.bf16 %v407_v11 }
  0x91   :  { %v112_v20 = vmul.f32 0.7978846, %v108_v17  ;;  %v102_v21 = vmul.f32 %v98_v18, %v92_v15  ;;  %v97_v22 = vmul.f32 %v89_v19, %v89_v19 }
  0x93   :  { %v106_v24 = vmul.f32 0.044715, %v102_v21  ;;  %v101_v25 = vmul.f32 %v97_v22, %v89_v19  ;;  %420 = vtanh.f32 %v112_v20  ;;  %v406_v22 = vunpack.c.h.bf16 %v407_v11 }
  0x94   :  { %v93_v26 = vpop.f32.mrf.mxu3 }
  0x95   :  { %v110_v27 = vadd.f32 %v106_v24, %v92_v15  ;;  %v105_v28 = vmul.f32 0.044715, %v101_v25  ;;  %v94_v29 = vadd.f32 %v416_v7, %v93_v26 }
  0x97   :  { %v114_v30 = vmul.f32 0.7978846, %v110_v27  ;;  %v109_v31 = vadd.f32 %v105_v28, %v89_v19  ;;  %v99_v32 = vmul.f32 %v94_v29, %v94_v29  ;;  %v439_v27 = vmov 32.0  }
  0x99   :  { %v113_v33 = vmul.f32 0.7978846, %v109_v31  ;;  %v103_v34 = vmul.f32 %v99_v32, %v94_v29  ;;  %422 = vtanh.f32 %v114_v30  ;;  %v421_v35 = vpop.eup %420 }
  0x9a   :  { %v120_v38 = vadd.f32 1.0, %v421_v35 }
  0x9b   :  { %424 = vtanh.f32 %v113_v33  ;;  %v107_v36 = vmul.f32 0.044715, %v103_v34 }
  0x9c   :  { %v124_v43 = vmul.f32 0.5, %v120_v38 }
  0x9d   :  { %v111_v37 = vadd.f32 %v107_v36, %v94_v29 }
  0x9e   :  { %v128_v46 = vmul.f32 %v124_v43, %v87_v10 }
  0x9f   :  { %v115_v39 = vmul.f32 0.7978846, %v111_v37  ;;  %v423_v40 = vpop.eup %422 }
  0xa0   :  { %v122_v45 = vadd.f32 1.0, %v423_v40 }
  0xa1   :  { %v425_v41 = vpop.eup %424  ;;  %426 = vtanh.f32 %v115_v39 }
  0xa2   :  { %v121_v42 = vadd.f32 1.0, %v425_v41  ;;  %v126_v51 = vmul.f32 0.5, %v122_v45  ;;  %428 = vrcp.f32 %v439_v27 }
  0xa4   :  { %v125_v44 = vmul.f32 0.5, %v121_v42  ;;  %v130_v53 = vmul.f32 %v126_v51, %v92_v15 }
  0xa6   :  { %v129_v47 = vmul.f32 %v125_v44, %v89_v19 }
  0xa7   :  { %v427_v48 = vpop.eup %426 }
  0xa8   :  { %v136_v49 = vpack.c.bf16 %v129_v47, %v128_v46  ;;  %v123_v50 = vadd.f32 1.0, %v427_v48  ;;  %v429_v28 = vpop.eup %428 }
  0xa9   :  { %vm248_vm2 = vweird.f32 %v429_v28 }
  0xaa   :  { %389 = vmatmul.msk.bf16.vlgmr.msra.gmra.mxu1 %vm170_vm1, %v136_v49  ;;  %v127_v52 = vmul.f32 0.5, %v123_v50 }
  0xac   :  { %v131_v54 = vmul.f32 %v127_v52, %v94_v29  ;;  %v244_v29 = vmul.f32 32.0, %v429_v28 }
  0xae   :  { %v137_v55 = vpack.c.bf16 %v131_v54, %v130_v53  ;;  %v245_v30 = vsub.f32 1.0, %v244_v29 }
  0xb0   :  { %390 = vmatmul.msk.bf16.vlgmr.msra.gmra.mxu2 %vm170_vm1, %v137_v55  ;;  %v246_v31 = vmul.f32 %v429_v28, %v245_v30 }
  0xb2   :  { %v247_v32 = vadd.f32 %v429_v28, %v246_v31 }
  0xb4   :  { %v249_v33 = vsel %vm248_vm2, %v429_v28, %v247_v32 }
 0x127   :  { %v186_v57 = vpop.f32.mrf.mxu1 }
 0x128   :  { %v196_v58 = vadd.f32 %v186_v57, %v132_v56 }
 0x12a   :  { %200 = vst.msk [vmem:[#allocation2] sm:$0xff] %vm31_vm0, %v196_v58 }
 0x12f   :  { %v188_v62 = vpop.f32.mrf.mxu1 }
 0x130   :  { %v197_v63 = vadd.f32 %v188_v62, %v133_v59 }
 0x131   :  { %v207_v2 = vld [vmem:[#allocation2] sm:$0xff] }
 0x132   :  { %201 = vst.msk [vmem:[#allocation2 + $0x8] sm:$0xff] %vm31_vm0, %v197_v63  ;;  %v215_v3 = vadd.f32 %v417_v61, %v207_v2 }
 0x133   :  { %v191_v4 = vpop.f32.mrf.mxu2 }
 0x134   :  { %v198_v5 = vadd.f32 %v191_v4, %v134_v1  ;;  %v227_v6 = vadd.f32 %v401_v0, %v215_v3 }
 0x136   :  { %202 = vst.msk [vmem:[#allocation2 + $0x10] sm:$0xff] %vm31_vm0, %v198_v5  ;;  %v231_v7 = vsel %vm31_vm0, %v227_v6, 0.0 }
 0x137   :  { %232 = vadd.xlane.f32.xlu0 %v231_v7 }
 0x139   :  { %v208_v10 = vld [vmem:[#allocation2 + $0x8] sm:$0xff] }
 0x13a   :  { %v216_v12 = vadd.f32 %v417_v61, %v208_v10 }
 0x13b   :  { %v193_v13 = vpop.f32.mrf.mxu2 }
 0x13c   :  { %v199_v14 = vadd.f32 %v193_v13, %v135_v9  ;;  %v228_v15 = vadd.f32 %v402_v8, %v216_v12  ;;  %v418_v8 = vld [vmem:[%s576_s5] ss:$0 sm:$0xff] }
 0x13d   :  { %v209_v17 = vld [vmem:[#allocation2 + $0x10] sm:$0xff]  ;;  %v419_v13 = vld [vmem:[%s577_s6] ss:$0 sm:$0xff] }
 0x13e   :  { %203 = vst.msk [vmem:[#allocation2 + $0x18] sm:$0xff] %vm31_vm0, %v199_v14  ;;  %v234_v18 = vsel %vm31_vm0, %v228_v15, 0.0  ;;  %v217_v19 = vadd.f32 %v417_v61, %v209_v17 }
 0x13f   :  { %235 = vadd.xlane.f32.xlu0 %v234_v18 }
 0x140   :  { %v229_v20 = vadd.f32 %v405_v16, %v217_v19 }
 0x142   :  { %v237_v21 = vsel %vm31_vm0, %v229_v20, 0.0 }
 0x143   :  { %238 = vadd.xlane.f32.xlu1 %v237_v21 }
 0x145   :  { %v210_v23 = vld [vmem:[#allocation2 + $0x18] sm:$0xff] }
 0x146   :  { %v218_v24 = vadd.f32 %v417_v61, %v210_v23 }
 0x148   :  { %v230_v25 = vadd.f32 %v406_v22, %v218_v24 }
 0x14a   :  { %v240_v26 = vsel %vm31_vm0, %v230_v25, 0.0 }
 0x14b   :  { %241 = vadd.xlane.f32.xlu1 %v240_v26 }
 0x1aa   :  { %v233_v34 = vpop.xlane.xlu0 %232 }
 0x1ab   :  { %v250_v35 = vmul.f32 %v249_v33, %v233_v34 }
 0x1ad   :  { %v254_v36 = vsub.f32 %v227_v6, %v250_v35 }
 0x1af   :  { %v258_v37 = vmul.f32 %v254_v36, %v254_v36 }
 0x1b1   :  { %v262_v38 = vsel %vm31_vm0, %v258_v37, 0.0 }
 0x1b2   :  { %263 = vadd.xlane.f32.xlu2 %v262_v38  ;;  %v236_v39 = vpop.xlane.xlu0 %235 }
 0x1b3   :  { %v251_v40 = vmul.f32 %v249_v33, %v236_v39 }
 0x1b5   :  { %v531_v41 = vsub.f32 %v228_v15, %v251_v40 }
 0x1b6   :  { %v239_v42 = vpop.xlane.xlu1 %238 }
 0x1b7   :  { %v252_v43 = vmul.f32 %v249_v33, %v239_v42  ;;  %v259_v44 = vmul.f32 %v531_v41, %v531_v41 }
 0x1b9   :  { %v535_v45 = vsub.f32 %v229_v20, %v252_v43  ;;  %v265_v46 = vsel %vm31_vm0, %v259_v44, 0.0 }
 0x1ba   :  { %266 = vadd.xlane.f32.xlu2 %v265_v46 }
 0x1bb   :  { %v260_v47 = vmul.f32 %v535_v45, %v535_v45 }
 0x1bd   :  { %v268_v48 = vsel %vm31_vm0, %v260_v47, 0.0 }
 0x1be   :  { %v242_v49 = vpop.xlane.xlu1 %241  ;;  %269 = vadd.xlane.f32.xlu0 %v268_v48 }
 0x1bf   :  { %v253_v50 = vmul.f32 %v249_v33, %v242_v49 }
 0x1c1   :  { %v541_v51 = vsub.f32 %v230_v25, %v253_v50 }
 0x1c3   :  { %v261_v52 = vmul.f32 %v541_v51, %v541_v51 }
 0x1c5   :  { %v271_v53 = vsel %vm31_vm0, %v261_v52, 0.0 }
 0x1c6   :  { %272 = vadd.xlane.f32.xlu1 %v271_v53 }
 0x225   :  { %v264_v54 = vpop.xlane.xlu2 %263 }
 0x226   :  { %v274_v55 = vmul.f32 %v264_v54, %v249_v33 }
 0x228   :  { %v278_v56 = vadd.f32 1e-05, %v274_v55 }
 0x22a   :  { %430 = vrsqrt.f32 %v278_v56  ;;  %vm288_vm4 = vweird.f32 %v278_v56 }
 0x22d   :  { %v267_v57 = vpop.xlane.xlu2 %266 }
 0x22e   :  { %v275_v58 = vmul.f32 %v267_v57, %v249_v33 }
 0x230   :  { %v431_v59 = vpop.eup %430  ;;  %v279_v60 = vadd.f32 1e-05, %v275_v58 }
 0x231   :  { %v283_v61 = vmul.f32 %v431_v59, %v278_v56  ;;  %v270_v62 = vpop.xlane.xlu0 %269  ;;  %vm289_vm3 = vweird.f32 %v431_v59 }
 0x232   :  { %432 = vrsqrt.f32 %v279_v60  ;;  %v276_v63 = vmul.f32 %v270_v62, %v249_v33  ;;  %vm290_vm5 = vmor %vm288_vm4, %vm289_vm3  ;;  %vm298_vm8 = vweird.f32 %v279_v60 }
 0x233   :  { %v284_v0 = vmul.f32 %v431_v59, %v283_v61 }
 0x234   :  { %v280_v1 = vadd.f32 1e-05, %v276_v63 }
 0x235   :  { %v285_v2 = vmul.f32 0.5, %v284_v0 }
 0x236   :  { %434 = vrsqrt.f32 %v280_v1  ;;  %vm308_vm11 = vweird.f32 %v280_v1 }
 0x237   :  { %v286_v3 = vsub.f32 1.5, %v285_v2 }
 0x238   :  { %v433_v4 = vpop.eup %432 }
 0x239   :  { %v287_v5 = vmul.f32 %v431_v59, %v286_v3  ;;  %v293_v6 = vmul.f32 %v433_v4, %v279_v60  ;;  %v273_v7 = vpop.xlane.xlu1 %272  ;;  %vm299_vm6 = vweird.f32 %v433_v4 }
 0x23a   :  { %v277_v9 = vmul.f32 %v273_v7, %v249_v33  ;;  %vm300_vm9 = vmor %vm298_vm8, %vm299_vm6 }
 0x23b   :  { %v291_v10 = vsel %vm290_vm5, %v431_v59, %v287_v5  ;;  %v294_v11 = vmul.f32 %v433_v4, %v293_v6 }
 0x23c   :  { %v435_v12 = vpop.eup %434  ;;  %v322_v14 = vmul.f32 %v291_v10, %v254_v36  ;;  %v281_v15 = vadd.f32 1e-05, %v277_v9 }
 0x23d   :  { %v295_v16 = vmul.f32 0.5, %v294_v11  ;;  %v303_v17 = vmul.f32 %v435_v12, %v280_v1  ;;  %vm309_vm10 = vweird.f32 %v435_v12 }
 0x23e   :  { %v330_v18 = vmul.f32 %v418_v8, %v322_v14  ;;  %436 = vrsqrt.f32 %v281_v15  ;;  %vm310_vm12 = vmor %vm308_vm11, %vm309_vm10  ;;  %vm318_vm14 = vweird.f32 %v281_v15 }
 0x23f   :  { %v296_v19 = vsub.f32 1.5, %v295_v16  ;;  %v304_v20 = vmul.f32 %v435_v12, %v303_v17 }
 0x240   :  { %v338_v21 = vadd.f32 %v419_v13, %v330_v18 }
 0x241   :  { %v297_v22 = vmul.f32 %v433_v4, %v296_v19  ;;  %v305_v23 = vmul.f32 0.5, %v304_v20 }
 0x242   :  { %v342_v24 = vpack.c.bf16 %v338_v21, %v338_v21 }
 0x243   :  { %v301_v25 = vsel %vm300_vm9, %v433_v4, %v297_v22  ;;  %v306_v26 = vsub.f32 1.5, %v305_v23 }
 0x244   :  { %v437_v27 = vpop.eup %436  ;;  %347 = vst.msk [vmem:[%s578_s7] sm:$0xf] %vm346_vm7, %v342_v24  ;;  %v323_v28 = vmul.f32 %v301_v25, %v531_v41 }
 0x245   :  { %v307_v29 = vmul.f32 %v435_v12, %v306_v26  ;;  %v313_v30 = vmul.f32 %v437_v27, %v281_v15  ;;  %vm319_vm13 = vweird.f32 %v437_v27 }
 0x246   :  { %v331_v31 = vmul.f32 %v418_v8, %v323_v28  ;;  %vm320_vm15 = vmor %vm318_vm14, %vm319_vm13 }
 0x247   :  { %v311_v32 = vsel %vm310_vm12, %v435_v12, %v307_v29  ;;  %v314_v33 = vmul.f32 %v437_v27, %v313_v30 }
 0x248   :  { %v339_v34 = vadd.f32 %v419_v13, %v331_v31  ;;  %v324_v35 = vmul.f32 %v311_v32, %v535_v45 }
 0x249   :  { %v315_v36 = vmul.f32 0.5, %v314_v33 }
 0x24a   :  { %v343_v37 = vpack.c.bf16 %v339_v34, %v339_v34  ;;  %v332_v38 = vmul.f32 %v418_v8, %v324_v35 }
 0x24b   :  { %v316_v39 = vsub.f32 1.5, %v315_v36 }
 0x24c   :  { %348 = vst.msk [vmem:[%s578_s7 + $0x4] sm:$0xf] %vm346_vm7, %v343_v37  ;;  %v340_v40 = vadd.f32 %v419_v13, %v332_v38 }
 0x24d   :  { %v317_v41 = vmul.f32 %v437_v27, %v316_v39 }
 0x24e   :  { %v344_v42 = vpack.c.bf16 %v340_v40, %v340_v40 }
 0x24f   :  { %v321_v43 = vsel %vm320_vm15, %v437_v27, %v317_v41 }
 0x250   :  { %349 = vst.msk [vmem:[%s578_s7 + $0x8] sm:$0xf] %vm346_vm7, %v344_v42  ;;  %v325_v44 = vmul.f32 %v321_v43, %v541_v51 }
 0x252   :  { %v333_v45 = vmul.f32 %v418_v8, %v325_v44 }
 0x254   :  { %v341_v46 = vadd.f32 %v419_v13, %v333_v45 }
 0x256   :  { %v345_v47 = vpack.c.bf16 %v341_v46, %v341_v46 }
 0x258   :  { %350 = vst.msk [vmem:[%s578_s7 + $0xc] sm:$0xf] %vm346_vm7, %v345_v47 }

</bundles_post_ra>
